<compile_context>
chip_gen: v7x
topology: tpu7x:2x2x1
jax: 0.10.0
libtpu: 0.0.40
codegen_flags: <defaults>
</compile_context>

<pallas_src>
import jax
import jax.numpy as jnp
from jax.experimental import pallas as pl
from jax.experimental.pallas import tpu as pltpu

# ---------------- model config (small, consistent with the module) ----------------
B = 2               # batch
L = 8               # sequence length
D_MODEL = 32
EXPAND = 2
HEADDIM = 16        # P
D_STATE = 16        # N
D_INNER = EXPAND * D_MODEL          # 64
NHEADS = D_INNER // HEADDIM         # 4   (also MultiheadAttention num_heads)
P = HEADDIM
N = D_STATE
E = 2 * P                           # attention embed dim = 32
HD = E // NHEADS                    # attention head dim = 8
NW = L - 1                          # num windows (window_size=2, stride=1)
D_IN_PROJ = 2 * D_INNER + 2 * N + NHEADS    # 164
EPS = 1e-5
F32 = jnp.float32
BH = B * NHEADS


# ============================== fused Hydra forward kernel ==============================
def hydra_kernel(u_ref, win_ref, dtb_ref, A_ref, dfull_ref, normw_ref, wout_ref,
                 wqkv_ref, bqkv_ref, wof_ref, bof_ref, out_ref):
    # ---------- in_proj: one fused MXU matmul, then split + softplus ----------
    u = u_ref[...]                                                  # [B*L, D_MODEL]
    zx = jnp.dot(u, win_ref[...], preferred_element_type=F32)       # [B*L, 164]
    z = zx[:, :D_INNER]
    x = zx[:, D_INNER:2 * D_INNER]
    bfeat = zx[:, 2 * D_INNER:2 * D_INNER + N]
    cfeat = zx[:, 2 * D_INNER + N:2 * D_INNER + 2 * N]
    t = zx[:, 2 * D_INNER + 2 * N:] + dtb_ref[...]
    dt = jnp.where(t > 20.0, t, jnp.log(1.0 + jnp.exp(jnp.minimum(t, 20.0))))  # softplus
    a = dt * A_ref[...]                                             # A * dt   [B*L, H]

    # "next row" companions (window position 1).  The last row of each batch wraps into the
    # neighbouring batch, but those rows only ever feed window index L-1, which is masked /
    # never read below (and all wrapped values stay finite).
    def nxt(s):
        return jnp.concatenate([s[1:], s[:1]], axis=0)

    x_n, dt_n, a_n = nxt(x), nxt(dt), nxt(a)
    bfeat_n, cfeat_n = nxt(bfeat), nxt(cfeat)

    # ---------- layout helpers: slab [B*L, H*w]  ->  head-major [B*H, L, w] ----------
    def split_heads(slab, w):
        parts = [slab[:, h * w:(h + 1) * w].reshape(B, 1, L, w) for h in range(NHEADS)]
        return jnp.concatenate(parts, axis=1).reshape(BH, L, w)

    def bcast_heads(col):            # head-independent per-(b, l) values -> [B*H, L, k]
        k = col.shape[-1]
        return jnp.broadcast_to(col.reshape(B, 1, L, k), (B, NHEADS, L, k)).reshape(BH, L, k)

    dt0_hm, dt1_hm = split_heads(dt, 1), split_heads(dt_n, 1)        # [BH, L, 1]
    a0_hm, a1_hm = split_heads(a, 1), split_heads(a_n, 1)            # [BH, L, 1]
    x0_hm = split_heads(x, P) * dt0_hm                               # (x*dt) at window pos 0
    x1_hm = split_heads(x_n, P) * dt1_hm                             # (x*dt) at window pos 1

    # ---------- Y_diag (intra-window; L_matrix == [[1,0],[1,1]] after segsum norm) -------
    CB00 = bcast_heads(jnp.sum(cfeat * bfeat, axis=-1, keepdims=True))
    CB10 = bcast_heads(jnp.sum(cfeat_n * bfeat, axis=-1, keepdims=True))
    CB11 = bcast_heads(jnp.sum(cfeat_n * bfeat_n, axis=-1, keepdims=True))
    yd0 = CB00 * x0_hm                                               # window position 0
    yd1 = CB10 * x0_hm + CB11 * x1_hm                                # window position 1

    # ---------- decay_chunk slice: dsub[bh, z, c] = decay_chunk[b, h, z, c+1] ------------
    # Reference segsum (cumsum over the *last* axis): S[z, j] = padded[z] * min(j+1, z),
    # with detached row-max subtraction, clamp to +-50, exp, lower-triangular mask.
    # TODO(synk): the PyTorch ssd() indexes decay_chunk with [0] in a way that cannot
    # broadcast through torch.einsum for B>1; implemented per-batch here.
    ac1_hm = a0_hm + a1_hm                                           # A_cumsum[..., -1] per window
    padded = jnp.concatenate([jnp.zeros((BH, 1, 1), F32), ac1_hm[:, :NW, :]], axis=1)
    zi = jax.lax.broadcasted_iota(jnp.int32, (BH, L, L), 1)          # destination window z
    ci = jax.lax.broadcasted_iota(jnp.int32, (BH, L, L), 2)          # source window c
    zf = zi.astype(F32)
    seg = padded * jnp.minimum(ci.astype(F32) + 2.0, zf)             # segsum value at column c+1
    rmax = jnp.where(padded >= 0.0, padded * zf, padded * jnp.minimum(zf, 1.0))  # row max (exact)
    dsub = jnp.where(zi >= ci + 1,
                     jnp.exp(jnp.clip(seg - rmax, -50.0, 50.0)), 0.0)   # [BH, L, L]
    # (column c = L-1 is automatically zero, masking the wrapped / invalid last window)

    # ---------- cross-window states folded through (C . B) Gram matrices (all MXU) -------
    bf3, cf3 = bfeat.reshape(B, L, N), cfeat.reshape(B, L, N)
    bfn3, cfn3 = bfeat_n.reshape(B, L, N), cfeat_n.reshape(B, L, N)

    def gram(cm, bm):                # G[b, z, c] = C[z] . B[c], broadcast over heads
        g = jnp.einsum('bzn,bcn->bzc', cm, bm, preferred_element_type=F32)
        return jnp.broadcast_to(g.reshape(B, 1, L, L), (B, NHEADS, L, L)).reshape(BH, L, L)

    G00, G01 = gram(cf3, bf3), gram(cf3, bfn3)                       # for output pos 0
    G10, G11 = gram(cfn3, bf3), gram(cfn3, bfn3)                     # for output pos 1

    u0 = jnp.exp(a1_hm) * x0_hm                                      # decay_states * (x*dt)
    u1 = x1_hm

    def mix(w, v):                   # batched [L,L] @ [L,P] over the B*H batch axis
        return jnp.einsum('xzc,xcp->xzp', w, v, preferred_element_type=F32)

    cs0 = mix(dsub * G00, u0) + mix(dsub * G01, u1)                  # C0 . states2
    cs1 = mix(dsub * G10, u0) + mix(dsub * G11, u1)                  # C1 . states2

    # state_decay_out with the reference's detached-max normalisation
    mm = jnp.maximum(a0_hm, ac1_hm)
    yo0 = jnp.exp(a0_hm - mm) * cs0
    yo1 = jnp.exp(ac1_hm - mm) * cs1

    # ---------- restore_sequence (overlap-add / overlap-average) ----------
    def restore(y0, y1):
        mid = 0.5 * (y0[:, 1:NW] + y1[:, :NW - 1])
        return jnp.concatenate([y0[:, :1], mid, y1[:, NW - 1:NW]], axis=1)

    yd = restore(yd0, yd1)                                           # [BH, L, P]
    yo = restore(yo0, yo1)

    # ---------- multi-head self-attention fusion + pre-fused out-proj/reduce ----------
    comb = jnp.concatenate([yd, yo], axis=-1).reshape(BH * L, E)     # [BH*L, 2P]
    qkv = jnp.dot(comb, wqkv_ref[...], preferred_element_type=F32) + bqkv_ref[...]

    def attn_heads(base):            # lane slice of qkv -> [BH*G, L, HD]
        parts = [qkv[:, base + g * HD: base + (g + 1) * HD].reshape(BH, 1, L, HD)
                 for g in range(NHEADS)]
        return jnp.concatenate(parts, axis=1).reshape(BH * NHEADS, L, HD)

    q, k, v = attn_heads(0), attn_heads(E), attn_heads(2 * E)
    s = jnp.einsum('xqd,xkd->xqk', q, k, preferred_element_type=F32) * (1.0 / (HD ** 0.5))
    s = s - jnp.max(s, axis=-1, keepdims=True)
    ex = jnp.exp(s)
    pr = ex * pl.reciprocal(jnp.sum(ex, axis=-1, keepdims=True), approx=True)
    o = jnp.einsum('xqk,xkd->xqd', pr, v, preferred_element_type=F32)    # [BH*G, L, HD]
    o4 = o.reshape(BH, NHEADS, L, HD)
    attn = jnp.concatenate([o4[:, g].reshape(BH * L, HD) for g in range(NHEADS)], axis=-1)
    fused = jnp.dot(attn, wof_ref[...], preferred_element_type=F32) + bof_ref[...]  # [BH*L, P]

    # ---------- back to channel-last slab, skip, gated RMSNorm, out_proj ----------
    f4 = fused.reshape(B, NHEADS, L, P)
    y_ssd = jnp.concatenate([f4[:, h].reshape(B * L, P) for h in range(NHEADS)], axis=-1)

    y = y_ssd + x * dfull_ref[...]                                   # skip: + x * D
    yz = y * (z * (1.0 / (1.0 + jnp.exp(-z))))                       # y * silu(z)
    ms = jnp.mean(yz * yz, axis=-1, keepdims=True)
    yn = yz * jax.lax.rsqrt(ms + EPS) * normw_ref[...]
    out_ref[...] = jnp.dot(yn, wout_ref[...], preferred_element_type=F32)


# ============================== wrapper ==============================
def _full(shape):
    nd = len(shape)
    return pl.BlockSpec(shape, lambda i, _nd=nd: (0,) * _nd)


def hydra_forward(u, f):
    u2d = u.reshape(B * L, D_MODEL)
    y2d = pl.pallas_call(
        hydra_kernel,
        grid=(1,),
        in_specs=[
            _full((B * L, D_MODEL)),       # u
            _full((D_MODEL, D_IN_PROJ)),   # concatenated in_proj weight
            _full((1, NHEADS)),            # dt_bias
            _full((1, NHEADS)),            # A = -exp(A_log)
            _full((1, D_INNER)),           # D repeated per headdim
            _full((1, D_INNER)),           # RMSNorm weight
            _full((D_INNER, D_MODEL)),     # out_proj
            _full((E, 3 * E)),             # fused q|k|v weight
            _full((1, 3 * E)),             # fused q|k|v bias
            _full((E, P)),                 # attention out-proj @ reduce_layer (fused)
            _full((1, P)),                 # fused bias
        ],
        out_specs=_full((B * L, D_MODEL)),
        out_shape=jax.ShapeDtypeStruct((B * L, D_MODEL), F32),
        compiler_params=pltpu.CompilerParams(dimension_semantics=("arbitrary",)),
    )(u2d, f['w_in'], f['dt_bias'], f['A_row'], f['d_full'], f['norm_w'], f['w_out'],
      f['wqkv'], f['bqkv'], f['w_of'], f['b_of'])
    y = y2d.reshape(B, L, D_MODEL)
    return y, y[:, -1, :]


# ============================== params ==============================
def init_params(key):
    ks = jax.random.split(key, 16)
    s = 0.05
    p = {}
    # in_proj (math orientation [in, out]), stored pre-split
    p['wz'] = jax.random.normal(ks[0], (D_MODEL, D_INNER), F32) * s
    p['wx'] = jax.random.normal(ks[1], (D_MODEL, D_INNER), F32) * s
    p['wb'] = jax.random.normal(ks[2], (D_MODEL, N), F32) * s
    p['wc'] = jax.random.normal(ks[3], (D_MODEL, N), F32) * s
    p['wdt'] = jax.random.normal(ks[4], (D_MODEL, NHEADS), F32) * s
    p['dt_bias'] = jax.random.normal(ks[5], (1, NHEADS), F32) * 0.1
    p['A_log'] = jax.random.normal(ks[6], (NHEADS,), F32) * 0.01
    p['D'] = jnp.ones((NHEADS,), F32) * 0.01
    p['norm_w'] = jnp.ones((D_INNER,), F32)
    p['w_out'] = jax.random.normal(ks[7], (D_INNER, D_MODEL), F32) * s
    # MultiheadAttention (self-attention) + reduce_layer
    p['wq'] = jax.random.normal(ks[8], (E, E), F32) * s
    p['wk'] = jax.random.normal(ks[9], (E, E), F32) * s
    p['wv'] = jax.random.normal(ks[10], (E, E), F32) * s
    p['bq'] = jnp.zeros((1, E), F32)
    p['bk'] = jnp.zeros((1, E), F32)
    p['bv'] = jnp.zeros((1, E), F32)
    p['wo_attn'] = jax.random.normal(ks[11], (E, E), F32) * s
    p['bo_attn'] = jax.random.normal(ks[12], (1, E), F32) * 0.01
    p['w_red'] = jax.random.normal(ks[13], (E, P), F32) * s
    p['b_red'] = jax.random.normal(ks[14], (1, P), F32) * 0.01
    # TODO(synk): fusion_layer from the reference __init__ is unused in forward -> not created.
    return p


def prepare_params(p):
    """Trace-time parameter fusion (exact reparameterisation of the module weights)."""
    f = {}
    f['w_in'] = jnp.concatenate([p['wz'], p['wx'], p['wb'], p['wc'], p['wdt']], axis=1)
    f['dt_bias'] = p['dt_bias']
    f['A_row'] = -jnp.exp(p['A_log'])[None, :]
    f['d_full'] = jnp.repeat(p['D'], P)[None, :]
    f['norm_w'] = p['norm_w'][None, :]
    f['w_out'] = p['w_out']
    f['wqkv'] = jnp.concatenate([p['wq'], p['wk'], p['wv']], axis=1)
    f['bqkv'] = jnp.concatenate([p['bq'], p['bk'], p['bv']], axis=1)
    f['w_of'] = p['wo_attn'] @ p['w_red']                      # attn out-proj fused with reduce
    f['b_of'] = p['bo_attn'] @ p['w_red'] + p['b_red']
    return f


if __name__ == "__main__":
    key = jax.random.PRNGKey(0)
    kp, ku = jax.random.split(key)
    params = init_params(kp)
    fused_params = prepare_params(params)
    u = jax.random.normal(ku, (B, L, D_MODEL), F32)

    fwd = jax.jit(hydra_forward)
    y, last_ball = fwd(u, fused_params)
    jax.block_until_ready((y, last_ball))

    assert y.shape == (B, L, D_MODEL), y.shape
    assert last_ball.shape == (B, D_MODEL), last_ball.shape
    assert bool(jnp.all(jnp.isfinite(y))) and bool(jnp.all(jnp.isfinite(last_ball)))
    print("KERNEL_OK")
</pallas_src>

<mosaic_0001>
module attributes {stable_mosaic.version = 11 : i64} {
  func.func @hydra_kernel(%arg0: i32, %arg1: memref<16x32xf32, #tpu.memory_space<vmem>>, %arg2: memref<32x164xf32, #tpu.memory_space<vmem>>, %arg3: memref<1x4xf32, #tpu.memory_space<vmem>>, %arg4: memref<1x4xf32, #tpu.memory_space<vmem>>, %arg5: memref<1x64xf32, #tpu.memory_space<vmem>>, %arg6: memref<1x64xf32, #tpu.memory_space<vmem>>, %arg7: memref<64x32xf32, #tpu.memory_space<vmem>>, %arg8: memref<32x96xf32, #tpu.memory_space<vmem>>, %arg9: memref<1x96xf32, #tpu.memory_space<vmem>>, %arg10: memref<32x16xf32, #tpu.memory_space<vmem>>, %arg11: memref<1x16xf32, #tpu.memory_space<vmem>>, %arg12: memref<16x32xf32, #tpu.memory_space<vmem>>) attributes {dimension_semantics = [#tpu.dimension_semantics<arbitrary>], iteration_bounds = array<i64: 1>, scalar_prefetch = 0 : i64, scratch_operands = 0 : i64, tpu.core_type = #tpu.core_type<tc>, window_params = [{pipeline_mode = #tpu.pipeline_mode<synchronous>, transform_indices = @transform_0, window_bounds = array<i64: 16, 32>}, {pipeline_mode = #tpu.pipeline_mode<synchronous>, transform_indices = @transform_1, window_bounds = array<i64: 32, 164>}, {pipeline_mode = #tpu.pipeline_mode<synchronous>, transform_indices = @transform_2, window_bounds = array<i64: 1, 4>}, {pipeline_mode = #tpu.pipeline_mode<synchronous>, transform_indices = @transform_3, window_bounds = array<i64: 1, 4>}, {pipeline_mode = #tpu.pipeline_mode<synchronous>, transform_indices = @transform_4, window_bounds = array<i64: 1, 64>}, {pipeline_mode = #tpu.pipeline_mode<synchronous>, transform_indices = @transform_5, window_bounds = array<i64: 1, 64>}, {pipeline_mode = #tpu.pipeline_mode<synchronous>, transform_indices = @transform_6, window_bounds = array<i64: 64, 32>}, {pipeline_mode = #tpu.pipeline_mode<synchronous>, transform_indices = @transform_7, window_bounds = array<i64: 32, 96>}, {pipeline_mode = #tpu.pipeline_mode<synchronous>, transform_indices = @transform_8, window_bounds = array<i64: 1, 96>}, {pipeline_mode = #tpu.pipeline_mode<synchronous>, transform_indices = @transform_9, window_bounds = array<i64: 32, 16>}, {pipeline_mode = #tpu.pipeline_mode<synchronous>, transform_indices = @transform_10, window_bounds = array<i64: 1, 16>}, {pipeline_mode = #tpu.pipeline_mode<synchronous>, transform_indices = @transform_11, window_bounds = array<i64: 16, 32>}]} {
    %c0 = arith.constant 0 : index
    %c0_0 = arith.constant 0 : index
    %0 = vector.load %arg1[%c0, %c0_0] : memref<16x32xf32, #tpu.memory_space<vmem>>, vector<16x32xf32>
    %c0_1 = arith.constant 0 : index
    %c0_2 = arith.constant 0 : index
    %1 = vector.load %arg2[%c0_1, %c0_2] : memref<32x164xf32, #tpu.memory_space<vmem>>, vector<32x164xf32>
    %cst = arith.constant dense<0.000000e+00> : vector<16x164xf32>
    %2 = tpu.matmul %0, %1, %cst {dimension_numbers = #tpu.dot_dimension_numbers<[1], [0], [0], [1], [0, 0, 1, 1], [], []>} : vector<16x32xf32>, vector<32x164xf32>, vector<16x164xf32> -> vector<16x164xf32>
    %3 = vector.extract_strided_slice %2 {offsets = [0, 0], sizes = [16, 64], strides = [1, 1]} : vector<16x164xf32> to vector<16x64xf32>
    %4 = vector.extract_strided_slice %2 {offsets = [0, 64], sizes = [16, 64], strides = [1, 1]} : vector<16x164xf32> to vector<16x64xf32>
    %5 = vector.extract_strided_slice %2 {offsets = [0, 128], sizes = [16, 16], strides = [1, 1]} : vector<16x164xf32> to vector<16x16xf32>
    %6 = vector.extract_strided_slice %2 {offsets = [0, 144], sizes = [16, 16], strides = [1, 1]} : vector<16x164xf32> to vector<16x16xf32>
    %7 = vector.extract_strided_slice %2 {offsets = [0, 160], sizes = [16, 4], strides = [1, 1]} : vector<16x164xf32> to vector<16x4xf32>
    %c0_3 = arith.constant 0 : index
    %c0_4 = arith.constant 0 : index
    %8 = vector.load %arg3[%c0_3, %c0_4] : memref<1x4xf32, #tpu.memory_space<vmem>>, vector<1x4xf32>
    %9 = vector.broadcast %8 : vector<1x4xf32> to vector<16x4xf32>
    %10 = arith.addf %7, %9 : vector<16x4xf32>
    %cst_5 = arith.constant 2.000000e+01 : f32
    %11 = vector.broadcast %cst_5 : f32 to vector<16x4xf32>
    %12 = arith.cmpf ogt, %10, %11 : vector<16x4xf32>
    %cst_6 = arith.constant 2.000000e+01 : f32
    %13 = vector.broadcast %cst_6 : f32 to vector<16x4xf32>
    %14 = arith.minimumf %10, %13 : vector<16x4xf32>
    %15 = math.exp %14 : vector<16x4xf32>
    %cst_7 = arith.constant 1.000000e+00 : f32
    %16 = vector.broadcast %cst_7 : f32 to vector<16x4xf32>
    %17 = arith.addf %16, %15 : vector<16x4xf32>
    %18 = math.log %17 : vector<16x4xf32>
    %19 = arith.select %12, %10, %18 : vector<16x4xi1>, vector<16x4xf32>
    %c0_8 = arith.constant 0 : index
    %c0_9 = arith.constant 0 : index
    %20 = vector.load %arg4[%c0_8, %c0_9] : memref<1x4xf32, #tpu.memory_space<vmem>>, vector<1x4xf32>
    %21 = vector.broadcast %20 : vector<1x4xf32> to vector<16x4xf32>
    %22 = arith.mulf %19, %21 : vector<16x4xf32>
    %23 = vector.extract_strided_slice %4 {offsets = [1, 0], sizes = [15, 64], strides = [1, 1]} : vector<16x64xf32> to vector<15x64xf32>
    %24 = vector.extract_strided_slice %4 {offsets = [0, 0], sizes = [1, 64], strides = [1, 1]} : vector<16x64xf32> to vector<1x64xf32>
    %25 = tpu.concatenate %23, %24 in 0 : vector<15x64xf32>, vector<1x64xf32> -> vector<16x64xf32>
    %26 = vector.extract_strided_slice %19 {offsets = [1, 0], sizes = [15, 4], strides = [1, 1]} : vector<16x4xf32> to vector<15x4xf32>
    %27 = vector.extract_strided_slice %19 {offsets = [0, 0], sizes = [1, 4], strides = [1, 1]} : vector<16x4xf32> to vector<1x4xf32>
    %28 = tpu.concatenate %26, %27 in 0 : vector<15x4xf32>, vector<1x4xf32> -> vector<16x4xf32>
    %29 = vector.extract_strided_slice %22 {offsets = [1, 0], sizes = [15, 4], strides = [1, 1]} : vector<16x4xf32> to vector<15x4xf32>
    %30 = vector.extract_strided_slice %22 {offsets = [0, 0], sizes = [1, 4], strides = [1, 1]} : vector<16x4xf32> to vector<1x4xf32>
    %31 = tpu.concatenate %29, %30 in 0 : vector<15x4xf32>, vector<1x4xf32> -> vector<16x4xf32>
    %32 = vector.extract_strided_slice %5 {offsets = [1, 0], sizes = [15, 16], strides = [1, 1]} : vector<16x16xf32> to vector<15x16xf32>
    %33 = vector.extract_strided_slice %5 {offsets = [0, 0], sizes = [1, 16], strides = [1, 1]} : vector<16x16xf32> to vector<1x16xf32>
    %34 = tpu.concatenate %32, %33 in 0 : vector<15x16xf32>, vector<1x16xf32> -> vector<16x16xf32>
    %35 = vector.extract_strided_slice %6 {offsets = [1, 0], sizes = [15, 16], strides = [1, 1]} : vector<16x16xf32> to vector<15x16xf32>
    %36 = vector.extract_strided_slice %6 {offsets = [0, 0], sizes = [1, 16], strides = [1, 1]} : vector<16x16xf32> to vector<1x16xf32>
    %37 = tpu.concatenate %35, %36 in 0 : vector<15x16xf32>, vector<1x16xf32> -> vector<16x16xf32>
    %38 = vector.extract_strided_slice %19 {offsets = [0, 0], sizes = [16, 1], strides = [1, 1]} : vector<16x4xf32> to vector<16x1xf32>
    %39 = vector.shape_cast %38 : vector<16x1xf32> to vector<2x1x8x1xf32>
    %40 = vector.extract_strided_slice %19 {offsets = [0, 1], sizes = [16, 1], strides = [1, 1]} : vector<16x4xf32> to vector<16x1xf32>
    %41 = vector.shape_cast %40 : vector<16x1xf32> to vector<2x1x8x1xf32>
    %42 = vector.extract_strided_slice %19 {offsets = [0, 2], sizes = [16, 1], strides = [1, 1]} : vector<16x4xf32> to vector<16x1xf32>
    %43 = vector.shape_cast %42 : vector<16x1xf32> to vector<2x1x8x1xf32>
    %44 = vector.extract_strided_slice %19 {offsets = [0, 3], sizes = [16, 1], strides = [1, 1]} : vector<16x4xf32> to vector<16x1xf32>
    %45 = vector.shape_cast %44 : vector<16x1xf32> to vector<2x1x8x1xf32>
    %46 = tpu.concatenate %39, %41, %43, %45 in 1 : vector<2x1x8x1xf32>, vector<2x1x8x1xf32>, vector<2x1x8x1xf32>, vector<2x1x8x1xf32> -> vector<2x4x8x1xf32>
    %47 = vector.shape_cast %46 : vector<2x4x8x1xf32> to vector<8x8x1xf32>
    %48 = vector.extract_strided_slice %28 {offsets = [0, 0], sizes = [16, 1], strides = [1, 1]} : vector<16x4xf32> to vector<16x1xf32>
    %49 = vector.shape_cast %48 : vector<16x1xf32> to vector<2x1x8x1xf32>
    %50 = vector.extract_strided_slice %28 {offsets = [0, 1], sizes = [16, 1], strides = [1, 1]} : vector<16x4xf32> to vector<16x1xf32>
    %51 = vector.shape_cast %50 : vector<16x1xf32> to vector<2x1x8x1xf32>
    %52 = vector.extract_strided_slice %28 {offsets = [0, 2], sizes = [16, 1], strides = [1, 1]} : vector<16x4xf32> to vector<16x1xf32>
    %53 = vector.shape_cast %52 : vector<16x1xf32> to vector<2x1x8x1xf32>
    %54 = vector.extract_strided_slice %28 {offsets = [0, 3], sizes = [16, 1], strides = [1, 1]} : vector<16x4xf32> to vector<16x1xf32>
    %55 = vector.shape_cast %54 : vector<16x1xf32> to vector<2x1x8x1xf32>
    %56 = tpu.concatenate %49, %51, %53, %55 in 1 : vector<2x1x8x1xf32>, vector<2x1x8x1xf32>, vector<2x1x8x1xf32>, vector<2x1x8x1xf32> -> vector<2x4x8x1xf32>
    %57 = vector.shape_cast %56 : vector<2x4x8x1xf32> to vector<8x8x1xf32>
    %58 = vector.extract_strided_slice %22 {offsets = [0, 0], sizes = [16, 1], strides = [1, 1]} : vector<16x4xf32> to vector<16x1xf32>
    %59 = vector.shape_cast %58 : vector<16x1xf32> to vector<2x1x8x1xf32>
    %60 = vector.extract_strided_slice %22 {offsets = [0, 1], sizes = [16, 1], strides = [1, 1]} : vector<16x4xf32> to vector<16x1xf32>
    %61 = vector.shape_cast %60 : vector<16x1xf32> to vector<2x1x8x1xf32>
    %62 = vector.extract_strided_slice %22 {offsets = [0, 2], sizes = [16, 1], strides = [1, 1]} : vector<16x4xf32> to vector<16x1xf32>
    %63 = vector.shape_cast %62 : vector<16x1xf32> to vector<2x1x8x1xf32>
    %64 = vector.extract_strided_slice %22 {offsets = [0, 3], sizes = [16, 1], strides = [1, 1]} : vector<16x4xf32> to vector<16x1xf32>
    %65 = vector.shape_cast %64 : vector<16x1xf32> to vector<2x1x8x1xf32>
    %66 = tpu.concatenate %59, %61, %63, %65 in 1 : vector<2x1x8x1xf32>, vector<2x1x8x1xf32>, vector<2x1x8x1xf32>, vector<2x1x8x1xf32> -> vector<2x4x8x1xf32>
    %67 = vector.shape_cast %66 : vector<2x4x8x1xf32> to vector<8x8x1xf32>
    %68 = vector.extract_strided_slice %31 {offsets = [0, 0], sizes = [16, 1], strides = [1, 1]} : vector<16x4xf32> to vector<16x1xf32>
    %69 = vector.shape_cast %68 : vector<16x1xf32> to vector<2x1x8x1xf32>
    %70 = vector.extract_strided_slice %31 {offsets = [0, 1], sizes = [16, 1], strides = [1, 1]} : vector<16x4xf32> to vector<16x1xf32>
    %71 = vector.shape_cast %70 : vector<16x1xf32> to vector<2x1x8x1xf32>
    %72 = vector.extract_strided_slice %31 {offsets = [0, 2], sizes = [16, 1], strides = [1, 1]} : vector<16x4xf32> to vector<16x1xf32>
    %73 = vector.shape_cast %72 : vector<16x1xf32> to vector<2x1x8x1xf32>
    %74 = vector.extract_strided_slice %31 {offsets = [0, 3], sizes = [16, 1], strides = [1, 1]} : vector<16x4xf32> to vector<16x1xf32>
    %75 = vector.shape_cast %74 : vector<16x1xf32> to vector<2x1x8x1xf32>
    %76 = tpu.concatenate %69, %71, %73, %75 in 1 : vector<2x1x8x1xf32>, vector<2x1x8x1xf32>, vector<2x1x8x1xf32>, vector<2x1x8x1xf32> -> vector<2x4x8x1xf32>
    %77 = vector.shape_cast %76 : vector<2x4x8x1xf32> to vector<8x8x1xf32>
    %78 = vector.extract_strided_slice %4 {offsets = [0, 0], sizes = [16, 16], strides = [1, 1]} : vector<16x64xf32> to vector<16x16xf32>
    %79 = vector.shape_cast %78 : vector<16x16xf32> to vector<2x1x8x16xf32>
    %80 = vector.extract_strided_slice %4 {offsets = [0, 16], sizes = [16, 16], strides = [1, 1]} : vector<16x64xf32> to vector<16x16xf32>
    %81 = vector.shape_cast %80 : vector<16x16xf32> to vector<2x1x8x16xf32>
    %82 = vector.extract_strided_slice %4 {offsets = [0, 32], sizes = [16, 16], strides = [1, 1]} : vector<16x64xf32> to vector<16x16xf32>
    %83 = vector.shape_cast %82 : vector<16x16xf32> to vector<2x1x8x16xf32>
    %84 = vector.extract_strided_slice %4 {offsets = [0, 48], sizes = [16, 16], strides = [1, 1]} : vector<16x64xf32> to vector<16x16xf32>
    %85 = vector.shape_cast %84 : vector<16x16xf32> to vector<2x1x8x16xf32>
    %86 = tpu.concatenate %79, %81, %83, %85 in 1 : vector<2x1x8x16xf32>, vector<2x1x8x16xf32>, vector<2x1x8x16xf32>, vector<2x1x8x16xf32> -> vector<2x4x8x16xf32>
    %87 = vector.shape_cast %86 : vector<2x4x8x16xf32> to vector<8x8x16xf32>
    %88 = vector.broadcast %47 : vector<8x8x1xf32> to vector<8x8x16xf32>
    %89 = arith.mulf %87, %88 : vector<8x8x16xf32>
    %90 = vector.extract_strided_slice %25 {offsets = [0, 0], sizes = [16, 16], strides = [1, 1]} : vector<16x64xf32> to vector<16x16xf32>
    %91 = vector.shape_cast %90 : vector<16x16xf32> to vector<2x1x8x16xf32>
    %92 = vector.extract_strided_slice %25 {offsets = [0, 16], sizes = [16, 16], strides = [1, 1]} : vector<16x64xf32> to vector<16x16xf32>
    %93 = vector.shape_cast %92 : vector<16x16xf32> to vector<2x1x8x16xf32>
    %94 = vector.extract_strided_slice %25 {offsets = [0, 32], sizes = [16, 16], strides = [1, 1]} : vector<16x64xf32> to vector<16x16xf32>
    %95 = vector.shape_cast %94 : vector<16x16xf32> to vector<2x1x8x16xf32>
    %96 = vector.extract_strided_slice %25 {offsets = [0, 48], sizes = [16, 16], strides = [1, 1]} : vector<16x64xf32> to vector<16x16xf32>
    %97 = vector.shape_cast %96 : vector<16x16xf32> to vector<2x1x8x16xf32>
    %98 = tpu.concatenate %91, %93, %95, %97 in 1 : vector<2x1x8x16xf32>, vector<2x1x8x16xf32>, vector<2x1x8x16xf32>, vector<2x1x8x16xf32> -> vector<2x4x8x16xf32>
    %99 = vector.shape_cast %98 : vector<2x4x8x16xf32> to vector<8x8x16xf32>
    %100 = vector.broadcast %57 : vector<8x8x1xf32> to vector<8x8x16xf32>
    %101 = arith.mulf %99, %100 : vector<8x8x16xf32>
    %102 = arith.mulf %6, %5 : vector<16x16xf32>
    %cst_10 = arith.constant dense<0.000000e+00> : vector<16xf32>
    %103 = vector.multi_reduction <add>, %102, %cst_10 [1] : vector<16x16xf32> to vector<16xf32>
    %104 = vector.shape_cast %103 : vector<16xf32> to vector<16x1xf32>
    %105 = vector.shape_cast %104 : vector<16x1xf32> to vector<2x1x8x1xf32>
    %106 = vector.shape_cast %105 : vector<2x1x8x1xf32> to vector<2x1x8x1xf32>
    %107 = vector.broadcast %106 : vector<2x1x8x1xf32> to vector<2x4x8x1xf32>
    %108 = vector.shape_cast %107 : vector<2x4x8x1xf32> to vector<8x8x1xf32>
    %109 = arith.mulf %37, %5 : vector<16x16xf32>
    %cst_11 = arith.constant dense<0.000000e+00> : vector<16xf32>
    %110 = vector.multi_reduction <add>, %109, %cst_11 [1] : vector<16x16xf32> to vector<16xf32>
    %111 = vector.shape_cast %110 : vector<16xf32> to vector<16x1xf32>
    %112 = vector.shape_cast %111 : vector<16x1xf32> to vector<2x1x8x1xf32>
    %113 = vector.shape_cast %112 : vector<2x1x8x1xf32> to vector<2x1x8x1xf32>
    %114 = vector.broadcast %113 : vector<2x1x8x1xf32> to vector<2x4x8x1xf32>
    %115 = vector.shape_cast %114 : vector<2x4x8x1xf32> to vector<8x8x1xf32>
    %116 = arith.mulf %37, %34 : vector<16x16xf32>
    %cst_12 = arith.constant dense<0.000000e+00> : vector<16xf32>
    %117 = vector.multi_reduction <add>, %116, %cst_12 [1] : vector<16x16xf32> to vector<16xf32>
    %118 = vector.shape_cast %117 : vector<16xf32> to vector<16x1xf32>
    %119 = vector.shape_cast %118 : vector<16x1xf32> to vector<2x1x8x1xf32>
    %120 = vector.shape_cast %119 : vector<2x1x8x1xf32> to vector<2x1x8x1xf32>
    %121 = vector.broadcast %120 : vector<2x1x8x1xf32> to vector<2x4x8x1xf32>
    %122 = vector.shape_cast %121 : vector<2x4x8x1xf32> to vector<8x8x1xf32>
    %123 = vector.broadcast %108 : vector<8x8x1xf32> to vector<8x8x16xf32>
    %124 = arith.mulf %123, %89 : vector<8x8x16xf32>
    %125 = vector.broadcast %115 : vector<8x8x1xf32> to vector<8x8x16xf32>
    %126 = arith.mulf %125, %89 : vector<8x8x16xf32>
    %127 = vector.broadcast %122 : vector<8x8x1xf32> to vector<8x8x16xf32>
    %128 = arith.mulf %127, %101 : vector<8x8x16xf32>
    %129 = arith.addf %126, %128 : vector<8x8x16xf32>
    %130 = arith.addf %67, %77 : vector<8x8x1xf32>
    %cst_13 = arith.constant 0.000000e+00 : f32
    %131 = vector.broadcast %cst_13 : f32 to vector<8x1x1xf32>
    %132 = vector.extract_strided_slice %130 {offsets = [0, 0, 0], sizes = [8, 7, 1], strides = [1, 1, 1]} : vector<8x8x1xf32> to vector<8x7x1xf32>
    %133 = tpu.concatenate %131, %132 in 1 : vector<8x1x1xf32>, vector<8x7x1xf32> -> vector<8x8x1xf32>
    %134 = tpu.iota {dimensions = array<i32: 1>} : vector<8x8x8xi32>
    %135 = tpu.iota {dimensions = array<i32: 2>} : vector<8x8x8xi32>
    %136 = arith.sitofp %134 : vector<8x8x8xi32> to vector<8x8x8xf32>
    %137 = arith.sitofp %135 : vector<8x8x8xi32> to vector<8x8x8xf32>
    %cst_14 = arith.constant 2.000000e+00 : f32
    %138 = vector.broadcast %cst_14 : f32 to vector<8x8x8xf32>
    %139 = arith.addf %137, %138 : vector<8x8x8xf32>
    %140 = arith.minimumf %139, %136 : vector<8x8x8xf32>
    %141 = vector.broadcast %133 : vector<8x8x1xf32> to vector<8x8x8xf32>
    %142 = arith.mulf %141, %140 : vector<8x8x8xf32>
    %cst_15 = arith.constant 0.000000e+00 : f32
    %143 = vector.broadcast %cst_15 : f32 to vector<8x8x1xf32>
    %144 = arith.cmpf oge, %133, %143 : vector<8x8x1xf32>
    %145 = vector.broadcast %133 : vector<8x8x1xf32> to vector<8x8x8xf32>
    %146 = arith.mulf %145, %136 : vector<8x8x8xf32>
    %cst_16 = arith.constant 1.000000e+00 : f32
    %147 = vector.broadcast %cst_16 : f32 to vector<8x8x8xf32>
    %148 = arith.minimumf %136, %147 : vector<8x8x8xf32>
    %149 = vector.broadcast %133 : vector<8x8x1xf32> to vector<8x8x8xf32>
    %150 = arith.mulf %149, %148 : vector<8x8x8xf32>
    %151 = vector.shape_cast %144 : vector<8x8x1xi1> to vector<8x8x1xi1>
    %152 = vector.broadcast %151 : vector<8x8x1xi1> to vector<8x8x8xi1>
    %153 = arith.select %152, %146, %150 : vector<8x8x8xi1>, vector<8x8x8xf32>
    %c1_i32 = arith.constant 1 : i32
    %154 = vector.broadcast %c1_i32 : i32 to vector<8x8x8xi32>
    %155 = arith.addi %135, %154 : vector<8x8x8xi32>
    %156 = arith.cmpi sge, %134, %155 : vector<8x8x8xi32>
    %157 = arith.subf %142, %153 : vector<8x8x8xf32>
    %cst_17 = arith.constant -5.000000e+01 : f32
    %cst_18 = arith.constant 5.000000e+01 : f32
    %158 = vector.broadcast %cst_17 : f32 to vector<8x8x8xf32>
    %159 = arith.maximumf %158, %157 : vector<8x8x8xf32>
    %160 = vector.broadcast %cst_18 : f32 to vector<8x8x8xf32>
    %161 = arith.minimumf %160, %159 : vector<8x8x8xf32>
    %162 = math.exp %161 : vector<8x8x8xf32>
    %cst_19 = arith.constant 0.000000e+00 : f32
    %163 = vector.broadcast %cst_19 : f32 to vector<8x8x8xf32>
    %164 = arith.select %156, %162, %163 : vector<8x8x8xi1>, vector<8x8x8xf32>
    %165 = vector.shape_cast %5 : vector<16x16xf32> to vector<2x8x16xf32>
    %166 = vector.shape_cast %6 : vector<16x16xf32> to vector<2x8x16xf32>
    %167 = vector.shape_cast %34 : vector<16x16xf32> to vector<2x8x16xf32>
    %168 = vector.shape_cast %37 : vector<16x16xf32> to vector<2x8x16xf32>
    "tpu.trace_start"() <{level = 10 : i32, message = "bzn,bcn->bzc"}> : () -> ()
    %cst_20 = arith.constant dense<0.000000e+00> : vector<2x8x8xf32>
    %169 = tpu.matmul %166, %165, %cst_20 {dimension_numbers = #tpu.dot_dimension_numbers<[2], [2], [1], [1], [0, 0, 0, 1, 1, 1], [0], [0]>} : vector<2x8x16xf32>, vector<2x8x16xf32>, vector<2x8x8xf32> -> vector<2x8x8xf32>
    "tpu.trace_stop"() : () -> ()
    %170 = vector.shape_cast %169 : vector<2x8x8xf32> to vector<2x1x8x8xf32>
    %171 = vector.shape_cast %170 : vector<2x1x8x8xf32> to vector<2x1x8x8xf32>
    %172 = vector.broadcast %171 : vector<2x1x8x8xf32> to vector<2x4x8x8xf32>
    %173 = vector.shape_cast %172 : vector<2x4x8x8xf32> to vector<8x8x8xf32>
    "tpu.trace_start"() <{level = 10 : i32, message = "bzn,bcn->bzc"}> : () -> ()
    %cst_21 = arith.constant dense<0.000000e+00> : vector<2x8x8xf32>
    %174 = tpu.matmul %166, %167, %cst_21 {dimension_numbers = #tpu.dot_dimension_numbers<[2], [2], [1], [1], [0, 0, 0, 1, 1, 1], [0], [0]>} : vector<2x8x16xf32>, vector<2x8x16xf32>, vector<2x8x8xf32> -> vector<2x8x8xf32>
    "tpu.trace_stop"() : () -> ()
    %175 = vector.shape_cast %174 : vector<2x8x8xf32> to vector<2x1x8x8xf32>
    %176 = vector.shape_cast %175 : vector<2x1x8x8xf32> to vector<2x1x8x8xf32>
    %177 = vector.broadcast %176 : vector<2x1x8x8xf32> to vector<2x4x8x8xf32>
    %178 = vector.shape_cast %177 : vector<2x4x8x8xf32> to vector<8x8x8xf32>
    "tpu.trace_start"() <{level = 10 : i32, message = "bzn,bcn->bzc"}> : () -> ()
    %cst_22 = arith.constant dense<0.000000e+00> : vector<2x8x8xf32>
    %179 = tpu.matmul %168, %165, %cst_22 {dimension_numbers = #tpu.dot_dimension_numbers<[2], [2], [1], [1], [0, 0, 0, 1, 1, 1], [0], [0]>} : vector<2x8x16xf32>, vector<2x8x16xf32>, vector<2x8x8xf32> -> vector<2x8x8xf32>
    "tpu.trace_stop"() : () -> ()
    %180 = vector.shape_cast %179 : vector<2x8x8xf32> to vector<2x1x8x8xf32>
    %181 = vector.shape_cast %180 : vector<2x1x8x8xf32> to vector<2x1x8x8xf32>
    %182 = vector.broadcast %181 : vector<2x1x8x8xf32> to vector<2x4x8x8xf32>
    %183 = vector.shape_cast %182 : vector<2x4x8x8xf32> to vector<8x8x8xf32>
    "tpu.trace_start"() <{level = 10 : i32, message = "bzn,bcn->bzc"}> : () -> ()
    %cst_23 = arith.constant dense<0.000000e+00> : vector<2x8x8xf32>
    %184 = tpu.matmul %168, %167, %cst_23 {dimension_numbers = #tpu.dot_dimension_numbers<[2], [2], [1], [1], [0, 0, 0, 1, 1, 1], [0], [0]>} : vector<2x8x16xf32>, vector<2x8x16xf32>, vector<2x8x8xf32> -> vector<2x8x8xf32>
    "tpu.trace_stop"() : () -> ()
    %185 = vector.shape_cast %184 : vector<2x8x8xf32> to vector<2x1x8x8xf32>
    %186 = vector.shape_cast %185 : vector<2x1x8x8xf32> to vector<2x1x8x8xf32>
    %187 = vector.broadcast %186 : vector<2x1x8x8xf32> to vector<2x4x8x8xf32>
    %188 = vector.shape_cast %187 : vector<2x4x8x8xf32> to vector<8x8x8xf32>
    %189 = math.exp %77 : vector<8x8x1xf32>
    %190 = vector.broadcast %189 : vector<8x8x1xf32> to vector<8x8x16xf32>
    %191 = arith.mulf %190, %89 : vector<8x8x16xf32>
    %192 = arith.mulf %164, %173 : vector<8x8x8xf32>
    "tpu.trace_start"() <{level = 10 : i32, message = "xzc,xcp->xzp"}> : () -> ()
    %cst_24 = arith.constant dense<0.000000e+00> : vector<8x8x16xf32>
    %193 = tpu.matmul %192, %191, %cst_24 {dimension_numbers = #tpu.dot_dimension_numbers<[2], [1], [1], [2], [0, 0, 0, 1, 1, 2], [0], [0]>} : vector<8x8x8xf32>, vector<8x8x16xf32>, vector<8x8x16xf32> -> vector<8x8x16xf32>
    "tpu.trace_stop"() : () -> ()
    %194 = arith.mulf %164, %178 : vector<8x8x8xf32>
    "tpu.trace_start"() <{level = 10 : i32, message = "xzc,xcp->xzp"}> : () -> ()
    %cst_25 = arith.constant dense<0.000000e+00> : vector<8x8x16xf32>
    %195 = tpu.matmul %194, %101, %cst_25 {dimension_numbers = #tpu.dot_dimension_numbers<[2], [1], [1], [2], [0, 0, 0, 1, 1, 2], [0], [0]>} : vector<8x8x8xf32>, vector<8x8x16xf32>, vector<8x8x16xf32> -> vector<8x8x16xf32>
    "tpu.trace_stop"() : () -> ()
    %196 = arith.addf %193, %195 : vector<8x8x16xf32>
    %197 = arith.mulf %164, %183 : vector<8x8x8xf32>
    "tpu.trace_start"() <{level = 10 : i32, message = "xzc,xcp->xzp"}> : () -> ()
    %cst_26 = arith.constant dense<0.000000e+00> : vector<8x8x16xf32>
    %198 = tpu.matmul %197, %191, %cst_26 {dimension_numbers = #tpu.dot_dimension_numbers<[2], [1], [1], [2], [0, 0, 0, 1, 1, 2], [0], [0]>} : vector<8x8x8xf32>, vector<8x8x16xf32>, vector<8x8x16xf32> -> vector<8x8x16xf32>
    "tpu.trace_stop"() : () -> ()
    %199 = arith.mulf %164, %188 : vector<8x8x8xf32>
    "tpu.trace_start"() <{level = 10 : i32, message = "xzc,xcp->xzp"}> : () -> ()
    %cst_27 = arith.constant dense<0.000000e+00> : vector<8x8x16xf32>
    %200 = tpu.matmul %199, %101, %cst_27 {dimension_numbers = #tpu.dot_dimension_numbers<[2], [1], [1], [2], [0, 0, 0, 1, 1, 2], [0], [0]>} : vector<8x8x8xf32>, vector<8x8x16xf32>, vector<8x8x16xf32> -> vector<8x8x16xf32>
    "tpu.trace_stop"() : () -> ()
    %201 = arith.addf %198, %200 : vector<8x8x16xf32>
    %202 = arith.maximumf %67, %130 : vector<8x8x1xf32>
    %203 = arith.subf %67, %202 : vector<8x8x1xf32>
    %204 = math.exp %203 : vector<8x8x1xf32>
    %205 = vector.broadcast %204 : vector<8x8x1xf32> to vector<8x8x16xf32>
    %206 = arith.mulf %205, %196 : vector<8x8x16xf32>
    %207 = arith.subf %130, %202 : vector<8x8x1xf32>
    %208 = math.exp %207 : vector<8x8x1xf32>
    %209 = vector.broadcast %208 : vector<8x8x1xf32> to vector<8x8x16xf32>
    %210 = arith.mulf %209, %201 : vector<8x8x16xf32>
    %211 = vector.extract_strided_slice %124 {offsets = [0, 1, 0], sizes = [8, 6, 16], strides = [1, 1, 1]} : vector<8x8x16xf32> to vector<8x6x16xf32>
    %212 = vector.extract_strided_slice %129 {offsets = [0, 0, 0], sizes = [8, 6, 16], strides = [1, 1, 1]} : vector<8x8x16xf32> to vector<8x6x16xf32>
    %213 = arith.addf %211, %212 : vector<8x6x16xf32>
    %cst_28 = arith.constant 5.000000e-01 : f32
    %214 = vector.broadcast %cst_28 : f32 to vector<8x6x16xf32>
    %215 = arith.mulf %214, %213 : vector<8x6x16xf32>
    %216 = vector.extract_strided_slice %124 {offsets = [0, 0, 0], sizes = [8, 1, 16], strides = [1, 1, 1]} : vector<8x8x16xf32> to vector<8x1x16xf32>
    %217 = vector.extract_strided_slice %129 {offsets = [0, 6, 0], sizes = [8, 1, 16], strides = [1, 1, 1]} : vector<8x8x16xf32> to vector<8x1x16xf32>
    %218 = tpu.concatenate %216, %215, %217 in 1 : vector<8x1x16xf32>, vector<8x6x16xf32>, vector<8x1x16xf32> -> vector<8x8x16xf32>
    %219 = vector.extract_strided_slice %206 {offsets = [0, 1, 0], sizes = [8, 6, 16], strides = [1, 1, 1]} : vector<8x8x16xf32> to vector<8x6x16xf32>
    %220 = vector.extract_strided_slice %210 {offsets = [0, 0, 0], sizes = [8, 6, 16], strides = [1, 1, 1]} : vector<8x8x16xf32> to vector<8x6x16xf32>
    %221 = arith.addf %219, %220 : vector<8x6x16xf32>
    %cst_29 = arith.constant 5.000000e-01 : f32
    %222 = vector.broadcast %cst_29 : f32 to vector<8x6x16xf32>
    %223 = arith.mulf %222, %221 : vector<8x6x16xf32>
    %224 = vector.extract_strided_slice %206 {offsets = [0, 0, 0], sizes = [8, 1, 16], strides = [1, 1, 1]} : vector<8x8x16xf32> to vector<8x1x16xf32>
    %225 = vector.extract_strided_slice %210 {offsets = [0, 6, 0], sizes = [8, 1, 16], strides = [1, 1, 1]} : vector<8x8x16xf32> to vector<8x1x16xf32>
    %226 = tpu.concatenate %224, %223, %225 in 1 : vector<8x1x16xf32>, vector<8x6x16xf32>, vector<8x1x16xf32> -> vector<8x8x16xf32>
    %227 = tpu.concatenate %218, %226 in 2 : vector<8x8x16xf32>, vector<8x8x16xf32> -> vector<8x8x32xf32>
    %228 = vector.shape_cast %227 : vector<8x8x32xf32> to vector<64x32xf32>
    %c0_30 = arith.constant 0 : index
    %c0_31 = arith.constant 0 : index
    %229 = vector.load %arg8[%c0_30, %c0_31] : memref<32x96xf32, #tpu.memory_space<vmem>>, vector<32x96xf32>
    %cst_32 = arith.constant dense<0.000000e+00> : vector<64x96xf32>
    %230 = tpu.matmul %228, %229, %cst_32 {dimension_numbers = #tpu.dot_dimension_numbers<[1], [0], [0], [1], [0, 0, 1, 1], [], []>} : vector<64x32xf32>, vector<32x96xf32>, vector<64x96xf32> -> vector<64x96xf32>
    %c0_33 = arith.constant 0 : index
    %c0_34 = arith.constant 0 : index
    %231 = vector.load %arg9[%c0_33, %c0_34] : memref<1x96xf32, #tpu.memory_space<vmem>>, vector<1x96xf32>
    %232 = vector.broadcast %231 : vector<1x96xf32> to vector<64x96xf32>
    %233 = arith.addf %230, %232 : vector<64x96xf32>
    %234 = vector.extract_strided_slice %233 {offsets = [0, 0], sizes = [64, 8], strides = [1, 1]} : vector<64x96xf32> to vector<64x8xf32>
    %235 = vector.shape_cast %234 : vector<64x8xf32> to vector<8x1x8x8xf32>
    %236 = vector.extract_strided_slice %233 {offsets = [0, 8], sizes = [64, 8], strides = [1, 1]} : vector<64x96xf32> to vector<64x8xf32>
    %237 = vector.shape_cast %236 : vector<64x8xf32> to vector<8x1x8x8xf32>
    %238 = vector.extract_strided_slice %233 {offsets = [0, 16], sizes = [64, 8], strides = [1, 1]} : vector<64x96xf32> to vector<64x8xf32>
    %239 = vector.shape_cast %238 : vector<64x8xf32> to vector<8x1x8x8xf32>
    %240 = vector.extract_strided_slice %233 {offsets = [0, 24], sizes = [64, 8], strides = [1, 1]} : vector<64x96xf32> to vector<64x8xf32>
    %241 = vector.shape_cast %240 : vector<64x8xf32> to vector<8x1x8x8xf32>
    %242 = tpu.concatenate %235, %237, %239, %241 in 1 : vector<8x1x8x8xf32>, vector<8x1x8x8xf32>, vector<8x1x8x8xf32>, vector<8x1x8x8xf32> -> vector<8x4x8x8xf32>
    %243 = vector.shape_cast %242 : vector<8x4x8x8xf32> to vector<32x8x8xf32>
    %244 = vector.extract_strided_slice %233 {offsets = [0, 32], sizes = [64, 8], strides = [1, 1]} : vector<64x96xf32> to vector<64x8xf32>
    %245 = vector.shape_cast %244 : vector<64x8xf32> to vector<8x1x8x8xf32>
    %246 = vector.extract_strided_slice %233 {offsets = [0, 40], sizes = [64, 8], strides = [1, 1]} : vector<64x96xf32> to vector<64x8xf32>
    %247 = vector.shape_cast %246 : vector<64x8xf32> to vector<8x1x8x8xf32>
    %248 = vector.extract_strided_slice %233 {offsets = [0, 48], sizes = [64, 8], strides = [1, 1]} : vector<64x96xf32> to vector<64x8xf32>
    %249 = vector.shape_cast %248 : vector<64x8xf32> to vector<8x1x8x8xf32>
    %250 = vector.extract_strided_slice %233 {offsets = [0, 56], sizes = [64, 8], strides = [1, 1]} : vector<64x96xf32> to vector<64x8xf32>
    %251 = vector.shape_cast %250 : vector<64x8xf32> to vector<8x1x8x8xf32>
    %252 = tpu.concatenate %245, %247, %249, %251 in 1 : vector<8x1x8x8xf32>, vector<8x1x8x8xf32>, vector<8x1x8x8xf32>, vector<8x1x8x8xf32> -> vector<8x4x8x8xf32>
    %253 = vector.shape_cast %252 : vector<8x4x8x8xf32> to vector<32x8x8xf32>
    %254 = vector.extract_strided_slice %233 {offsets = [0, 64], sizes = [64, 8], strides = [1, 1]} : vector<64x96xf32> to vector<64x8xf32>
    %255 = vector.shape_cast %254 : vector<64x8xf32> to vector<8x1x8x8xf32>
    %256 = vector.extract_strided_slice %233 {offsets = [0, 72], sizes = [64, 8], strides = [1, 1]} : vector<64x96xf32> to vector<64x8xf32>
    %257 = vector.shape_cast %256 : vector<64x8xf32> to vector<8x1x8x8xf32>
    %258 = vector.extract_strided_slice %233 {offsets = [0, 80], sizes = [64, 8], strides = [1, 1]} : vector<64x96xf32> to vector<64x8xf32>
    %259 = vector.shape_cast %258 : vector<64x8xf32> to vector<8x1x8x8xf32>
    %260 = vector.extract_strided_slice %233 {offsets = [0, 88], sizes = [64, 8], strides = [1, 1]} : vector<64x96xf32> to vector<64x8xf32>
    %261 = vector.shape_cast %260 : vector<64x8xf32> to vector<8x1x8x8xf32>
    %262 = tpu.concatenate %255, %257, %259, %261 in 1 : vector<8x1x8x8xf32>, vector<8x1x8x8xf32>, vector<8x1x8x8xf32>, vector<8x1x8x8xf32> -> vector<8x4x8x8xf32>
    %263 = vector.shape_cast %262 : vector<8x4x8x8xf32> to vector<32x8x8xf32>
    "tpu.trace_start"() <{level = 10 : i32, message = "xqd,xkd->xqk"}> : () -> ()
    %cst_35 = arith.constant dense<0.000000e+00> : vector<32x8x8xf32>
    %264 = tpu.matmul %243, %253, %cst_35 {dimension_numbers = #tpu.dot_dimension_numbers<[2], [2], [1], [1], [0, 0, 0, 1, 1, 1], [0], [0]>} : vector<32x8x8xf32>, vector<32x8x8xf32>, vector<32x8x8xf32> -> vector<32x8x8xf32>
    "tpu.trace_stop"() : () -> ()
    %cst_36 = arith.constant 0.353553385 : f32
    %265 = vector.broadcast %cst_36 : f32 to vector<32x8x8xf32>
    %266 = arith.mulf %264, %265 : vector<32x8x8xf32>
    %cst_37 = arith.constant dense<0xFF800000> : vector<32x8xf32>
    %267 = vector.multi_reduction <maximumf>, %266, %cst_37 [2] : vector<32x8x8xf32> to vector<32x8xf32>
    %268 = vector.shape_cast %267 : vector<32x8xf32> to vector<32x8x1xf32>
    %269 = vector.broadcast %268 : vector<32x8x1xf32> to vector<32x8x8xf32>
    %270 = arith.subf %266, %269 : vector<32x8x8xf32>
    %271 = math.exp %270 : vector<32x8x8xf32>
    %cst_38 = arith.constant dense<0.000000e+00> : vector<32x8xf32>
    %272 = vector.multi_reduction <add>, %271, %cst_38 [2] : vector<32x8x8xf32> to vector<32x8xf32>
    %273 = vector.shape_cast %272 : vector<32x8xf32> to vector<32x8x1xf32>
    %274 = tpu.reciprocal %273 {approx = true} : vector<32x8x1xf32> -> vector<32x8x1xf32>
    %275 = vector.broadcast %274 : vector<32x8x1xf32> to vector<32x8x8xf32>
    %276 = arith.mulf %271, %275 : vector<32x8x8xf32>
    "tpu.trace_start"() <{level = 10 : i32, message = "xqk,xkd->xqd"}> : () -> ()
    %cst_39 = arith.constant dense<0.000000e+00> : vector<32x8x8xf32>
    %277 = tpu.matmul %276, %263, %cst_39 {dimension_numbers = #tpu.dot_dimension_numbers<[2], [1], [1], [2], [0, 0, 0, 1, 1, 2], [0], [0]>} : vector<32x8x8xf32>, vector<32x8x8xf32>, vector<32x8x8xf32> -> vector<32x8x8xf32>
    "tpu.trace_stop"() : () -> ()
    %278 = vector.shape_cast %277 : vector<32x8x8xf32> to vector<8x4x8x8xf32>
    %279 = vector.extract_strided_slice %278 {offsets = [0, 0, 0, 0], sizes = [8, 1, 8, 8], strides = [1, 1, 1, 1]} : vector<8x4x8x8xf32> to vector<8x1x8x8xf32>
    %280 = vector.shape_cast %279 : vector<8x1x8x8xf32> to vector<8x8x8xf32>
    %281 = vector.shape_cast %280 : vector<8x8x8xf32> to vector<64x8xf32>
    %282 = vector.extract_strided_slice %278 {offsets = [0, 1, 0, 0], sizes = [8, 1, 8, 8], strides = [1, 1, 1, 1]} : vector<8x4x8x8xf32> to vector<8x1x8x8xf32>
    %283 = vector.shape_cast %282 : vector<8x1x8x8xf32> to vector<8x8x8xf32>
    %284 = vector.shape_cast %283 : vector<8x8x8xf32> to vector<64x8xf32>
    %285 = vector.extract_strided_slice %278 {offsets = [0, 2, 0, 0], sizes = [8, 1, 8, 8], strides = [1, 1, 1, 1]} : vector<8x4x8x8xf32> to vector<8x1x8x8xf32>
    %286 = vector.shape_cast %285 : vector<8x1x8x8xf32> to vector<8x8x8xf32>
    %287 = vector.shape_cast %286 : vector<8x8x8xf32> to vector<64x8xf32>
    %288 = vector.extract_strided_slice %278 {offsets = [0, 3, 0, 0], sizes = [8, 1, 8, 8], strides = [1, 1, 1, 1]} : vector<8x4x8x8xf32> to vector<8x1x8x8xf32>
    %289 = vector.shape_cast %288 : vector<8x1x8x8xf32> to vector<8x8x8xf32>
    %290 = vector.shape_cast %289 : vector<8x8x8xf32> to vector<64x8xf32>
    %291 = tpu.concatenate %281, %284, %287, %290 in 1 : vector<64x8xf32>, vector<64x8xf32>, vector<64x8xf32>, vector<64x8xf32> -> vector<64x32xf32>
    %c0_40 = arith.constant 0 : index
    %c0_41 = arith.constant 0 : index
    %292 = vector.load %arg10[%c0_40, %c0_41] : memref<32x16xf32, #tpu.memory_space<vmem>>, vector<32x16xf32>
    %cst_42 = arith.constant dense<0.000000e+00> : vector<64x16xf32>
    %293 = tpu.matmul %291, %292, %cst_42 {dimension_numbers = #tpu.dot_dimension_numbers<[1], [0], [0], [1], [0, 0, 1, 1], [], []>} : vector<64x32xf32>, vector<32x16xf32>, vector<64x16xf32> -> vector<64x16xf32>
    %c0_43 = arith.constant 0 : index
    %c0_44 = arith.constant 0 : index
    %294 = vector.load %arg11[%c0_43, %c0_44] : memref<1x16xf32, #tpu.memory_space<vmem>>, vector<1x16xf32>
    %295 = vector.broadcast %294 : vector<1x16xf32> to vector<64x16xf32>
    %296 = arith.addf %293, %295 : vector<64x16xf32>
    %297 = vector.shape_cast %296 : vector<64x16xf32> to vector<2x4x8x16xf32>
    %298 = vector.extract_strided_slice %297 {offsets = [0, 0, 0, 0], sizes = [2, 1, 8, 16], strides = [1, 1, 1, 1]} : vector<2x4x8x16xf32> to vector<2x1x8x16xf32>
    %299 = vector.shape_cast %298 : vector<2x1x8x16xf32> to vector<2x8x16xf32>
    %300 = vector.shape_cast %299 : vector<2x8x16xf32> to vector<16x16xf32>
    %301 = vector.extract_strided_slice %297 {offsets = [0, 1, 0, 0], sizes = [2, 1, 8, 16], strides = [1, 1, 1, 1]} : vector<2x4x8x16xf32> to vector<2x1x8x16xf32>
    %302 = vector.shape_cast %301 : vector<2x1x8x16xf32> to vector<2x8x16xf32>
    %303 = vector.shape_cast %302 : vector<2x8x16xf32> to vector<16x16xf32>
    %304 = vector.extract_strided_slice %297 {offsets = [0, 2, 0, 0], sizes = [2, 1, 8, 16], strides = [1, 1, 1, 1]} : vector<2x4x8x16xf32> to vector<2x1x8x16xf32>
    %305 = vector.shape_cast %304 : vector<2x1x8x16xf32> to vector<2x8x16xf32>
    %306 = vector.shape_cast %305 : vector<2x8x16xf32> to vector<16x16xf32>
    %307 = vector.extract_strided_slice %297 {offsets = [0, 3, 0, 0], sizes = [2, 1, 8, 16], strides = [1, 1, 1, 1]} : vector<2x4x8x16xf32> to vector<2x1x8x16xf32>
    %308 = vector.shape_cast %307 : vector<2x1x8x16xf32> to vector<2x8x16xf32>
    %309 = vector.shape_cast %308 : vector<2x8x16xf32> to vector<16x16xf32>
    %310 = tpu.concatenate %300, %303, %306, %309 in 1 : vector<16x16xf32>, vector<16x16xf32>, vector<16x16xf32>, vector<16x16xf32> -> vector<16x64xf32>
    %c0_45 = arith.constant 0 : index
    %c0_46 = arith.constant 0 : index
    %311 = vector.load %arg5[%c0_45, %c0_46] : memref<1x64xf32, #tpu.memory_space<vmem>>, vector<1x64xf32>
    %312 = vector.broadcast %311 : vector<1x64xf32> to vector<16x64xf32>
    %313 = arith.mulf %4, %312 : vector<16x64xf32>
    %314 = arith.addf %310, %313 : vector<16x64xf32>
    %cst_47 = arith.constant 0.000000e+00 : f32
    %315 = vector.broadcast %cst_47 : f32 to vector<16x64xf32>
    %316 = arith.subf %315, %3 : vector<16x64xf32>
    %317 = math.exp %316 : vector<16x64xf32>
    %cst_48 = arith.constant 1.000000e+00 : f32
    %318 = vector.broadcast %cst_48 : f32 to vector<16x64xf32>
    %319 = arith.addf %318, %317 : vector<16x64xf32>
    %cst_49 = arith.constant 1.000000e+00 : f32
    %320 = vector.broadcast %cst_49 : f32 to vector<16x64xf32>
    %321 = arith.divf %320, %319 : vector<16x64xf32>
    %322 = arith.mulf %3, %321 : vector<16x64xf32>
    %323 = arith.mulf %314, %322 : vector<16x64xf32>
    %324 = arith.mulf %323, %323 : vector<16x64xf32>
    %cst_50 = arith.constant dense<0.000000e+00> : vector<16xf32>
    %325 = vector.multi_reduction <add>, %324, %cst_50 [1] : vector<16x64xf32> to vector<16xf32>
    %326 = vector.shape_cast %325 : vector<16xf32> to vector<16x1xf32>
    %cst_51 = arith.constant 6.400000e+01 : f32
    %327 = vector.broadcast %cst_51 : f32 to vector<16x1xf32>
    %328 = arith.divf %326, %327 : vector<16x1xf32>
    %cst_52 = arith.constant 9.99999974E-6 : f32
    %329 = vector.broadcast %cst_52 : f32 to vector<16x1xf32>
    %330 = arith.addf %328, %329 : vector<16x1xf32>
    %331 = math.rsqrt %330 : vector<16x1xf32>
    %332 = vector.broadcast %331 : vector<16x1xf32> to vector<16x64xf32>
    %333 = arith.mulf %323, %332 : vector<16x64xf32>
    %c0_53 = arith.constant 0 : index
    %c0_54 = arith.constant 0 : index
    %334 = vector.load %arg6[%c0_53, %c0_54] : memref<1x64xf32, #tpu.memory_space<vmem>>, vector<1x64xf32>
    %335 = vector.broadcast %334 : vector<1x64xf32> to vector<16x64xf32>
    %336 = arith.mulf %333, %335 : vector<16x64xf32>
    %c0_55 = arith.constant 0 : index
    %c0_56 = arith.constant 0 : index
    %337 = vector.load %arg7[%c0_55, %c0_56] : memref<64x32xf32, #tpu.memory_space<vmem>>, vector<64x32xf32>
    %cst_57 = arith.constant dense<0.000000e+00> : vector<16x32xf32>
    %338 = tpu.matmul %336, %337, %cst_57 {dimension_numbers = #tpu.dot_dimension_numbers<[1], [0], [0], [1], [0, 0, 1, 1], [], []>} : vector<16x64xf32>, vector<64x32xf32>, vector<16x32xf32> -> vector<16x32xf32>
    %c0_58 = arith.constant 0 : index
    %c0_59 = arith.constant 0 : index
    %339 = vector.load %arg12[%c0_58, %c0_59] : memref<16x32xf32, #tpu.memory_space<vmem>>, vector<16x32xf32>
    tpu.vector_store %arg12[%c0_58, %c0_59], %338 {strides = array<i32>} : memref<16x32xf32, #tpu.memory_space<vmem>>, vector<16x32xf32>,
    return
  }
  func.func @transform_0(%arg0: i32) -> (i32, i32) {
    %c0_i32 = arith.constant 0 : i32
    %c0_i32_0 = arith.constant 0 : i32
    %c0_i32_1 = arith.constant 0 : i32
    return %c0_i32, %c0_i32_0 : i32, i32
  }
  func.func @transform_1(%arg0: i32) -> (i32, i32) {
    %c0_i32 = arith.constant 0 : i32
    %c0_i32_0 = arith.constant 0 : i32
    %c0_i32_1 = arith.constant 0 : i32
    return %c0_i32, %c0_i32_0 : i32, i32
  }
  func.func @transform_2(%arg0: i32) -> (i32, i32) {
    %c0_i32 = arith.constant 0 : i32
    %c0_i32_0 = arith.constant 0 : i32
    %c0_i32_1 = arith.constant 0 : i32
    return %c0_i32, %c0_i32_0 : i32, i32
  }
  func.func @transform_3(%arg0: i32) -> (i32, i32) {
    %c0_i32 = arith.constant 0 : i32
    %c0_i32_0 = arith.constant 0 : i32
    %c0_i32_1 = arith.constant 0 : i32
    return %c0_i32, %c0_i32_0 : i32, i32
  }
  func.func @transform_4(%arg0: i32) -> (i32, i32) {
    %c0_i32 = arith.constant 0 : i32
    %c0_i32_0 = arith.constant 0 : i32
    %c0_i32_1 = arith.constant 0 : i32
    return %c0_i32, %c0_i32_0 : i32, i32
  }
  func.func @transform_5(%arg0: i32) -> (i32, i32) {
    %c0_i32 = arith.constant 0 : i32
    %c0_i32_0 = arith.constant 0 : i32
    %c0_i32_1 = arith.constant 0 : i32
    return %c0_i32, %c0_i32_0 : i32, i32
  }
  func.func @transform_6(%arg0: i32) -> (i32, i32) {
    %c0_i32 = arith.constant 0 : i32
    %c0_i32_0 = arith.constant 0 : i32
    %c0_i32_1 = arith.constant 0 : i32
    return %c0_i32, %c0_i32_0 : i32, i32
  }
  func.func @transform_7(%arg0: i32) -> (i32, i32) {
    %c0_i32 = arith.constant 0 : i32
    %c0_i32_0 = arith.constant 0 : i32
    %c0_i32_1 = arith.constant 0 : i32
    return %c0_i32, %c0_i32_0 : i32, i32
  }
  func.func @transform_8(%arg0: i32) -> (i32, i32) {
    %c0_i32 = arith.constant 0 : i32
    %c0_i32_0 = arith.constant 0 : i32
    %c0_i32_1 = arith.constant 0 : i32
    return %c0_i32, %c0_i32_0 : i32, i32
  }
  func.func @transform_9(%arg0: i32) -> (i32, i32) {
    %c0_i32 = arith.constant 0 : i32
    %c0_i32_0 = arith.constant 0 : i32
    %c0_i32_1 = arith.constant 0 : i32
    return %c0_i32, %c0_i32_0 : i32, i32
  }
  func.func @transform_10(%arg0: i32) -> (i32, i32) {
    %c0_i32 = arith.constant 0 : i32
    %c0_i32_0 = arith.constant 0 : i32
    %c0_i32_1 = arith.constant 0 : i32
    return %c0_i32, %c0_i32_0 : i32, i32
  }
  func.func @transform_11(%arg0: i32) -> (i32, i32) {
    %c0_i32 = arith.constant 0 : i32
    %c0_i32_0 = arith.constant 0 : i32
    %c0_i32_1 = arith.constant 0 : i32
    return %c0_i32, %c0_i32_0 : i32, i32
  }
}

</mosaic_0001>

<bundles_post_ra>
// kernel: hydra_forward.1
= control target key start
LH: loop header
LB: loop body
LE: loop exit
PB: predicated region body
PF: predicated region fallthrough
CT: control target
= control target key end

     0   :  { %v13540_v3 = vmov 0.0   ;;  %s11339_s16 = smov 32   ;;  %vm48_vm0 = vcmask 261120   ;;  %vm11340_vm1 = vmmov 0   ;;  %vm401_vm2 = vcmask 130048   ;;  %s11341_s19 = smov 112   ;;  %s13528_s1 = inlined_call_operand.vmem [shape: f32[32,164], index: 1, kind: input, shape index: {}]   ;;  %s13529_s2 = inlined_call_operand.vmem [shape: f32[1,4], index: 2, kind: input, shape index: {}]   ;;  %s13530_s0 = inlined_call_operand.vmem [shape: f32[16,32], index: 0, kind: input, shape index: {}]   ;;  %s13531_s3 = inlined_call_operand.vmem [shape: f32[1,4], index: 3, kind: input, shape index: {}]   ;;  %s13532_s7 = inlined_call_operand.vmem [shape: f32[32,96], index: 7, kind: input, shape index: {}]   ;;  %s13533_s8 = inlined_call_operand.vmem [shape: f32[1,96], index: 8, kind: input, shape index: {}]   ;;  %s13534_s9 = inlined_call_operand.vmem [shape: f32[32,16], index: 9, kind: input, shape index: {}]   ;;  %s13535_s4 = inlined_call_operand.vmem [shape: f32[1,64], index: 4, kind: input, shape index: {}]   ;;  %s13536_s10 = inlined_call_operand.vmem [shape: f32[1,16], index: 10, kind: input, shape index: {}]   ;;  %s13537_s6 = inlined_call_operand.vmem [shape: f32[64,32], index: 6, kind: input, shape index: {}]   ;;  %s13538_s5 = inlined_call_operand.vmem [shape: f32[1,64], index: 5, kind: input, shape index: {}]   ;;  %s13539_s11 = inlined_call_operand.vmem [shape: f32[16,32], index: 11, kind: output, shape index: {}]  }
   0x1   :  { %v41_v0 = vld [vmem:[%s13528_s1 + $0x8] sm:$0xff]  ;;  %v43_v1 = vld [vmem:[%s13528_s1 + $0x18] sm:$0xff]  ;;  %v40_v2 = vld [vmem:[%s13528_s1] sm:$0xff]  ;;  %119 = vmatprep.mubr.f32.mxu0 %v13540_v3  ;;  %10447 = vmatprep.subr.mxu1 %v13540_v3  ;;  %vm172_vm3 = vcmask 1046528   ;;  %s11343_s21 = smov 127   ;;  %s11344_s22 = smov 125  }
   0x2   :  { %v11026_v4 = vpack.c.bf16 %v43_v1, %v41_v0  ;;  %v42_v5 = vld [vmem:[%s13528_s1 + $0x10] sm:$0xff]  ;;  %v45_v6 = vld [vmem:[%s13528_s1 + $0x28] sm:$0xff]  ;;  %v47_v7 = vld [vmem:[%s13528_s1 + $0x38] sm:$0xff]  ;;  %10449 = vmatprep.mubr.msk.f32.mxu1 %vm11340_vm1, %v13540_v3  ;;  %v13542_v46 = vmov 32   ;;  %s11346_s23 = smov 80   ;;  %s11347_s24 = smov 96  }
   0x3   :  { %v11028_v8 = vpack.c.bf16 %v42_v5, %v40_v2  ;;  %v11030_v9 = vpack.c.bf16 %v47_v7, %v45_v6  ;;  %v44_v10 = vld [vmem:[%s13528_s1 + $0x20] sm:$0xff]  ;;  %v46_v11 = vld [vmem:[%s13528_s1 + $0x30] sm:$0xff]  ;;  %v39_v15 = vld [vmem:[%s13530_s0 + $0x8] sm:$0xff]  ;;  %11117 = vset.pattern.permute.xlu1 %v13542_v46  ;;  %11116 = vset.pattern.permute.xlu0 %v13542_v46  ;;  %vm527_vm6 = vcmask 1040384   ;;  %s11349_s25 = smov 64   ;;  %s11350_s26 = smov 16  }
   0x4   :  { %11027 = vmatprep.subr.bf16.mxu0 %v11026_v4  ;;  %v10029_v12 = vld [vmem:[%s13529_s2] ss:$0 sm:$0xff]  ;;  %v11032_v13 = vpack.c.bf16 %v46_v11, %v44_v10  ;;  %s11351_s18 = smov 120   ;;  %s11352_s1 = smov 104  }
   0x5   :  { %11029 = vmatpush1.bf16.msra.mxu0 %v11028_v8  ;;  %138 = vrot.lane.b32.xlu0 %v10029_v12, %s11339_s16  ;;  %v38_v14 = vld [vmem:[%s13530_s0] sm:$0xff]  ;;  %s11354_s2 = smov 24   ;;  %s11355_s29 = smov 48  }
   0x6   :  { %11031 = vmatprep.subr.bf16.mxu0 %v11030_v9  ;;  %v10030_v29 = vld [vmem:[%s13531_s3] ss:$0 sm:$0xff]  ;;  %s11342_s3 = smov 126  }
   0x9   :  { %11033 = vmatpush1.bf16.msra.mxu0 %v11032_v13 }
   0xa   :  { %10462 = vmatprep.subr.mxu0 %v13540_v3 }
   0xc   :  { %10027 = vmatmul.mubr.msk.f32.vlgmr.msra.gmra.mrb[0].mxu0 %vm48_vm0, %v38_v14 }
   0xd   :  { %125 = vmatprep.mubr.f32.mxu0 %v13540_v3 }
  0x10   :  { %10028 = vmatmul.mubr.msk.f32.gmra.mrb[2].mxu0 %vm48_vm0, %v39_v15 }
  0x11   :  { %10464 = vmatprep.mubr.msk.f32.mxu0 %vm11340_vm1, %v13540_v3 }
  0x77   :  { %v139_v16 = vpop.permute.xlu0 %138 }
  0xdf   :  { %v11460_v17 = vpop.f32.mrb[0].mxu0 }
  0xe0   :  { %13566 = vst [vmem:[#allocation2_spill] sm:$0xff] %v11460_v17  ;;  %v11462_v18 = vpop.f32.mrb[1].mxu0  ;;  %v173_v23 = vrot.slane %v11460_v17, 1 }
  0xe1   :  { %715 = vrot.lane.b32.xlu0 %v11462_v18, %s11341_s19  ;;  %10448 = vmatpush3.xpose.msk.msra.mxu1 %vm401_vm2, %v11462_v18  ;;  %v141_v19 = vadd.f32 %v139_v16, %v11462_v18  ;;  %v199_v25 = vrot.slane %v11462_v18, 1 }
  0xe2   :  { %10452 = vmatprep.subr.mxu1 %v13540_v3 }
  0xe3   :  { %v11470_v20 = vpop.f32.mrb[2].mxu0  ;;  %v145_v21 = vmin.f32 %v141_v19, 20.0  ;;  %vm143_vm4 = vcmp.gt.f32.partialorder %v141_v19, 20.0 }
  0xe4   :  { %13567 = vst [vmem:[#allocation3_spill] sm:$0xff] %v11470_v20  ;;  %v11472_v22 = vpop.f32.mrb[3].mxu0  ;;  %v174_v24 = vrot.slane %v11470_v20, 1 }
  0xe5   :  { %791 = vrot.lane.b32.xlu1 %v11472_v22, %s11341_s19  ;;  %v200_v26 = vrot.slane %v11472_v22, 1  ;;  %v147_v27 = vmul.f32 1.442695, %v145_v21  ;;  %v142_v28 = vadd.f32 %v139_v16, %v11472_v22 }
  0xe6   :  { %v11485_v30 = vsel %vm172_vm3, %v173_v23, %v174_v24  ;;  %v11488_v31 = vsel %vm172_vm3, %v174_v24, %v173_v23 }
  0xe7   :  { %v11491_v32 = vsel %vm172_vm3, %v200_v26, %v199_v25  ;;  %v11494_v33 = vsel %vm172_vm3, %v199_v25, %v200_v26  ;;  %11126 = vpow2.f32 %v147_v27  ;;  %v146_v34 = vmin.f32 %v142_v28, 20.0 }
  0xe8   :  { %10463 = vmatpush3.xpose.msk.msra.mxu0 %vm401_vm2, %v11491_v32  ;;  %1011 = vrot.lane.b32.xlu0 %v11494_v33, %s11341_s19  ;;  %vm144_vm5 = vcmp.gt.f32.partialorder %v142_v28, 20.0 }
  0xe9   :  { %165 = vrot.lane.b32.xlu1 %v10030_v29, %s11339_s16  ;;  %10472 = vmatprep.subr.mxu0 %v13540_v3  ;;  %v149_v35 = vmul.f32 1.442695, %v146_v34 }
  0xeb   :  { %11128 = vpow2.f32 %v149_v35 }
  0xed   :  { %1085 = vrot.lane.b32.xlu1 %v11491_v32, %s11341_s19 }
  0xf1   :  { %v11127_v36 = vpop.eup %11126 }
  0xf2   :  { %v151_v37 = vadd.f32 1.0, %v11127_v36 }
  0xf4   :  { %11130 = vlog2.f32 %v151_v37 }
  0xf5   :  { %v11129_v38 = vpop.eup %11128 }
  0xf6   :  { %v152_v39 = vadd.f32 1.0, %v11129_v38 }
  0xf8   :  { %11132 = vlog2.f32 %v152_v39 }
  0xfe   :  { %v11131_v40 = vpop.eup %11130 }
  0xff   :  { %v154_v41 = vmul.f32 0.6931472, %v11131_v40 }
 0x101   :  { %v11504_v42 = vsel %vm143_vm4, %v141_v19, %v154_v41 }
 0x102   :  { %210 = vrot.lane.b32.xlu1 %v11504_v42, %s11342_s3  ;;  %206 = vrot.lane.b32.xlu0 %v11504_v42, %s11343_s21  ;;  %v11133_v43 = vpop.eup %11132  ;;  %v182_v48 = vrot.slane %v11504_v42, 1 }
 0x103   :  { %v156_v44 = vmul.f32 0.6931472, %v11133_v43 }
 0x105   :  { %v11512_v45 = vsel %vm144_vm5, %v142_v28, %v156_v44 }
 0x106   :  { %214 = vrot.lane.b32.xlu0 %v11504_v42, %s11344_s22  ;;  %208 = vrot.lane.b32.xlu1 %v11512_v45, %s11343_s21  ;;  %v183_v47 = vrot.slane %v11512_v45, 1 }
 0x108   :  { %v11523_v49 = vsel %vm172_vm3, %v182_v48, %v183_v47  ;;  %v11528_v50 = vsel %vm172_vm3, %v183_v47, %v182_v48 }
 0x10a   :  { %216 = vrot.lane.b32.xlu1 %v11512_v45, %s11344_s22 }
 0x10e   :  { %223 = vrot.lane.b32.xlu1 %v11523_v49, %s11342_s3 }
 0x112   :  { %221 = vrot.lane.b32.xlu1 %v11528_v50, %s11343_s21 }
 0x116   :  { %229 = vrot.lane.b32.xlu1 %v11528_v50, %s11344_s22 }
 0x153   :  { %v716_v51 = vpop.permute.xlu0 %715 }
 0x154   :  { %10450 = vmatmul.mubr.msk.f32.vlgmr.msra.gmra.mrb[0].mxu1 %vm401_vm2, %v716_v51 }
 0x155   :  { %10453 = vmatpush3.xpose.msk.msra.mxu1 %vm401_vm2, %v11472_v22  ;;  %10454 = vmatprep.mubr.msk.f32.mxu1 %vm11340_vm1, %v13540_v3 }
 0x156   :  { %10457 = vmatprep.subr.mxu1 %v13540_v3 }
 0x157   :  { %v792_v52 = vpop.permute.xlu1 %791 }
 0x158   :  { %10455 = vmatmul.mubr.msk.f32.vlgmr.msra.gmra.mrb[2].mxu1 %vm401_vm2, %v792_v52  ;;  %10465 = vmatmul.mubr.msk.f32.vlgmr.msra.gmra.mrb[4].mxu0 %vm401_vm2, %v792_v52 }
 0x159   :  { %10458 = vmatpush3.xpose.msk.msra.mxu1 %vm401_vm2, %v11494_v33  ;;  %10473 = vmatpush3.xpose.msk.msra.mxu0 %vm401_vm2, %v11472_v22 }
 0x15a   :  { %10459 = vmatprep.mubr.msk.f32.mxu1 %vm11340_vm1, %v13540_v3  ;;  %10467 = vmatprep.subr.mxu1 %v13540_v3  ;;  %v1012_v58 = vpop.permute.xlu0 %1011 }
 0x15b   :  { %v166_v53 = vpop.permute.xlu1 %165  ;;  %10474 = vmatprep.mubr.msk.f32.mxu0 %vm11340_vm1, %v13540_v3  ;;  %10482 = vmatprep.subr.mxu0 %v13540_v3 }
 0x15c   :  { %v11553_v54 = vmul.f32 %v166_v53, %v11504_v42  ;;  %v11556_v55 = vmul.f32 %v166_v53, %v11512_v45  ;;  %10460 = vmatmul.mubr.msk.f32.vlgmr.msra.gmra.mrb[4].mxu1 %vm401_vm2, %v716_v51 }
 0x15d   :  { %10468 = vmatpush3.xpose.msk.msra.mxu1 %vm401_vm2, %v11462_v18  ;;  %10469 = vmatprep.mubr.msk.f32.mxu1 %vm11340_vm1, %v13540_v3 }
 0x15e   :  { %13568 = vst [vmem:[#allocation4_spill] sm:$0xff] %v11556_v55  ;;  %231 = vrot.lane.b32.xlu0 %v11553_v54, %s11343_s21  ;;  %10477 = vmatprep.subr.mxu1 %v13540_v3  ;;  %v190_v56 = vrot.slane %v11553_v54, 1  ;;  %v191_v57 = vrot.slane %v11556_v55, 1 }
 0x15f   :  { %v1086_v59 = vpop.permute.xlu1 %1085 }
 0x160   :  { %10470 = vmatmul.mubr.msk.f32.vlgmr.msra.gmra.mrb[6].mxu1 %vm401_vm2, %v1012_v58  ;;  %10475 = vmatmul.mubr.msk.f32.vlgmr.msra.gmra.mrb[6].mxu0 %vm401_vm2, %v1086_v59  ;;  %v192_v60 = vsel %vm172_vm3, %v190_v56, %v191_v57  ;;  %v11572_v61 = vsel %vm172_vm3, %v191_v57, %v190_v56 }
 0x161   :  { %10478 = vmatpush3.xpose.msk.msra.mxu1 %vm401_vm2, %v11494_v33  ;;  %10483 = vmatpush3.xpose.msk.msra.mxu0 %vm401_vm2, %v11491_v32  ;;  %v11579_v62 = vadd.f32 %v192_v60, %v11553_v54  ;;  %v11583_v63 = vadd.f32 %v11572_v61, %v11556_v55  ;;  %v1299_v7 = vmul.f32 1.442695, %v192_v60  ;;  %v1307_v40 = vmul.f32 1.442695, %v11572_v61 }
 0x162   :  { %250 = vrot.lane.b32.xlu1 %v192_v60, %s11343_s21  ;;  %237 = vrot.lane.b32.xlu0 %v11553_v54, %s11342_s3 }
 0x163   :  { %10479 = vmatprep.mubr.msk.f32.mxu1 %vm11340_vm1, %v13540_v3  ;;  %10484 = vmatprep.mubr.msk.f32.mxu0 %vm11340_vm1, %v13540_v3  ;;  %v11594_v0 = vmax.f32 %v11553_v54, %v11579_v62  ;;  %v11600_v1 = vmax.f32 %v11556_v55, %v11583_v63  ;;  %11134 = vpow2.f32 %v1299_v7  ;;  %v495_v11 = vrot.slane %v11579_v62, 7 }
 0x164   :  { %10480 = vmatmul.mubr.msk.f32.vlgmr.msra.gmra.mrb[8].mxu1 %vm401_vm2, %v1012_v58  ;;  %10485 = vmatmul.mubr.msk.f32.vlgmr.msra.gmra.mrb[8].mxu0 %vm401_vm2, %v1086_v59  ;;  %v499_v12 = vrot.slane %v11583_v63, 7  ;;  %11136 = vpow2.f32 %v1307_v40  ;;  %v13544_v7 = vmov 0  }
 0x165   :  { %13569 = vst [vmem:[#allocation5_spill] sm:$0xff] %v11600_v1  ;;  %10487 = vmatprep.subr.mxu1 %v13540_v3  ;;  %10489 = vmatprep.mubr.msk.f32.mxu1 %vm11340_vm1, %v13540_v3 }
 0x166   :  { %256 = vrot.lane.b32.xlu1 %v192_v60, %s11342_s3  ;;  %243 = vrot.lane.b32.xlu0 %v11553_v54, %s11344_s22 }
 0x167   :  { %10492 = vmatprep.subr.mxu0 %v13540_v3  ;;  %10494 = vmatprep.mubr.msk.f32.mxu0 %vm11340_vm1, %v13540_v3 }
 0x16a   :  { %262 = vrot.lane.b32.xlu1 %v192_v60, %s11344_s22  ;;  %212 = vrot.lane.b32.xlu0 %v11512_v45, %s11342_s3 }
 0x16d   :  { %v11135_v8 = vpop.eup %11134 }
 0x16e   :  { %252 = vrot.lane.b32.xlu1 %v11572_v61, %s11343_s21  ;;  %233 = vrot.lane.b32.xlu0 %v11556_v55, %s11343_s21  ;;  %v11137_v53 = vpop.eup %11136 }
 0x172   :  { %258 = vrot.lane.b32.xlu1 %v11572_v61, %s11342_s3  ;;  %239 = vrot.lane.b32.xlu0 %v11556_v55, %s11342_s3 }
 0x174   :  { %v207_v9 = vpop.permute.xlu0 %206  ;;  %v211_v10 = vpop.permute.xlu1 %210 }
 0x176   :  { %264 = vrot.lane.b32.xlu1 %v11572_v61, %s11344_s22  ;;  %245 = vrot.lane.b32.xlu0 %v11556_v55, %s11344_s22 }
 0x178   :  { %v215_v13 = vpop.permute.xlu0 %214  ;;  %v209_v14 = vpop.permute.xlu1 %208 }
 0x17a   :  { %327 = vrot.lane.b32.xlu1 %v11485_v30, %s11341_s19  ;;  %219 = vrot.lane.b32.xlu0 %v11523_v49, %s11343_s21 }
 0x17c   :  { %v217_v15 = vpop.permute.xlu1 %216 }
 0x17e   :  { %339 = vrot.lane.b32.xlu1 %v11485_v30, %s11346_s23  ;;  %227 = vrot.lane.b32.xlu0 %v11523_v49, %s11344_s22 }
 0x180   :  { %v224_v16 = vpop.permute.xlu1 %223 }
 0x182   :  { %335 = vrot.lane.b32.xlu1 %v11488_v31, %s11347_s24  ;;  %225 = vrot.lane.b32.xlu0 %v11528_v50, %s11342_s3 }
 0x184   :  { %v222_v21 = vpop.permute.xlu1 %221 }
 0x186   :  { %268 = vrot.lane.b32.xlu1 %v11460_v17, %s11341_s19  ;;  %346 = vperm.xlu0 %11116, %v11523_v49  }
 0x188   :  { %v230_v24 = vpop.permute.xlu1 %229 }
 0x18a   :  { %1317 = vperm.xlu1 %11117, %v11135_v8   ;;  %362 = vperm.xlu0 %11116, %v11528_v50  }
 0x18e   :  { %291 = vperm.xlu1 %11117, %v207_v9   ;;  %333 = vrot.lane.b32.xlu0 %v11485_v30, %s11347_s24 }
 0x192   :  { %295 = vperm.xlu1 %11117, %v211_v10   ;;  %287 = vperm.xlu0 %11116, %v11504_v42  }
 0x196   :  { %329 = vrot.lane.b32.xlu0 %v11488_v31, %s11341_s19 }
 0x19a   :  { %341 = vrot.lane.b32.xlu0 %v11488_v31, %s11346_s23 }
 0x19e   :  { %303 = vperm.xlu0 %11116, %v11512_v45  }
 0x1a2   :  { %503 = vrot.lane.b32.xlu0 %v495_v11, %s11347_s24 }
 0x1a6   :  { %511 = vrot.lane.b32.xlu0 %v499_v12, %s11347_s24 }
 0x1aa   :  { %299 = vperm.xlu0 %11116, %v215_v13  }
 0x1d0   :  { %v11662_v19 = vpop.permute.xlu0 %231 }
 0x1d4   :  { %v11664_v23 = vpop.permute.xlu0 %237  ;;  %v251_v26 = vpop.permute.xlu1 %250 }
 0x1d5   :  { %v11685_v44 = vadd.f32 %v251_v26, %v11662_v19 }
 0x1d7   :  { %v496_v49 = vrot.slane %v11685_v44, 7 }
 0x1d8   :  { %v11666_v25 = vpop.permute.xlu0 %243  ;;  %v257_v29 = vpop.permute.xlu1 %256 }
 0x1d9   :  { %v11680_v41 = vadd.f32 %v257_v29, %v11664_v23  ;;  %v1303_v12 = vmul.f32 1.442695, %v257_v29 }
 0x1db   :  { %v497_v47 = vrot.slane %v11680_v41, 7  ;;  %11138 = vpow2.f32 %v1303_v12 }
 0x1dc   :  { %v213_v27 = vpop.permute.xlu0 %212  ;;  %v11672_v35 = vpop.permute.xlu1 %262 }
 0x1dd   :  { %v11695_v48 = vadd.f32 %v11672_v35, %v11666_v25 }
 0x1df   :  { %v498_v52 = vrot.slane %v11695_v48, 7 }
 0x1e0   :  { %v11668_v28 = vpop.permute.xlu0 %233  ;;  %v11676_v38 = vpop.permute.xlu1 %252 }
 0x1e1   :  { %v11703_v51 = vadd.f32 %v11676_v38, %v11668_v28  ;;  %v1309_v40 = vmul.f32 1.442695, %v11676_v38 }
 0x1e3   :  { %v500_v58 = vrot.slane %v11703_v51, 7 }
 0x1e4   :  { %v11670_v34 = vpop.permute.xlu0 %239  ;;  %v11682_v42 = vpop.permute.xlu1 %258 }
 0x1e5   :  { %v11689_v45 = vadd.f32 %v11682_v42, %v11670_v34 }
 0x1e7   :  { %v501_v50 = vrot.slane %v11689_v45, 7 }
 0x1e8   :  { %v11674_v36 = vpop.permute.xlu0 %245  ;;  %v265_v56 = vpop.permute.xlu1 %264 }
 0x1e9   :  { %13570 = vst [vmem:[#allocation6_spill] sm:$0xff] %v11674_v36  ;;  %v11708_v57 = vadd.f32 %v265_v56, %v11674_v36  ;;  %v13572_v36 = vmov 0  }
 0x1eb   :  { %13571 = vst [vmem:[#allocation7_spill] sm:$0xff] %v11708_v57  ;;  %v502_v60 = vrot.slane %v11708_v57, 7 }
 0x1ec   :  { %v220_v37 = vpop.permute.xlu0 %219 }
 0x1ed   :  { %350 = vperm.xlu1 %11117, %v220_v37  }
 0x1f0   :  { %v228_v39 = vpop.permute.xlu0 %227 }
 0x1f1   :  { %354 = vperm.xlu1 %11117, %v224_v16   ;;  %358 = vperm.xlu0 %11116, %v228_v39   ;;  %v1313_v16 = vmul.f32 1.442695, %v265_v56 }
 0x1f4   :  { %v226_v43 = vpop.permute.xlu0 %225 }
 0x1f5   :  { %366 = vperm.xlu1 %11117, %v222_v21   ;;  %370 = vperm.xlu0 %11116, %v226_v43  }
 0x1f9   :  { %374 = vperm.xlu1 %11117, %v230_v24   ;;  %507 = vrot.lane.b32.xlu0 %v497_v47, %s11347_s24  ;;  %v11139_v47 = vpop.eup %11138 }
 0x1fd   :  { %505 = vrot.lane.b32.xlu1 %v496_v49, %s11347_s24  ;;  %515 = vrot.lane.b32.xlu0 %v501_v50, %s11347_s24 }
 0x201   :  { %509 = vrot.lane.b32.xlu1 %v498_v52, %s11347_s24  ;;  %1337 = vperm.xlu0 %11116, %v11137_v53   ;;  %v1311_v53 = vmul.f32 1.442695, %v11682_v42 }
 0x205   :  { %v11711_v59 = vpop.permute.xlu0 %346  ;;  %513 = vrot.lane.b32.xlu1 %v500_v58, %s11347_s24  ;;  %311 = vperm.xlu0 %11116, %v213_v27  }
 0x209   :  { %v11715_v61 = vpop.permute.xlu0 %362  ;;  %517 = vrot.lane.b32.xlu1 %v502_v60, %s11347_s24  ;;  %270 = vrot.lane.b32.xlu0 %v11470_v20, %s11341_s19 }
 0x20a   :  { %11119 = vset.pattern.permute.xlu0 %v13544_v7 }
 0x20d   :  { %v11721_v8 = vpop.permute.xlu0 %333  ;;  %307 = vperm.xlu1 %11117, %v209_v14   ;;  %282 = vrot.lane.b32.xlu0 %v11470_v20, %s11346_s23  ;;  %v1301_v14 = vmul.f32 1.442695, %v251_v26 }
 0x20f   :  { %11140 = vpow2.f32 %v1301_v14 }
 0x210   :  { %11142 = vpow2.f32 %v1313_v16 }
 0x211   :  { %v11725_v9 = vpop.permute.xlu0 %287  ;;  %274 = vrot.lane.b32.xlu1 %v11460_v17, %s11347_s24 }
 0x215   :  { %v11729_v10 = vpop.permute.xlu0 %329  ;;  %280 = vrot.lane.b32.xlu1 %v11460_v17, %s11346_s23 }
 0x219   :  { %v11733_v11 = vpop.permute.xlu0 %341  ;;  %315 = vperm.xlu1 %11117, %v217_v15   ;;  %v1305_v15 = vmul.f32 1.442695, %v11672_v35  ;;  %v11141_v56 = vpop.eup %11140 }
 0x21a   :  { %v11143_v58 = vpop.eup %11142 }
 0x21b   :  { %11144 = vpow2.f32 %v1305_v15 }
 0x21c   :  { %11146 = vpow2.f32 %v1309_v40  ;;  %v11767_v40 = vpop.permute.xlu1 %327 }
 0x21d   :  { %v11735_v13 = vpop.permute.xlu0 %303  ;;  %276 = vrot.lane.b32.xlu1 %v11470_v20, %s11347_s24  ;;  %11148 = vpow2.f32 %v1311_v53 }
 0x21e   :  { %11118 = vset.pattern.permute.xlu1 %v13544_v7 }
 0x221   :  { %v504_v21 = vpop.permute.xlu0 %503 }
 0x222   :  { %v528_v24 = vsel %vm527_vm6, 0.0, %v504_v21 }
 0x223   :  { %546 = vperm.xlu1 %11118, %v528_v24   ;;  %vm592_vm7 = vcmp.ge.f32.partialorder %v528_v24, 0.0 }
 0x224   :  { %v617_v29 = vsel %vm592_vm7, 1, %v13544_v7 }
 0x225   :  { %v512_v27 = vpop.permute.xlu0 %511  ;;  %v11145_v12 = vpop.eup %11144 }
 0x226   :  { %v532_v37 = vsel %vm527_vm6, 0.0, %v512_v27  ;;  %v11147_v42 = vpop.eup %11146 }
 0x227   :  { %v11744_v39 = vpop.f32.mrb[0].mxu1  ;;  %626 = vperm.xlu1 %11118, %v617_v29   ;;  %566 = vperm.xlu0 %11119, %v532_v37   ;;  %vm596_vm8 = vcmp.ge.f32.partialorder %v532_v37, 0.0 }
 0x228   :  { %v10451_v26 = vpop.f32.mrb[1].mxu1  ;;  %v621_v43 = vsel %vm596_vm8, 1, %v13544_v7 }
 0x229   :  { %v11149_v26 = vpop.eup %11148 }
 0x22b   :  { %v11748_v49 = vpop.f32.mrb[2].mxu1  ;;  %v11750_v35 = vpop.f32.mrb[4].mxu0  ;;  %11121 = vset.pattern.permute.xlu1 %v13542_v46  ;;  %638 = vperm.xlu0 %11119, %v621_v43  }
 0x22c   :  { %v10456_v50 = vpop.f32.mrb[3].mxu1  ;;  %v10466_v52 = vpop.f32.mrb[5].mxu0  ;;  %1327 = vperm.xlu1 %11121, %v11139_v47  }
 0x22d   :  { %v11769_v43 = vpop.permute.xlu1 %339 }
 0x22f   :  { %v11754_v60 = vpop.f32.mrb[4].mxu1  ;;  %11120 = vset.pattern.permute.xlu0 %v13542_v46 }
 0x230   :  { %v10461_v38 = vpop.f32.mrb[5].mxu1  ;;  %1352 = vperm.xlu1 %11121, %v11143_v58   ;;  %1322 = vperm.xlu0 %11120, %v11141_v56   ;;  %v11781_v58 = vpop.permute.xlu0 %299 }
 0x231   :  { %v11771_v47 = vpop.permute.xlu1 %335 }
 0x233   :  { %v11757_v14 = vpop.f32.mrb[6].mxu1  ;;  %v11759_v16 = vpop.f32.mrb[6].mxu0 }
 0x234   :  { %v10471_v21 = vpop.f32.mrb[7].mxu1  ;;  %v10476_v24 = vpop.f32.mrb[7].mxu0  ;;  %1332 = vperm.xlu0 %11120, %v11145_v12   ;;  %11123 = vset.pattern.permute.xlu1 %v13544_v7 }
 0x235   :  { %v11773_v50 = vpop.permute.xlu1 %268 }
 0x237   :  { %v11762_v15 = vpop.f32.mrb[8].mxu1  ;;  %v11764_v27 = vpop.f32.mrb[8].mxu0 }
 0x238   :  { %v10481_v29 = vpop.f32.mrb[9].mxu1  ;;  %v10486_v37 = vpop.f32.mrb[9].mxu0  ;;  %1342 = vperm.xlu0 %11120, %v11147_v42  }
 0x239   :  { %v11775_v52 = vpop.permute.xlu1 %1317 }
 0x23c   :  { %1347 = vperm.xlu0 %11120, %v11149_v26  }
 0x23d   :  { %v11777_v53 = vpop.permute.xlu1 %291 }
 0x240   :  { %11122 = vset.pattern.permute.xlu0 %v13544_v7 }
 0x241   :  { %v11779_v56 = vpop.permute.xlu1 %295 }
 0x26c   :  { %v351_v38 = vpop.permute.xlu1 %350 }
 0x270   :  { %v355_v12 = vpop.permute.xlu1 %354  ;;  %v359_v21 = vpop.permute.xlu0 %358 }
 0x274   :  { %v11783_v24 = vpop.permute.xlu1 %366  ;;  %v371_v42 = vpop.permute.xlu0 %370 }
 0x278   :  { %v11785_v29 = vpop.permute.xlu1 %374  ;;  %v508_v37 = vpop.permute.xlu0 %507 }
 0x279   :  { %v530_v6 = vsel %vm527_vm6, 0.0, %v508_v37 }
 0x27a   :  { %vm594_vm9 = vcmp.ge.f32.partialorder %v530_v6, 0.0 }
 0x27b   :  { %v619_v57 = vsel %vm594_vm9, 1, %v13572_v36 }
 0x27c   :  { %v506_v26 = vpop.permute.xlu1 %505  ;;  %v516_v3 = vpop.permute.xlu0 %515 }
 0x27d   :  { %v529_v5 = vsel %vm527_vm6, 0.0, %v506_v26  ;;  %v534_v26 = vsel %vm527_vm6, 0.0, %v516_v3 }
 0x27e   :  { %551 = vperm.xlu0 %11122, %v529_v5   ;;  %vm593_vm10 = vcmp.ge.f32.partialorder %v529_v5, 0.0  ;;  %vm598_vm11 = vcmp.ge.f32.partialorder %v534_v26, 0.0 }
 0x27f   :  { %v618_v37 = vsel %vm593_vm10, 1, %v13572_v36  ;;  %v623_v1 = vsel %vm598_vm11, 1, %v13572_v36  ;;  %vm1383_vm10 = vcmask 64512  }
 0x280   :  { %v510_v2 = vpop.permute.xlu1 %509  ;;  %v1338_v5 = vpop.permute.xlu0 %1337 }
 0x281   :  { %v531_v4 = vsel %vm527_vm6, 0.0, %v510_v2 }
 0x282   :  { %561 = vperm.xlu1 %11123, %v531_v4   ;;  %556 = vperm.xlu0 %11122, %v530_v6   ;;  %vm595_vm12 = vcmp.ge.f32.partialorder %v531_v4, 0.0 }
 0x284   :  { %v514_v46 = vpop.permute.xlu1 %513 }
 0x285   :  { %v533_v7 = vsel %vm527_vm6, 0.0, %v514_v46  ;;  %v11798_v46 = vmul.f32 %v11711_v59, %v11485_v30  ;;  %v312_v30 = vpop.permute.xlu0 %311  ;;  %v11812_v59 = vmul.f32 %v11715_v61, %v11488_v31 }
 0x286   :  { %571 = vperm.xlu1 %11123, %v533_v7   ;;  %632 = vperm.xlu0 %11122, %v619_v57   ;;  %v620_v57 = vsel %vm595_vm12, 1, %v13572_v36  ;;  %vm597_vm13 = vcmp.ge.f32.partialorder %v533_v7, 0.0 }
 0x287   :  { %v622_v4 = vsel %vm597_vm13, 1, %v13572_v36 }
 0x288   :  { %v518_v55 = vpop.permute.xlu1 %517 }
 0x289   :  { %v535_v6 = vsel %vm527_vm6, 0.0, %v518_v55  ;;  %v13573_v55 = vmov 32  }
 0x28a   :  { %629 = vperm.xlu1 %11123, %v618_v37   ;;  %576 = vperm.xlu0 %11122, %v534_v26   ;;  %v11805_v26 = vmul.f32 %v355_v12, %v11721_v8  ;;  %vm599_vm14 = vcmp.ge.f32.partialorder %v535_v6, 0.0  ;;  %v11819_v8 = vmul.f32 %v11725_v9, %v11460_v17  ;;  %v11822_v12 = vmul.f32 %v351_v38, %v11767_v40 }
 0x28b   :  { %v624_v7 = vsel %vm599_vm14, 1, %v13572_v36  ;;  %v11833_v36 = vmul.f32 %v359_v21, %v11769_v43  ;;  %v11848_v21 = vmul.f32 %v11785_v29, %v11733_v11 }
 0x28c   :  { %v308_v2 = vpop.permute.xlu1 %307  ;;  %v1355_v61 = vmul.f32 %v11775_v52, %v11819_v8 }
 0x28d   :  { %13574 = vst [vmem:[#allocation8_spill] sm:$0xff] %v11848_v21 }
 0x28e   :  { %581 = vperm.xlu1 %11123, %v535_v6   ;;  %644 = vperm.xlu0 %11122, %v623_v1   ;;  %v11825_v6 = vmul.f32 %v371_v42, %v11771_v47  ;;  %v11842_v47 = vmul.f32 %v11783_v24, %v11729_v10  ;;  %v11858_v24 = vmul.f32 %v11777_v53, %v11773_v50 }
 0x290   :  { %v275_v3 = vpop.permute.xlu1 %274 }
 0x291   :  { %v11851_v52 = vmul.f32 %v11779_v56, %v275_v3 }
 0x292   :  { %635 = vperm.xlu1 %11123, %v620_v57   ;;  %1380 = vrot.lane.b32.xlu0 %v11798_v46, %s11349_s25  ;;  %v271_v57 = vpop.permute.xlu0 %270 }
 0x293   :  { %11124 = vset.pattern.permute.xlu0 %v13573_v55 }
 0x294   :  { %v281_v1 = vpop.permute.xlu1 %280 }
 0x295   :  { %v11868_v3 = vmul.f32 %v11781_v58, %v281_v1 }
 0x296   :  { %641 = vperm.xlu1 %11123, %v622_v4   ;;  %1535 = vrot.lane.b32.xlu0 %v11805_v26, %s11349_s25  ;;  %v283_v9 = vpop.permute.xlu0 %282  ;;  %v11862_v4 = vmul.f32 %v11735_v13, %v11470_v20 }
 0x298   :  { %v316_v37 = vpop.permute.xlu1 %315  ;;  %13575 = vst [vmem:[#allocation9_spill] sm:$0xff] %v11862_v4  ;;  %v1359_v56 = vmul.f32 %v1338_v5, %v11862_v4 }
 0x29a   :  { %647 = vperm.xlu1 %11123, %v624_v7   ;;  %1689 = vrot.lane.b32.xlu0 %v11812_v59, %s11349_s25  ;;  %v11873_v7 = vmul.f32 %v308_v2, %v271_v57  ;;  %v536_v2 = vlaneseq }
 0x29c   :  { %v277_v31 = vpop.permute.xlu1 %276  ;;  %13576 = vst [vmem:[#allocation10_spill] sm:$0xff] %v11873_v7 }
 0x29e   :  { %1458 = vrot.lane.b32.xlu1 %v11822_v12, %s11349_s25  ;;  %1843 = vrot.lane.b32.xlu0 %v11825_v6, %s11349_s25 }
 0x29f   :  { %11125 = vset.pattern.permute.xlu1 %v13573_v55 }
 0x2a2   :  { %v547_v40 = vpop.permute.xlu1 %546  ;;  %1612 = vrot.lane.b32.xlu1 %v11833_v36, %s11349_s25  ;;  %1997 = vrot.lane.b32.xlu0 %v1355_v61, %s11349_s25 }
 0x2a6   :  { %v627_v38 = vpop.permute.xlu1 %626  ;;  %1766 = vrot.lane.b32.xlu1 %v11842_v47, %s11349_s25  ;;  %v567_v43 = vpop.permute.xlu0 %566 }
 0x2a7   :  { %vm649_vm15 = vcmp.eq.s32.totalorder %v627_v38, 1 }
 0x2aa   :  { %1920 = vrot.lane.b32.xlu1 %v11848_v21, %s11349_s25  ;;  %v639_v42 = vpop.permute.xlu0 %638 }
 0x2ab   :  { %v1328_v55 = vpop.permute.xlu1 %1327  ;;  %vm653_vm4 = vcmp.eq.s32.totalorder %v639_v42, 1 }
 0x2ac   :  { %v1357_v10 = vmul.f32 %v1328_v55, %v11851_v52  ;;  %v11877_v55 = vmul.f32 %v316_v37, %v283_v9  ;;  %v537_v37 = vshrl.u32 %v536_v2, 7 }
 0x2ae   :  { %2151 = vrot.lane.b32.xlu0 %v1357_v10, %s11349_s25  ;;  %13577 = vst [vmem:[#allocation11_spill] sm:$0xff] %v11877_v55  ;;  %v11879_v10 = vmul.f32 %v312_v30, %v277_v31  ;;  %v539_v30 = vand.u32 127, %v536_v2  ;;  %v11894_v31 = vcvt.s32.f32 %v537_v37 }
 0x2af   :  { %v1323_v11 = vpop.permute.xlu0 %1322  ;;  %v1353_v5 = vpop.permute.xlu1 %1352 }
 0x2b0   :  { %v1356_v29 = vmul.f32 %v1323_v11, %v11858_v24  ;;  %13578 = vst [vmem:[#allocation12_spill] sm:$0xff] %v11879_v10  ;;  %v1362_v1 = vmul.f32 %v1353_v5, %v11877_v55  ;;  %v541_v57 = vcvt.s32.f32 %v539_v30 }
 0x2b2   :  { %2305 = vrot.lane.b32.xlu0 %v1359_v56, %s11349_s25  ;;  %2074 = vrot.lane.b32.xlu1 %v1356_v29, %s11349_s25  ;;  %v542_v9 = vadd.f32 2.0, %v541_v57  ;;  %v11897_v56 = vmin.f32 %v11894_v31, 1.0 }
 0x2b3   :  { %v1333_v50 = vpop.permute.xlu0 %1332 }
 0x2b4   :  { %v1358_v53 = vmul.f32 %v1333_v50, %v11868_v3  ;;  %v11900_v29 = vmin.f32 %v542_v9, %v11894_v31  ;;  %v600_v50 = vmul.f32 %v547_v40, %v11894_v31  ;;  %v613_v2 = vmul.f32 %v11897_v56, %v567_v43 }
 0x2b6   :  { %2228 = vrot.lane.b32.xlu1 %v1358_v53, %s11349_s25  ;;  %v609_v53 = vmul.f32 %v11897_v56, %v547_v40  ;;  %v588_v9 = vmul.f32 %v567_v43, %v11900_v29 }
 0x2b7   :  { %v1343_v13 = vpop.permute.xlu0 %1342 }
 0x2b8   :  { %v1360_v61 = vmul.f32 %v1343_v13, %v11873_v7  ;;  %v657_v13 = vsel %vm649_vm15, %v600_v50, %v609_v53 }
 0x2ba   :  { %2382 = vrot.lane.b32.xlu1 %v1360_v61, %s11349_s25  ;;  %v584_v61 = vmul.f32 %v547_v40, %v11900_v29 }
 0x2bb   :  { %v1348_v58 = vpop.permute.xlu0 %1347 }
 0x2bc   :  { %v1361_v11 = vmul.f32 %v1348_v58, %v11879_v10  ;;  %v667_v5 = vsub.f32 %v584_v61, %v657_v13  ;;  %v665_v61 = vadd.s32 1, %v539_v30 }
 0x2be   :  { %2536 = vrot.lane.b32.xlu1 %v1362_v1, %s11349_s25  ;;  %2459 = vrot.lane.b32.xlu0 %v1361_v11, %s11349_s25  ;;  %v10031_v58 = vclamps-f32 %v667_v5, 50.0  ;;  %v604_v11 = vmul.f32 %v567_v43, %v11894_v31  ;;  %vm11914_vm8 = vcmp.ge.s32.totalorder %v537_v37, %v665_v61 }
 0x2c0   :  { %v691_v1 = vmul.f32 1.442695, %v10031_v58  ;;  %v661_v20 = vsel %vm653_vm4, %v604_v11, %v613_v2 }
 0x2c1   :  { %v671_v38 = vsub.f32 %v588_v9, %v661_v20 }
 0x2c2   :  { %425 = vrot.lane.b32.xlu1 %v11494_v33, %s11350_s26  ;;  %385 = vrot.lane.b32.xlu0 %v11462_v18, %s11350_s26  ;;  %11150 = vpow2.f32 %v691_v1 }
 0x2c3   :  { %v10035_v55 = vclamps-f32 %v671_v38, 50.0 }
 0x2c5   :  { %v699_v11 = vmul.f32 1.442695, %v10035_v55 }
 0x2c6   :  { %427 = vrot.lane.b32.xlu1 %v11491_v32, %s11350_s26  ;;  %387 = vrot.lane.b32.xlu0 %v11472_v22, %s11350_s26 }
 0x2c7   :  { %11152 = vpow2.f32 %v699_v11 }
 0x2cc   :  { %v11151_v9 = vpop.eup %11150 }
 0x2fd   :  { %v552_v57 = vpop.permute.xlu0 %551 }
 0x2fe   :  { %v601_v43 = vmul.f32 %v552_v57, %v11894_v31  ;;  %v610_v20 = vmul.f32 %v11897_v56, %v552_v57  ;;  %v585_v38 = vmul.f32 %v552_v57, %v11900_v29 }
 0x301   :  { %v562_v17 = vpop.permute.xlu1 %561  ;;  %v557_v21 = vpop.permute.xlu0 %556 }
 0x302   :  { %v602_v50 = vmul.f32 %v557_v21, %v11894_v31  ;;  %v611_v40 = vmul.f32 %v11897_v56, %v557_v21  ;;  %v586_v13 = vmul.f32 %v557_v21, %v11900_v29  ;;  %v612_v11 = vmul.f32 %v11897_v56, %v562_v17 }
 0x305   :  { %v572_v53 = vpop.permute.xlu1 %571  ;;  %v633_v42 = vpop.permute.xlu0 %632 }
 0x306   :  { %vm651_vm5 = vcmp.eq.s32.totalorder %v633_v42, 1  ;;  %v11920_v42 = vsel %vm11914_vm8, %v11151_v9, 0.0 }
 0x307   :  { %v659_v5 = vsel %vm651_vm5, %v602_v50, %v611_v40  ;;  %v1371_v9 = vmul.f32 %v11754_v60, %v11920_v42 }
 0x308   :  { %v669_v58 = vsub.f32 %v586_v13, %v659_v5 }
 0x309   :  { %v630_v1 = vpop.permute.xlu1 %629  ;;  %v577_v2 = vpop.permute.xlu0 %576 }
 0x30a   :  { %v10033_v10 = vclamps-f32 %v669_v58, 50.0  ;;  %vm650_vm7 = vcmp.eq.s32.totalorder %v630_v1, 1  ;;  %v606_v57 = vmul.f32 %v577_v2, %v11894_v31  ;;  %v615_v5 = vmul.f32 %v11897_v56, %v577_v2 }
 0x30b   :  { %v658_v21 = vsel %vm650_vm7, %v601_v43, %v610_v20  ;;  %v590_v37 = vmul.f32 %v577_v2, %v11900_v29 }
 0x30c   :  { %v695_v30 = vmul.f32 1.442695, %v10033_v10  ;;  %v668_v50 = vsub.f32 %v585_v38, %v658_v21  ;;  %v603_v10 = vmul.f32 %v562_v17, %v11894_v31  ;;  %v587_v38 = vmul.f32 %v562_v17, %v11900_v29 }
 0x30d   :  { %v582_v55 = vpop.permute.xlu1 %581  ;;  %v645_v40 = vpop.permute.xlu0 %644 }
 0x30e   :  { %11154 = vpow2.f32 %v695_v30  ;;  %v10032_v13 = vclamps-f32 %v668_v50, 50.0  ;;  %vm655_vm9 = vcmp.eq.s32.totalorder %v645_v40, 1  ;;  %v13581_v30 = vmov 0.0  }
 0x30f   :  { %v663_v58 = vsel %vm655_vm9, %v606_v57, %v615_v5  ;;  %v605_v40 = vmul.f32 %v572_v53, %v11894_v31 }
 0x310   :  { %v693_v61 = vmul.f32 1.442695, %v10032_v13  ;;  %v673_v43 = vsub.f32 %v590_v37, %v663_v58  ;;  %v614_v13 = vmul.f32 %v11897_v56, %v572_v53  ;;  %v589_v37 = vmul.f32 %v572_v53, %v11900_v29  ;;  %v11153_v58 = vpop.eup %11152 }
 0x311   :  { %v636_v20 = vpop.permute.xlu1 %635  ;;  %v11927_v1 = vpop.permute.xlu0 %1380 }
 0x312   :  { %11156 = vpow2.f32 %v693_v61  ;;  %vm652_vm11 = vcmp.eq.s32.totalorder %v636_v20, 1  ;;  %10488 = vmatpush3.msra.mxu1 %v11927_v1  ;;  %v10037_v2 = vclamps-f32 %v673_v43, 50.0 }
 0x313   :  { %v660_v21 = vsel %vm652_vm11, %v603_v10, %v612_v11  ;;  %10490 = vmatmul.mubr.msk.f32.vlgmr.msra.gmra.mrb[10].mxu1 %vm1383_vm10, %v1371_v9  ;;  %10497 = vmatprep.subr.mxu1 %v13581_v30  ;;  %v591_v9 = vmul.f32 %v582_v55, %v11900_v29  ;;  %v11957_v29 = vsel %vm11914_vm8, %v11153_v58, 0.0 }
 0x314   :  { %v670_v50 = vsub.f32 %v587_v38, %v660_v21  ;;  %10499 = vmatprep.mubr.msk.f32.mxu1 %vm11340_vm1, %v13581_v30  ;;  %v703_v57 = vmul.f32 1.442695, %v10037_v2  ;;  %v607_v38 = vmul.f32 %v582_v55, %v11894_v31  ;;  %v616_v2 = vmul.f32 %v11897_v56, %v582_v55 }
 0x315   :  { %v642_v17 = vpop.permute.xlu1 %641  ;;  %v11939_v5 = vpop.permute.xlu0 %1535 }
 0x316   :  { %v10034_v61 = vclamps-f32 %v670_v50, 50.0  ;;  %vm654_vm12 = vcmp.eq.s32.totalorder %v642_v17, 1  ;;  %10498 = vmatpush3.msra.mxu1 %v11939_v5  ;;  %11158 = vpow2.f32 %v703_v57 }
 0x317   :  { %v662_v10 = vsel %vm654_vm12, %v605_v40, %v614_v13  ;;  %10507 = vmatprep.subr.mxu1 %v13581_v30 }
 0x318   :  { %v11155_v11 = vpop.eup %11154  ;;  %v697_v43 = vmul.f32 1.442695, %v10034_v61  ;;  %v672_v20 = vsub.f32 %v589_v37, %v662_v10 }
 0x319   :  { %v648_v21 = vpop.permute.xlu1 %647  ;;  %v11947_v53 = vpop.permute.xlu0 %1689  ;;  %v11951_v50 = vsel %vm11914_vm8, %v11155_v11, 0.0  ;;  %v1375_v11 = vmul.f32 %v11750_v35, %v11957_v29 }
 0x31a   :  { %11160 = vpow2.f32 %v697_v43  ;;  %v10036_v40 = vclamps-f32 %v672_v20, 50.0  ;;  %vm656_vm13 = vcmp.eq.s32.totalorder %v648_v21, 1  ;;  %v1373_v13 = vmul.f32 %v11754_v60, %v11951_v50 }
 0x31b   :  { %v664_v57 = vsel %vm656_vm13, %v607_v38, %v616_v2 }
 0x31c   :  { %v11157_v31 = vpop.eup %11156  ;;  %v701_v56 = vmul.f32 1.442695, %v10036_v40  ;;  %v674_v55 = vsub.f32 %v591_v9, %v664_v57  ;;  %10500 = vmatmul.mubr.msk.f32.vlgmr.msra.gmra.mrb[12].mxu1 %vm1383_vm10, %v1373_v13 }
 0x31d   :  { %10508 = vmatpush3.msra.mxu1 %v11947_v53  ;;  %v11961_v17 = vpop.permute.xlu1 %1458  ;;  %v11963_v37 = vpop.permute.xlu0 %1843  ;;  %10509 = vmatprep.mubr.msk.f32.mxu1 %vm11340_vm1, %v13581_v30  ;;  %v11969_v61 = vsel %vm11914_vm8, %v11157_v31, 0.0 }
 0x31e   :  { %11162 = vpow2.f32 %v701_v56  ;;  %v10038_v58 = vclamps-f32 %v674_v55, 50.0  ;;  %10493 = vmatpush3.msra.mxu0 %v11961_v17  ;;  %10517 = vmatprep.subr.mxu1 %v13581_v30  ;;  %v1372_v10 = vmul.f32 %v11754_v60, %v11969_v61  ;;  %v1363_v55 = vmul.f32 %v11744_v39, %v11920_v42 }
 0x31f   :  { %10502 = vmatprep.subr.mxu0 %v13581_v30 }
 0x320   :  { %v705_v43 = vmul.f32 1.442695, %v10038_v58  ;;  %10495 = vmatmul.mubr.msk.f32.vlgmr.msra.gmra.mrb[10].mxu0 %vm1383_vm10, %v1372_v10  ;;  %10510 = vmatmul.mubr.msk.f32.vlgmr.msra.gmra.mrb[14].mxu1 %vm1383_vm10, %v1375_v11  ;;  %v11159_v20 = vpop.eup %11158 }
 0x321   :  { %10518 = vmatpush3.msra.mxu1 %v11963_v37  ;;  %v11981_v9 = vpop.permute.xlu1 %1612  ;;  %v11983_v38 = vpop.permute.xlu0 %1997  ;;  %10519 = vmatprep.mubr.msk.f32.mxu1 %vm11340_vm1, %v13581_v30  ;;  %v11991_v2 = vsel %vm11914_vm8, %v11159_v20, 0.0 }
 0x322   :  { %11164 = vpow2.f32 %v705_v43  ;;  %10503 = vmatpush3.msra.mxu0 %v11981_v9  ;;  %10527 = vmatprep.subr.mxu1 %v13581_v30  ;;  %v1377_v21 = vmul.f32 %v11750_v35, %v11991_v2  ;;  %v1365_v43 = vmul.f32 %v11744_v39, %v11951_v50 }
 0x323   :  { %10504 = vmatprep.mubr.msk.f32.mxu0 %vm11340_vm1, %v13581_v30  ;;  %10512 = vmatprep.subr.mxu0 %v13581_v30 }
 0x324   :  { %v11161_v40 = vpop.eup %11160  ;;  %10520 = vmatmul.mubr.msk.f32.vlgmr.msra.gmra.mrb[16].mxu1 %vm1383_vm10, %v1377_v21 }
 0x325   :  { %v11999_v13 = vpop.permute.xlu1 %1766  ;;  %v12003_v57 = vsel %vm11914_vm8, %v11161_v40, 0.0  ;;  %10528 = vmatpush3.msra.mxu1 %v11983_v38  ;;  %v12006_v31 = vpop.permute.xlu0 %2151  ;;  %10529 = vmatprep.mubr.msk.f32.mxu1 %vm11340_vm1, %v13581_v30 }
 0x326   :  { %v1374_v56 = vmul.f32 %v11754_v60, %v12003_v57  ;;  %10537 = vmatprep.subr.mxu1 %v13581_v30 }
 0x328   :  { %v11163_v58 = vpop.eup %11162  ;;  %10505 = vmatmul.mubr.msk.f32.vlgmr.msra.gmra.mrb[12].mxu0 %vm1383_vm10, %v1374_v56  ;;  %10530 = vmatmul.mubr.msk.f32.vlgmr.msra.gmra.mrb[10].mxu1 %vm1383_vm10, %v1363_v55 }
 0x329   :  { %10513 = vmatpush3.msra.mxu0 %v11999_v13  ;;  %v12018_v10 = vpop.permute.xlu1 %1920  ;;  %v12022_v11 = vsel %vm11914_vm8, %v11163_v58, 0.0  ;;  %10538 = vmatpush3.msra.mxu1 %v12006_v31  ;;  %v12034_v21 = vpop.permute.xlu0 %2305  ;;  %v1367_v58 = vmul.f32 %v11748_v49, %v11957_v29 }
 0x32a   :  { %10514 = vmatprep.mubr.msk.f32.mxu0 %vm11340_vm1, %v13581_v30  ;;  %v1376_v60 = vmul.f32 %v11750_v35, %v12022_v11  ;;  %10522 = vmatprep.subr.mxu0 %v13581_v30 }
 0x32b   :  { %10539 = vmatprep.mubr.msk.f32.mxu1 %vm11340_vm1, %v13581_v30  ;;  %10547 = vmatprep.subr.mxu1 %v13581_v30 }
 0x32c   :  { %v11165_v20 = vpop.eup %11164  ;;  %10515 = vmatmul.mubr.msk.f32.vlgmr.msra.gmra.mrb[14].mxu0 %vm1383_vm10, %v1376_v60  ;;  %10540 = vmatmul.mubr.msk.f32.vlgmr.msra.gmra.mrb[12].mxu1 %vm1383_vm10, %v1365_v43  ;;  %v1369_v43 = vmul.f32 %v11748_v49, %v11991_v2 }
 0x32d   :  { %10523 = vmatpush3.msra.mxu0 %v12018_v10  ;;  %v12040_v40 = vpop.permute.xlu1 %2074  ;;  %v12044_v56 = vsel %vm11914_vm8, %v11165_v20, 0.0  ;;  %10548 = vmatpush3.msra.mxu1 %v12034_v21 }
 0x32e   :  { %10524 = vmatprep.mubr.msk.f32.mxu0 %vm11340_vm1, %v13581_v30  ;;  %v1378_v55 = vmul.f32 %v11750_v35, %v12044_v56  ;;  %10532 = vmatprep.subr.mxu0 %v13581_v30  ;;  %v1364_v35 = vmul.f32 %v11744_v39, %v11969_v61 }
 0x32f   :  { %10549 = vmatprep.mubr.msk.f32.mxu1 %vm11340_vm1, %v13581_v30  ;;  %10557 = vmatprep.subr.mxu1 %v13581_v30 }
 0x330   :  { %10525 = vmatmul.mubr.msk.f32.vlgmr.msra.gmra.mrb[16].mxu0 %vm1383_vm10, %v1378_v55  ;;  %v12058_v7 = vpop.permute.xlu0 %2459  ;;  %10550 = vmatmul.mubr.msk.f32.vlgmr.msra.gmra.mrb[14].mxu1 %vm1383_vm10, %v1367_v58 }
 0x331   :  { %10533 = vmatpush3.msra.mxu0 %v12040_v40  ;;  %v12062_v60 = vpop.permute.xlu1 %2228  ;;  %10558 = vmatpush3.msra.mxu1 %v12058_v7 }
 0x332   :  { %10534 = vmatprep.mubr.msk.f32.mxu0 %vm11340_vm1, %v13581_v30  ;;  %10542 = vmatprep.subr.mxu0 %v13581_v30 }
 0x333   :  { %10559 = vmatprep.mubr.msk.f32.mxu1 %vm11340_vm1, %v13581_v30  ;;  %10567 = vmatprep.subr.mxu1 %v13581_v30 }
 0x334   :  { %10535 = vmatmul.mubr.msk.f32.vlgmr.msra.gmra.mrb[10].mxu0 %vm1383_vm10, %v1364_v35  ;;  %v386_v20 = vpop.permute.xlu0 %385  ;;  %10560 = vmatmul.mubr.msk.f32.vlgmr.msra.gmra.mrb[16].mxu1 %vm1383_vm10, %v1369_v43  ;;  %v1366_v35 = vmul.f32 %v11744_v39, %v12003_v57  ;;  %v2620_v43 = vmul.f32 %v11762_v15, %v11920_v42  ;;  %v1368_v39 = vmul.f32 %v11748_v49, %v12022_v11 }
 0x335   :  { %10543 = vmatpush3.msra.mxu0 %v12062_v60  ;;  %v408_v55 = vmul.f32 %v386_v20, %v11494_v33  ;;  %v12079_v58 = vpop.permute.xlu1 %2382  ;;  %10568 = vmatpush3.msra.mxu1 %v11927_v1  ;;  %v391_v4 = vmul.f32 %v386_v20, %v11462_v18  ;;  %v2624_v20 = vmul.f32 %v11764_v27, %v11957_v29 }
 0x336   :  { %10544 = vmatprep.mubr.msk.f32.mxu0 %vm11340_vm1, %v13581_v30  ;;  %10552 = vmatprep.subr.mxu0 %v13581_v30 }
 0x337   :  { %10569 = vmatprep.mubr.msk.f32.mxu1 %vm11340_vm1, %v13581_v30  ;;  %10577 = vmatprep.subr.mxu1 %v13581_v30 }
 0x338   :  { %412 = vrot.lane.b32.xlu0 %v408_v55, %s11341_s19  ;;  %10545 = vmatmul.mubr.msk.f32.vlgmr.msra.gmra.mrb[12].mxu0 %vm1383_vm10, %v1366_v35  ;;  %v2622_v55 = vmul.f32 %v11762_v15, %v11951_v50 }
 0x339   :  { %10570 = vmatmul.mubr.msk.f32.vlgmr.msra.gmra.mrb[18].mxu1 %vm1383_vm10, %v2620_v43  ;;  %v12095_v1 = vpop.permute.xlu1 %2536  ;;  %10553 = vmatpush3.msra.mxu0 %v12079_v58  ;;  %v2626_v43 = vmul.f32 %v11764_v27, %v11991_v2 }
 0x33a   :  { %10578 = vmatpush3.msra.mxu1 %v11939_v5  ;;  %10554 = vmatprep.mubr.msk.f32.mxu0 %vm11340_vm1, %v13581_v30 }
 0x33b   :  { %10562 = vmatprep.subr.mxu0 %v13581_v30  ;;  %10579 = vmatprep.mubr.msk.f32.mxu1 %vm11340_vm1, %v13581_v30 }
 0x33c   :  { %10587 = vmatprep.subr.mxu1 %v13581_v30  ;;  %395 = vrot.lane.b32.xlu0 %v391_v4, %s11341_s19  ;;  %v1370_v4 = vmul.f32 %v11748_v49, %v12044_v56  ;;  %v2621_v49 = vmul.f32 %v11762_v15, %v11969_v61 }
 0x33d   :  { %10555 = vmatmul.mubr.msk.f32.vlgmr.msra.gmra.mrb[14].mxu0 %vm1383_vm10, %v1368_v39  ;;  %v426_v18 = vpop.permute.xlu1 %425  ;;  %10580 = vmatmul.mubr.msk.f32.vlgmr.msra.gmra.mrb[20].mxu1 %vm1383_vm10, %v2622_v55  ;;  %v3798_v39 = vmax.f32 %v11664_v23, %v11680_v41 }
 0x33e   :  { %10563 = vmatpush3.msra.mxu0 %v12095_v1  ;;  %v431_v5 = vmul.f32 %v426_v18, %v11494_v33  ;;  %10588 = vmatpush3.msra.mxu1 %v11947_v53  ;;  %v388_v53 = vpop.permute.xlu0 %387  ;;  %v3799_v18 = vmax.f32 %v11666_v25, %v11695_v48 }
 0x33f   :  { %10564 = vmatprep.mubr.msk.f32.mxu0 %vm11340_vm1, %v13581_v30  ;;  %10572 = vmatprep.subr.mxu0 %v13581_v30  ;;  %v3878_v55 = vsub.f32 %v11680_v41, %v3798_v39 }
 0x340   :  { %10589 = vmatprep.mubr.msk.f32.mxu1 %vm11340_vm1, %v13581_v30  ;;  %10597 = vmatprep.subr.mxu1 %v13581_v30  ;;  %v3807_v41 = vsub.f32 %v11666_v25, %v3799_v18  ;;  %v3801_v25 = vmax.f32 %v11668_v28, %v11703_v51 }
 0x341   :  { %435 = vrot.lane.b32.xlu1 %v431_v5, %s11341_s19  ;;  %v428_v33 = vpop.permute.xlu1 %427  ;;  %10565 = vmatmul.mubr.msk.f32.vlgmr.msra.gmra.mrb[16].mxu0 %vm1383_vm10, %v1370_v4  ;;  %v3879_v5 = vsub.f32 %v11695_v48, %v3799_v18 }
 0x342   :  { %10590 = vmatmul.mubr.msk.f32.vlgmr.msra.gmra.mrb[22].mxu1 %vm1383_vm10, %v2624_v20  ;;  %10573 = vmatpush3.msra.mxu0 %v11961_v17  ;;  %v432_v35 = vmul.f32 %v428_v33, %v11491_v32  ;;  %v409_v17 = vmul.f32 %v388_v53, %v11491_v32  ;;  %v2623_v32 = vmul.f32 %v11762_v15, %v12003_v57 }
 0x343   :  { %10598 = vmatpush3.msra.mxu1 %v11963_v37  ;;  %10574 = vmatprep.mubr.msk.f32.mxu0 %vm11340_vm1, %v13581_v30  ;;  %v2612_v37 = vmul.f32 %v11757_v14, %v11920_v42  ;;  %v2625_v15 = vmul.f32 %v11764_v27, %v12022_v11  ;;  %v2627_v42 = vmul.f32 %v11764_v27, %v12044_v56  ;;  %v3890_v4 = vmul.f32 1.442695, %v3879_v5 }
 0x344   :  { %10582 = vmatprep.subr.mxu0 %v13581_v30  ;;  %10599 = vmatprep.mubr.msk.f32.mxu1 %vm11340_vm1, %v13581_v30  ;;  %v2613_v27 = vmul.f32 %v11757_v14, %v11969_v61  ;;  %v2615_v61 = vmul.f32 %v11757_v14, %v12003_v57  ;;  %v3797_v57 = vmax.f32 %v11662_v19, %v11685_v44 }
 0x345   :  { %10607 = vmatprep.subr.mxu1 %v13581_v30  ;;  %10575 = vmatmul.mubr.msk.f32.vlgmr.msra.gmra.mrb[18].mxu0 %vm1383_vm10, %v2621_v49 }
 0x346   :  { %10600 = vmatmul.mubr.msk.f32.vlgmr.msra.gmra.mrb[24].mxu1 %vm1383_vm10, %v2626_v43  ;;  %10583 = vmatpush3.msra.mxu0 %v11981_v9  ;;  %v392_v9 = vmul.f32 %v388_v53, %v11472_v22  ;;  %v2614_v22 = vmul.f32 %v11757_v14, %v11951_v50  ;;  %v2616_v50 = vmul.f32 %v11759_v16, %v11957_v29 }
 0x347   :  { %10608 = vmatpush3.msra.mxu1 %v11983_v38  ;;  %437 = vrot.lane.b32.xlu0 %v432_v35, %s11341_s19  ;;  %v2618_v29 = vmul.f32 %v11759_v16, %v11991_v2  ;;  %v2617_v38 = vmul.f32 %v11759_v16, %v12022_v11  ;;  %v2619_v14 = vmul.f32 %v11759_v16, %v12044_v56  ;;  %v3818_v35 = vmul.f32 1.442695, %v3807_v41 }
 0x348   :  { %414 = vrot.lane.b32.xlu1 %v409_v17, %s11341_s19  ;;  %10584 = vmatprep.mubr.msk.f32.mxu0 %vm11340_vm1, %v13581_v30  ;;  %v3877_v16 = vsub.f32 %v11685_v44, %v3797_v57  ;;  %v13582_v56 = vsub.f32 %v11579_v62, %v11594_v0  ;;  %v3888_v62 = vmul.f32 1.442695, %v3878_v55 }
 0x349   :  { %10592 = vmatprep.subr.mxu0 %v13581_v30  ;;  %10609 = vmatprep.mubr.msk.f32.mxu1 %vm11340_vm1, %v13581_v30 }
 0x34a   :  { %10617 = vmatprep.subr.mxu1 %v13581_v30  ;;  %10585 = vmatmul.mubr.msk.f32.vlgmr.msra.gmra.mrb[20].mxu0 %vm1383_vm10, %v2623_v32 }
 0x34b   :  { %10610 = vmatmul.mubr.msk.f32.vlgmr.msra.gmra.mrb[18].mxu1 %vm1383_vm10, %v2612_v37  ;;  %10593 = vmatpush3.msra.mxu0 %v11999_v13 }
 0x34c   :  { %10618 = vmatpush3.msra.mxu1 %v12006_v31  ;;  %397 = vrot.lane.b32.xlu1 %v392_v9, %s11341_s19 }
 0x34d   :  { %10594 = vmatprep.mubr.msk.f32.mxu0 %vm11340_vm1, %v13581_v30  ;;  %10602 = vmatprep.subr.mxu0 %v13581_v30 }
 0x34e   :  { %10619 = vmatprep.mubr.msk.f32.mxu1 %vm11340_vm1, %v13581_v30  ;;  %10627 = vmatprep.subr.mxu1 %v13581_v30 }
 0x34f   :  { %10595 = vmatmul.mubr.msk.f32.vlgmr.msra.gmra.mrb[22].mxu0 %vm1383_vm10, %v2625_v15  ;;  %10620 = vmatmul.mubr.msk.f32.vlgmr.msra.gmra.mrb[20].mxu1 %vm1383_vm10, %v2614_v22  ;;  %v3881_v22 = vsub.f32 %v11703_v51, %v3801_v25 }
 0x350   :  { %10603 = vmatpush3.msra.mxu0 %v12018_v10  ;;  %10628 = vmatpush3.msra.mxu1 %v12034_v21 }
 0x351   :  { %10604 = vmatprep.mubr.msk.f32.mxu0 %vm11340_vm1, %v13581_v30  ;;  %10612 = vmatprep.subr.mxu0 %v13581_v30 }
 0x352   :  { %10629 = vmatprep.mubr.msk.f32.mxu1 %vm11340_vm1, %v13581_v30  ;;  %10637 = vmatprep.subr.mxu1 %v13581_v30 }
 0x353   :  { %10605 = vmatmul.mubr.msk.f32.vlgmr.msra.gmra.mrb[24].mxu0 %vm1383_vm10, %v2627_v42  ;;  %10630 = vmatmul.mubr.msk.f32.vlgmr.msra.gmra.mrb[22].mxu1 %vm1383_vm10, %v2616_v50  ;;  %v3802_v42 = vmax.f32 %v11670_v34, %v11689_v45  ;;  %v3894_v50 = vmul.f32 1.442695, %v3881_v22 }
 0x354   :  { %10613 = vmatpush3.msra.mxu0 %v12040_v40  ;;  %10638 = vmatpush3.msra.mxu1 %v12058_v7  ;;  %v3886_v40 = vmul.f32 1.442695, %v3877_v16  ;;  %v3884_v7 = vmul.f32 1.442695, %v13582_v56 }
 0x355   :  { %10614 = vmatprep.mubr.msk.f32.mxu0 %vm11340_vm1, %v13581_v30  ;;  %10622 = vmatprep.subr.mxu0 %v13581_v30 }
 0x356   :  { %10639 = vmatprep.mubr.msk.f32.mxu1 %vm11340_vm1, %v13581_v30  ;;  %11166 = vpow2.f32 %v3886_v40 }
 0x357   :  { %10615 = vmatmul.mubr.msk.f32.vlgmr.msra.gmra.mrb[18].mxu0 %vm1383_vm10, %v2613_v27  ;;  %10640 = vmatmul.mubr.msk.f32.vlgmr.msra.gmra.mrb[24].mxu1 %vm1383_vm10, %v2618_v29  ;;  %11168 = vpow2.f32 %v3884_v7  ;;  %v3882_v27 = vsub.f32 %v11689_v45, %v3802_v42  ;;  %v3810_v29 = vsub.f32 %v11670_v34, %v3802_v42  ;;  %v13584_v45 = vld [vmem:[#allocation5_spill] sm:$0xff]  ;;  %v13586_v7 = vld [vmem:[#allocation4_spill] sm:$0xff] }
 0x358   :  { %10623 = vmatpush3.msra.mxu0 %v12062_v60  ;;  %10624 = vmatprep.mubr.msk.f32.mxu0 %vm11340_vm1, %v13581_v30  ;;  %v13583_v60 = vsub.f32 %v11553_v54, %v11594_v0  ;;  %v13585_v16 = vsub.f32 %v11583_v63, %v13584_v45 }
 0x359   :  { %10632 = vmatprep.subr.mxu0 %v13581_v30 }
 0x35a   :  { %v3892_v34 = vmul.f32 1.442695, %v13585_v16 }
 0x35b   :  { %10625 = vmatmul.mubr.msk.f32.vlgmr.msra.gmra.mrb[20].mxu0 %vm1383_vm10, %v2615_v61  ;;  %v3896_v61 = vmul.f32 1.442695, %v3882_v27 }
 0x35c   :  { %10633 = vmatpush3.msra.mxu0 %v12079_v58  ;;  %10634 = vmatprep.mubr.msk.f32.mxu0 %vm11340_vm1, %v13581_v30  ;;  %v3812_v58 = vmul.f32 1.442695, %v13583_v60  ;;  %v13587_v60 = vsub.f32 %v13586_v7, %v13584_v45  ;;  %v4132_v7 = vld [vmem:[%s13532_s7] sm:$0xff] }
 0x35d   :  { %10642 = vmatprep.subr.mxu0 %v13581_v30 }
 0x35e   :  { %11170 = vpow2.f32 %v3812_v58  ;;  %v3820_v58 = vmul.f32 1.442695, %v13587_v60  ;;  %v4133_v60 = vld [vmem:[%s13532_s7 + $0x8] sm:$0xff] }
 0x35f   :  { %10635 = vmatmul.mubr.msk.f32.vlgmr.msra.gmra.mrb[22].mxu0 %vm1383_vm10, %v2617_v38  ;;  %v3824_v38 = vmul.f32 1.442695, %v3810_v29 }
 0x360   :  { %10643 = vmatpush3.msra.mxu0 %v12095_v1  ;;  %10644 = vmatprep.mubr.msk.f32.mxu0 %vm11340_vm1, %v13581_v30  ;;  %v3805_v1 = vsub.f32 %v11662_v19, %v3797_v57  ;;  %v11167_v54 = vpop.eup %11166  ;;  %v3806_v19 = vsub.f32 %v11664_v23, %v3798_v39  ;;  %v13588_v39 = vld [vmem:[#allocation7_spill] sm:$0xff] }
 0x361   :  { %10667 = vmatprep.subr.mxu0 %v13581_v30  ;;  %v11169_v0 = vpop.eup %11168 }
 0x362   :  { %v3814_v44 = vmul.f32 1.442695, %v3805_v1  ;;  %v3816_v33 = vmul.f32 1.442695, %v3806_v19  ;;  %v3809_v1 = vsub.f32 %v11668_v28, %v3801_v25 }
 0x363   :  { %10645 = vmatmul.mubr.msk.f32.vlgmr.msra.gmra.mrb[24].mxu0 %vm1383_vm10, %v2619_v14 }
 0x364   :  { %10669 = vmatprep.mubr.msk.f32.mxu0 %vm11340_vm1, %v13581_v30  ;;  %11172 = vpow2.f32 %v3814_v44  ;;  %v13589_v44 = vld [vmem:[#allocation6_spill] sm:$0xff]  ;;  %v3822_v5 = vmul.f32 1.442695, %v3809_v1 }
 0x365   :  { %11174 = vpow2.f32 %v3888_v62  ;;  %v3803_v55 = vmax.f32 %v13589_v44, %v13588_v39 }
 0x366   :  { %11176 = vpow2.f32 %v3890_v4 }
 0x367   :  { %11178 = vpow2.f32 %v3816_v33  ;;  %v3811_v4 = vsub.f32 %v13589_v44, %v3803_v55 }
 0x368   :  { %v11171_v20 = vpop.eup %11170  ;;  %11180 = vpow2.f32 %v3818_v35 }
 0x369   :  { %11182 = vpow2.f32 %v3894_v50 }
 0x36a   :  { %11184 = vpow2.f32 %v3896_v61 }
 0x36b   :  { %11186 = vpow2.f32 %v3824_v38 }
 0x36c   :  { %11188 = vpow2.f32 %v3892_v34 }
 0x36d   :  { %11190 = vpow2.f32 %v3820_v58 }
 0x36e   :  { %v11173_v53 = vpop.eup %11172  ;;  %11192 = vpow2.f32 %v3822_v5 }
 0x36f   :  { %v11175_v49 = vpop.eup %11174 }
 0x370   :  { %v11177_v48 = vpop.eup %11176 }
 0x371   :  { %v11179_v43 = vpop.eup %11178 }
 0x372   :  { %v11181_v23 = vpop.eup %11180 }
 0x3aa   :  { %v413_v2 = vpop.permute.xlu0 %412 }
 0x3ab   :  { %v418_v13 = vsel %vm401_vm2, %v413_v2, 0.0 }
 0x3ac   :  { %419 = vadd.xlane.f32.xlu0 %v418_v13  ;;  %v11183_v13 = vpop.eup %11182 }
 0x3ae   :  { %v396_v31 = vpop.permute.xlu0 %395 }
 0x3af   :  { %v402_v10 = vsel %vm401_vm2, %v396_v31, 0.0 }
 0x3b0   :  { %403 = vadd.xlane.f32.xlu0 %v402_v10  ;;  %v11185_v10 = vpop.eup %11184 }
 0x3b1   :  { %v11187_v40 = vpop.eup %11186 }
 0x3b2   :  { %v11189_v41 = vpop.eup %11188 }
 0x3b3   :  { %v436_v11 = vpop.permute.xlu1 %435 }
 0x3b4   :  { %v441_v21 = vsel %vm401_vm2, %v436_v11, 0.0 }
 0x3b5   :  { %442 = vadd.xlane.f32.xlu1 %v441_v21 }
 0x3b9   :  { %v438_v32 = vpop.permute.xlu0 %437 }
 0x3ba   :  { %v415_v17 = vpop.permute.xlu1 %414  ;;  %v444_v37 = vsel %vm401_vm2, %v438_v32, 0.0 }
 0x3bb   :  { %v421_v31 = vsel %vm401_vm2, %v415_v17, 0.0 }
 0x3be   :  { %v398_v9 = vpop.permute.xlu1 %397 }
 0x3bf   :  { %v405_v15 = vsel %vm401_vm2, %v398_v9, 0.0 }
 0x3c6   :  { %3907 = vperm.xlu1 %11125, %v11167_v54   ;;  %3902 = vperm.xlu0 %11124, %v11169_v0   ;;  %v3883_v54 = vsub.f32 %v13588_v39, %v3803_v55 }
 0x3ca   :  { %3830 = vperm.xlu1 %11125, %v11171_v20   ;;  %v3898_v20 = vmul.f32 1.442695, %v3883_v54 }
 0x3cc   :  { %11194 = vpow2.f32 %v3898_v20 }
 0x3ce   :  { %3835 = vperm.xlu1 %11125, %v11173_v53   ;;  %v3826_v53 = vmul.f32 1.442695, %v3811_v4 }
 0x3d0   :  { %11196 = vpow2.f32 %v3826_v53 }
 0x3d2   :  { %3912 = vperm.xlu1 %11125, %v11175_v49   ;;  %v11191_v49 = vpop.eup %11190 }
 0x3d6   :  { %3917 = vperm.xlu1 %11125, %v11177_v48  }
 0x3da   :  { %3840 = vperm.xlu1 %11125, %v11179_v43   ;;  %v11193_v43 = vpop.eup %11192 }
 0x3de   :  { %3845 = vperm.xlu1 %11125, %v11181_v23   ;;  %v11195_v23 = vpop.eup %11194 }
 0x3e5   :  { %445 = vadd.xlane.f32.xlu0 %v444_v37  ;;  %v11197_v37 = vpop.eup %11196 }
 0x3e9   :  { %406 = vadd.xlane.f32.xlu0 %v405_v15 }
 0x3fb   :  { %v12257_v14 = vpop.f32.mrb[10].mxu1 }
 0x3fc   :  { %v10531_v2 = vpop.f32.mrb[11].mxu1 }
 0x3ff   :  { %3927 = vperm.xlu0 %11124, %v11183_v13   ;;  %v12259_v57 = vpop.f32.mrb[12].mxu1 }
 0x400   :  { %v10541_v51 = vpop.f32.mrb[13].mxu1 }
 0x402   :  { %422 = vadd.xlane.f32.xlu1 %v421_v31 }
 0x403   :  { %3932 = vperm.xlu0 %11124, %v11185_v10   ;;  %v12265_v11 = vpop.f32.mrb[14].mxu1 }
 0x404   :  { %v10551_v21 = vpop.f32.mrb[15].mxu1 }
 0x407   :  { %v12267_v56 = vpop.f32.mrb[10].mxu0  ;;  %3860 = vperm.xlu0 %11124, %v11187_v40   ;;  %v12275_v63 = vpop.f32.mrb[16].mxu1 }
 0x408   :  { %v10536_v18 = vpop.f32.mrb[11].mxu0  ;;  %v10561_v62 = vpop.f32.mrb[17].mxu1 }
 0x409   :  { %v11034_v18 = vpack.c.bf16 %v4133_v60, %v4132_v7 }
 0x40b   :  { %v12278_v0 = vpop.f32.mrb[12].mxu0  ;;  %11035 = vmatprep.subr.bf16.mxu1 %v11034_v18 }
 0x40c   :  { %v10546_v19 = vpop.f32.mrb[13].mxu0  ;;  %11037 = vmatpush3.bf16.msra.mxu1 %v11034_v18 }
 0x410   :  { %v12281_v28 = vpop.f32.mrb[14].mxu0 }
 0x411   :  { %v10556_v33 = vpop.f32.mrb[15].mxu0 }
 0x413   :  { %3922 = vperm.xlu1 %11125, %v11189_v41  }
 0x414   :  { %v12283_v35 = vpop.f32.mrb[16].mxu0 }
 0x415   :  { %v10566_v48 = vpop.f32.mrb[17].mxu0 }
 0x417   :  { %3850 = vperm.xlu1 %11125, %v11191_v49  }
 0x41b   :  { %3855 = vperm.xlu1 %11125, %v11193_v43  }
 0x41e   :  { %v3281_v17 = vpop.f32.mrb[18].mxu1 }
 0x41f   :  { %v10611_v32 = vpop.f32.mrb[19].mxu1  ;;  %3937 = vperm.xlu1 %11125, %v11195_v23  }
 0x422   :  { %v12285_v9 = vpop.f32.mrb[20].mxu1 }
 0x423   :  { %3865 = vperm.xlu1 %11125, %v11197_v37   ;;  %v10621_v25 = vpop.f32.mrb[21].mxu1 }
 0x426   :  { %v12287_v15 = vpop.f32.mrb[22].mxu1 }
 0x427   :  { %v10631_v22 = vpop.f32.mrb[23].mxu1 }
 0x42a   :  { %v3354_v42 = vpop.f32.mrb[18].mxu0  ;;  %v12289_v50 = vpop.f32.mrb[24].mxu1 }
 0x42b   :  { %v10616_v27 = vpop.f32.mrb[19].mxu0  ;;  %v10641_v29 = vpop.f32.mrb[25].mxu1 }
 0x42e   :  { %v12291_v61 = vpop.f32.mrb[20].mxu0 }
 0x42f   :  { %v10626_v38 = vpop.f32.mrb[21].mxu0 }
 0x432   :  { %v12293_v2 = vpop.f32.mrb[22].mxu0 }
 0x433   :  { %v10636_v13 = vpop.f32.mrb[23].mxu0 }
 0x436   :  { %v12295_v51 = vpop.f32.mrb[24].mxu0 }
 0x437   :  { %v10646_v31 = vpop.f32.mrb[25].mxu0 }
 0x439   :  { %v420_v10 = vpop.xlane.xlu0 %419 }
 0x43a   :  { %v455_v45 = vmul.f32 %v420_v10, %v11819_v8  ;;  %v456_v16 = vmul.f32 %v420_v10, %v11858_v24  ;;  %v457_v34 = vmul.f32 %v420_v10, %v11851_v52  ;;  %v458_v55 = vmul.f32 %v420_v10, %v11868_v3 }
 0x43d   :  { %v404_v21 = vpop.xlane.xlu0 %403 }
 0x43e   :  { %v447_v19 = vmul.f32 %v404_v21, %v11819_v8  ;;  %v449_v48 = vmul.f32 %v404_v21, %v11851_v52 }
 0x442   :  { %v443_v40 = vpop.xlane.xlu1 %442 }
 0x443   :  { %v463_v58 = vmul.f32 %v443_v40, %v11798_v46  ;;  %v464_v1 = vmul.f32 %v443_v40, %v11822_v12  ;;  %v465_v39 = vmul.f32 %v443_v40, %v11805_v26  ;;  %v466_v44 = vmul.f32 %v443_v40, %v11833_v36  ;;  %v4134_v46 = vld [vmem:[%s13532_s7 + $0x10] sm:$0xff]  ;;  %v4135_v26 = vld [vmem:[%s13532_s7 + $0x18] sm:$0xff] }
 0x444   :  { %v448_v12 = vmul.f32 %v404_v21, %v11858_v24  ;;  %v11038_v8 = vpack.c.bf16 %v4135_v26, %v4134_v46 }
 0x445   :  { %v471_v62 = vadd.f32 %v463_v58, %v455_v45  ;;  %v472_v5 = vadd.f32 %v464_v1, %v456_v16  ;;  %v473_v54 = vadd.f32 %v465_v39, %v457_v34  ;;  %v3903_v4 = vpop.permute.xlu0 %3902  ;;  %v474_v33 = vadd.f32 %v466_v44, %v458_v55 }
 0x446   :  { %v3908_v20 = vpop.permute.xlu1 %3907  ;;  %v3940_v36 = vmul.f32 %v3903_v4, %v3281_v17  ;;  %11039 = vmatprep.subr.bf16.mxu1 %v11038_v8  ;;  %v450_v17 = vmul.f32 %v404_v21, %v11868_v3 }
 0x447   :  { %v3956_v41 = vrot.slane %v471_v62, 7  ;;  %v3957_v53 = vrot.slane %v472_v5, 7  ;;  %v3958_v49 = vrot.slane %v473_v54, 7  ;;  %v3941_v37 = vmul.f32 %v3908_v20, %v3354_v42  ;;  %11041 = vmatpush3.bf16.msra.mxu1 %v11038_v8 }
 0x448   :  { %v4012_v32 = vrot.slane %v3940_v36, 7  ;;  %v3959_v22 = vrot.slane %v474_v33, 7  ;;  %10692 = vmatprep.subr.mxu1 %v13581_v30 }
 0x449   :  { %v3972_v43 = vadd.f32 %v3956_v41, %v447_v19  ;;  %v3973_v23 = vadd.f32 %v3957_v53, %v448_v12  ;;  %v3974_v24 = vadd.f32 %v3958_v49, %v449_v48  ;;  %v4013_v31 = vrot.slane %v3941_v37, 7 }
 0x44a   :  { %v3831_v25 = vpop.permute.xlu1 %3830  ;;  %v3975_v45 = vadd.f32 %v3959_v22, %v450_v17 }
 0x44b   :  { %v3868_v27 = vmul.f32 %v3831_v25, %v12257_v14  ;;  %v3980_v29 = vmul.f32 0.5, %v3972_v43  ;;  %v3981_v38 = vmul.f32 0.5, %v3973_v23  ;;  %v3982_v40 = vmul.f32 0.5, %v3974_v24 }
 0x44c   :  { %v3983_v39 = vmul.f32 0.5, %v3975_v45  ;;  %v13591_v45 = vld [vmem:[#allocation10_spill] sm:$0xff] }
 0x44d   :  { %v4028_v13 = vadd.f32 %v4012_v32, %v3868_v27  ;;  %v3988_v52 = vsel %vm527_vm6, %v447_v19, %v3980_v29  ;;  %v3989_v14 = vsel %vm527_vm6, %v448_v12, %v3981_v38 }
 0x44e   :  { %v3836_v10 = vpop.permute.xlu1 %3835  ;;  %v3996_v42 = vsel %vm172_vm3, %v3988_v52, %v3956_v41  ;;  %v3997_v60 = vsel %vm172_vm3, %v3989_v14, %v3957_v53  ;;  %v3991_v54 = vsel %vm527_vm6, %v450_v17, %v3983_v39  ;;  %v13593_v14 = vld [vmem:[#allocation11_spill] sm:$0xff] }
 0x44f   :  { %v4036_v16 = vmul.f32 0.5, %v4028_v13  ;;  %v3869_v34 = vmul.f32 %v3836_v10, %v12267_v56  ;;  %4068 = vrot.lane.b32.xlu0 %v3996_v42, %s11349_s25  ;;  %v3990_v56 = vsel %vm527_vm6, %v449_v48, %v3982_v40  ;;  %v3999_v4 = vsel %vm172_vm3, %v3991_v54, %v3959_v22  ;;  %v13590_v42 = vld [vmem:[#allocation9_spill] sm:$0xff] }
 0x450   :  { %v3998_v18 = vsel %vm172_vm3, %v3990_v56, %v3958_v49 }
 0x451   :  { %v4029_v7 = vadd.f32 %v4013_v31, %v3869_v34  ;;  %v4044_v3 = vsel %vm527_vm6, %v3868_v27, %v4036_v16 }
 0x452   :  { %v3913_v21 = vpop.permute.xlu1 %3912  ;;  %v4052_v58 = vsel %vm172_vm3, %v4044_v3, %v4012_v32 }
 0x453   :  { %v4037_v1 = vmul.f32 0.5, %v4029_v7  ;;  %4070 = vrot.lane.b32.xlu0 %v3997_v60, %s11349_s25  ;;  %4100 = vrot.lane.b32.xlu1 %v4052_v58, %s11350_s26  ;;  %v3942_v5 = vmul.f32 %v3913_v21, %v12285_v9  ;;  %v13594_v7 = vld [vmem:[#allocation8_spill] sm:$0xff] }
 0x455   :  { %v4045_v44 = vsel %vm527_vm6, %v3869_v34, %v4037_v1  ;;  %v4014_v20 = vrot.slane %v3942_v5, 7  ;;  %v13592_v34 = vld [vmem:[#allocation12_spill] sm:$0xff] }
 0x456   :  { %v3918_v55 = vpop.permute.xlu1 %3917  ;;  %v4053_v62 = vsel %vm172_vm3, %v4045_v44, %v4013_v31 }
 0x457   :  { %4072 = vrot.lane.b32.xlu0 %v3998_v18, %s11349_s25  ;;  %4102 = vrot.lane.b32.xlu1 %v4053_v62, %s11350_s26  ;;  %v3943_v33 = vmul.f32 %v3918_v55, %v12291_v61 }
 0x459   :  { %v4015_v36 = vrot.slane %v3943_v33, 7 }
 0x45a   :  { %v3841_v19 = vpop.permute.xlu1 %3840 }
 0x45b   :  { %v3870_v46 = vmul.f32 %v3841_v19, %v12259_v57  ;;  %4074 = vrot.lane.b32.xlu0 %v3999_v4, %s11349_s25 }
 0x45d   :  { %v4030_v26 = vadd.f32 %v4014_v20, %v3870_v46 }
 0x45e   :  { %v3846_v12 = vpop.permute.xlu1 %3845 }
 0x45f   :  { %v4038_v9 = vmul.f32 0.5, %v4030_v26  ;;  %v3871_v41 = vmul.f32 %v3846_v12, %v12278_v0 }
 0x461   :  { %v4031_v53 = vadd.f32 %v4015_v36, %v3871_v41  ;;  %v4046_v49 = vsel %vm527_vm6, %v3870_v46, %v4038_v9 }
 0x462   :  { %v4054_v8 = vsel %vm172_vm3, %v4046_v49, %v4014_v20 }
 0x463   :  { %v4039_v48 = vmul.f32 0.5, %v4031_v53  ;;  %4104 = vrot.lane.b32.xlu1 %v4054_v8, %s11350_s26 }
 0x465   :  { %v4047_v61 = vsel %vm527_vm6, %v3871_v41, %v4039_v48 }
 0x466   :  { %v4055_v57 = vsel %vm172_vm3, %v4047_v61, %v4015_v36 }
 0x467   :  { %4106 = vrot.lane.b32.xlu1 %v4055_v57, %s11350_s26 }
 0x472   :  { %v446_v43 = vpop.xlane.xlu0 %445 }
 0x473   :  { %v467_v17 = vmul.f32 %v446_v43, %v11812_v59  ;;  %v468_v13 = vmul.f32 %v446_v43, %v11842_v47  ;;  %v469_v52 = vmul.f32 %v446_v43, %v11825_v6  ;;  %v470_v3 = vmul.f32 %v446_v43, %v13594_v7 }
 0x476   :  { %v407_v23 = vpop.xlane.xlu0 %406 }
 0x477   :  { %v451_v47 = vmul.f32 %v407_v23, %v13590_v42  ;;  %v452_v6 = vmul.f32 %v407_v23, %v13591_v45  ;;  %v453_v18 = vmul.f32 %v407_v23, %v13592_v34  ;;  %v454_v36 = vmul.f32 %v407_v23, %v13593_v14 }
 0x47e   :  { %v3928_v32 = vpop.permute.xlu0 %3927 }
 0x47f   :  { %v3945_v54 = vmul.f32 %v3928_v32, %v12293_v2 }
 0x481   :  { %v4017_v41 = vrot.slane %v3945_v54, 7 }
 0x482   :  { %v3933_v37 = vpop.permute.xlu0 %3932 }
 0x483   :  { %v3946_v0 = vmul.f32 %v3933_v37, %v12289_v50 }
 0x485   :  { %v4018_v22 = vrot.slane %v3946_v0, 7 }
 0x486   :  { %v3861_v25 = vpop.permute.xlu0 %3860 }
 0x487   :  { %v3874_v27 = vmul.f32 %v3861_v25, %v12275_v63 }
 0x489   :  { %v4034_v29 = vadd.f32 %v4018_v22, %v3874_v27 }
 0x48b   :  { %v4042_v38 = vmul.f32 0.5, %v4034_v29 }
 0x48d   :  { %v4050_v24 = vsel %vm527_vm6, %v3874_v27, %v4042_v38 }
 0x48e   :  { %v12359_v10 = vsel %vm172_vm3, %v4050_v24, %v4018_v22 }
 0x48f   :  { %v423_v31 = vpop.xlane.xlu1 %422 }
 0x490   :  { %v459_v50 = vmul.f32 %v423_v31, %v13590_v42  ;;  %v460_v16 = vmul.f32 %v423_v31, %v13591_v45  ;;  %v461_v63 = vmul.f32 %v423_v31, %v13592_v34  ;;  %v462_v40 = vmul.f32 %v423_v31, %v13593_v14 }
 0x492   :  { %v475_v21 = vadd.f32 %v467_v17, %v459_v50  ;;  %v476_v59 = vadd.f32 %v468_v13, %v460_v16  ;;  %v477_v60 = vadd.f32 %v469_v52, %v461_v63  ;;  %v478_v1 = vadd.f32 %v470_v3, %v462_v40 }
 0x493   :  { %v3923_v58 = vpop.permute.xlu1 %3922 }
 0x494   :  { %v3944_v56 = vmul.f32 %v3923_v58, %v12287_v15  ;;  %v3960_v39 = vrot.slane %v475_v21, 7  ;;  %v3961_v44 = vrot.slane %v476_v59, 7  ;;  %v3962_v55 = vrot.slane %v477_v60, 7 }
 0x495   :  { %v3963_v20 = vrot.slane %v478_v1, 7 }
 0x496   :  { %v3976_v62 = vadd.f32 %v3960_v39, %v451_v47  ;;  %v3977_v5 = vadd.f32 %v3961_v44, %v452_v6  ;;  %v4016_v19 = vrot.slane %v3944_v56, 7  ;;  %v3978_v12 = vadd.f32 %v3962_v55, %v453_v18 }
 0x497   :  { %v3851_v4 = vpop.permute.xlu1 %3850  ;;  %v3979_v8 = vadd.f32 %v3963_v20, %v454_v36 }
 0x498   :  { %v3872_v33 = vmul.f32 %v3851_v4, %v12265_v11  ;;  %v3984_v46 = vmul.f32 0.5, %v3976_v62  ;;  %v3985_v26 = vmul.f32 0.5, %v3977_v5  ;;  %v3986_v61 = vmul.f32 0.5, %v3978_v12 }
 0x499   :  { %v3987_v22 = vmul.f32 0.5, %v3979_v8 }
 0x49a   :  { %v4032_v15 = vadd.f32 %v4016_v19, %v3872_v33  ;;  %v3992_v9 = vsel %vm527_vm6, %v451_v47, %v3984_v46  ;;  %v3993_v11 = vsel %vm527_vm6, %v452_v6, %v3985_v26 }
 0x49b   :  { %v3856_v53 = vpop.permute.xlu1 %3855  ;;  %v4000_v49 = vsel %vm172_vm3, %v3992_v9, %v3960_v39  ;;  %v4001_v37 = vsel %vm172_vm3, %v3993_v11, %v3961_v44 }
 0x49c   :  { %v4040_v48 = vmul.f32 0.5, %v4032_v15  ;;  %v3873_v2 = vmul.f32 %v3856_v53, %v12281_v28  ;;  %4076 = vrot.lane.b32.xlu0 %v4000_v49, %s11349_s25  ;;  %v3994_v28 = vsel %vm527_vm6, %v453_v18, %v3986_v61 }
 0x49d   :  { %v4002_v38 = vsel %vm172_vm3, %v3994_v28, %v3962_v55 }
 0x49e   :  { %v4033_v57 = vadd.f32 %v4017_v41, %v3873_v2  ;;  %v4048_v43 = vsel %vm527_vm6, %v3872_v33, %v4040_v48 }
 0x49f   :  { %v3938_v23 = vpop.permute.xlu1 %3937  ;;  %v4056_v32 = vsel %vm172_vm3, %v4048_v43, %v4016_v19  ;;  %v10087_v19 = vld [vmem:[%s13533_s8] ss:$0 sm:$0xff]  ;;  %s11353_s8 = smov 8  }
 0x4a0   :  { %v4041_v0 = vmul.f32 0.5, %v4033_v57  ;;  %v3947_v25 = vmul.f32 %v3938_v23, %v12295_v51  ;;  %4108 = vrot.lane.b32.xlu1 %v4056_v32, %s11350_s26  ;;  %4078 = vrot.lane.b32.xlu0 %v4001_v37, %s11349_s25  ;;  %v3995_v51 = vsel %vm527_vm6, %v454_v36, %v3987_v22 }
 0x4a1   :  { %v4003_v31 = vsel %vm172_vm3, %v3995_v51, %v3963_v20 }
 0x4a2   :  { %v4049_v27 = vsel %vm527_vm6, %v3873_v2, %v4041_v0  ;;  %v4019_v17 = vrot.slane %v3947_v25, 7 }
 0x4a3   :  { %v3866_v29 = vpop.permute.xlu1 %3865  ;;  %v4057_v24 = vsel %vm172_vm3, %v4049_v27, %v4017_v41 }
 0x4a4   :  { %v3875_v13 = vmul.f32 %v3866_v29, %v12283_v35  ;;  %4080 = vrot.lane.b32.xlu0 %v4002_v38, %s11349_s25  ;;  %4110 = vrot.lane.b32.xlu1 %v4057_v24, %s11350_s26 }
 0x4a6   :  { %v4035_v52 = vadd.f32 %v4019_v17, %v3875_v13 }
 0x4a8   :  { %v4043_v42 = vmul.f32 0.5, %v4035_v52  ;;  %4082 = vrot.lane.b32.xlu0 %v4003_v31, %s11349_s25  ;;  %4112 = vrot.lane.b32.xlu1 %v12359_v10, %s11350_s26 }
 0x4aa   :  { %v4051_v50 = vsel %vm527_vm6, %v3875_v13, %v4043_v42  ;;  %vm9907_vm6 = vcmask 523264  }
 0x4ab   :  { %v4059_v45 = vsel %vm172_vm3, %v4051_v50, %v4019_v17  ;;  %vm9865_vm3 = vcmask 392192  }
 0x4ac   :  { %4114 = vrot.lane.b32.xlu1 %v4059_v45, %s11350_s26 }
 0x4c1   :  { %v4069_v35 = vpop.permute.xlu0 %4068 }
 0x4c5   :  { %v4101_v16 = vpop.permute.xlu1 %4100  ;;  %v4071_v63 = vpop.permute.xlu0 %4070 }
 0x4c6   :  { %v4124_v34 = vsel %vm401_vm2, %v4069_v35, %v4101_v16 }
 0x4c7   :  { %10655 = vmatprep.mubr.msk.f32.mxu1 %vm48_vm0, %v4124_v34 }
 0x4c9   :  { %v4103_v14 = vpop.permute.xlu1 %4102  ;;  %v4073_v7 = vpop.permute.xlu0 %4072 }
 0x4ca   :  { %v4125_v40 = vsel %vm401_vm2, %v4071_v63, %v4103_v14 }
 0x4cb   :  { %10656 = vmatmul.mubr.msk.f32.vlgmr.msra.gmra.mrb[26].mxu1 %vm48_vm0, %v4125_v40 }
 0x4cd   :  { %v4075_v21 = vpop.permute.xlu0 %4074 }
 0x4d5   :  { %v4105_v10 = vpop.permute.xlu1 %4104 }
 0x4d6   :  { %v4126_v3 = vsel %vm401_vm2, %v4073_v7, %v4105_v10 }
 0x4d7   :  { %10658 = vmatprep.mubr.msk.f32.mxu1 %vm48_vm0, %v4126_v3 }
 0x4d9   :  { %v4107_v59 = vpop.permute.xlu1 %4106 }
 0x4da   :  { %v4127_v60 = vsel %vm401_vm2, %v4075_v21, %v4107_v59 }
 0x4db   :  { %10659 = vmatmul.mubr.msk.f32.gmra.mrb[28].mxu1 %vm48_vm0, %v4127_v60 }
 0x50e   :  { %v4077_v47 = vpop.permute.xlu0 %4076 }
 0x512   :  { %v4109_v6 = vpop.permute.xlu1 %4108  ;;  %v4079_v58 = vpop.permute.xlu0 %4078 }
 0x513   :  { %v4128_v1 = vsel %vm401_vm2, %v4077_v47, %v4109_v6 }
 0x514   :  { %10661 = vmatprep.mubr.msk.f32.mxu1 %vm48_vm0, %v4128_v1 }
 0x516   :  { %v4111_v56 = vpop.permute.xlu1 %4110  ;;  %v4081_v44 = vpop.permute.xlu0 %4080 }
 0x517   :  { %v4129_v39 = vsel %vm401_vm2, %v4079_v58, %v4111_v56 }
 0x518   :  { %10662 = vmatmul.mubr.msk.f32.gmra.mrb[30].mxu1 %vm48_vm0, %v4129_v39 }
 0x51a   :  { %v4113_v55 = vpop.permute.xlu1 %4112  ;;  %v4083_v62 = vpop.permute.xlu0 %4082 }
 0x51b   :  { %v4130_v18 = vsel %vm401_vm2, %v4081_v44, %v4113_v55 }
 0x51c   :  { %10664 = vmatprep.mubr.msk.f32.mxu1 %vm48_vm0, %v4130_v18 }
 0x51e   :  { %v4115_v5 = vpop.permute.xlu1 %4114 }
 0x51f   :  { %v4131_v54 = vsel %vm401_vm2, %v4083_v62, %v4115_v5 }
 0x520   :  { %10665 = vmatmul.mubr.msk.f32.gmra.mrb[32].mxu1 %vm48_vm0, %v4131_v54 }
 0x521   :  { %10694 = vmatprep.mubr.msk.f32.mxu1 %vm11340_vm1, %v13581_v30 }
 0x59e   :  { %v10657_v4 = vpop.f32.mrb[26].mxu1 }
 0x59f   :  { %v4233_v20 = vpop.f32.mrb[27].mxu1  ;;  %v12426_v46 = vadd.f32 %v10657_v4, %v10087_v19 }
 0x5a0   :  { %v12420_v33 = vadd.f32 %v10087_v19, %v4233_v20 }
 0x5a2   :  { %4296 = vrot.lane.b32.xlu1 %v12420_v33, %s11341_s19  ;;  %4280 = vrot.lane.b32.xlu0 %v12420_v33, %s11351_s18 }
 0x5a6   :  { %4282 = vrot.lane.b32.xlu1 %v12426_v46, %s11351_s18  ;;  %4312 = vrot.lane.b32.xlu0 %v12420_v33, %s11352_s1 }
 0x5aa   :  { %4314 = vrot.lane.b32.xlu1 %v12426_v46, %s11352_s1  ;;  %4298 = vrot.lane.b32.xlu0 %v12426_v46, %s11341_s19 }
 0x5ae   :  { %v10660_v26 = vpop.f32.mrb[28].mxu1 }
 0x5af   :  { %v4243_v12 = vpop.f32.mrb[29].mxu1  ;;  %v12442_v15 = vadd.f32 %v10660_v26, %v10087_v19 }
 0x5b0   :  { %v12436_v36 = vadd.f32 %v10087_v19, %v4243_v12 }
 0x5b2   :  { %4300 = vrot.lane.b32.xlu1 %v12436_v36, %s11341_s19  ;;  %4284 = vrot.lane.b32.xlu0 %v12436_v36, %s11351_s18 }
 0x5b6   :  { %4286 = vrot.lane.b32.xlu1 %v12442_v15, %s11351_s18  ;;  %4316 = vrot.lane.b32.xlu0 %v12436_v36, %s11352_s1 }
 0x5ba   :  { %4318 = vrot.lane.b32.xlu1 %v12442_v15, %s11352_s1  ;;  %4302 = vrot.lane.b32.xlu0 %v12442_v15, %s11341_s19 }
 0x5eb   :  { %v10663_v9 = vpop.f32.mrb[30].mxu1 }
 0x5ec   :  { %v4253_v41 = vpop.f32.mrb[31].mxu1  ;;  %v12458_v49 = vadd.f32 %v10663_v9, %v10087_v19 }
 0x5ed   :  { %v12452_v53 = vadd.f32 %v10087_v19, %v4253_v41 }
 0x5ef   :  { %4304 = vrot.lane.b32.xlu1 %v12452_v53, %s11341_s19  ;;  %4288 = vrot.lane.b32.xlu0 %v12452_v53, %s11351_s18 }
 0x5f3   :  { %4290 = vrot.lane.b32.xlu1 %v12458_v49, %s11351_s18  ;;  %4320 = vrot.lane.b32.xlu0 %v12452_v53, %s11352_s1  ;;  %v10666_v8 = vpop.f32.mrb[32].mxu1 }
 0x5f4   :  { %v4263_v48 = vpop.f32.mrb[33].mxu1  ;;  %v12478_v11 = vadd.f32 %v10666_v8, %v10087_v19 }
 0x5f5   :  { %v12468_v2 = vadd.f32 %v10087_v19, %v4263_v48 }
 0x5f7   :  { %4322 = vrot.lane.b32.xlu1 %v12458_v49, %s11352_s1  ;;  %4306 = vrot.lane.b32.xlu0 %v12458_v49, %s11341_s19 }
 0x5fb   :  { %4328 = vrot.lane.b32.xlu1 %v12420_v33, %s11347_s24  ;;  %4292 = vrot.lane.b32.xlu0 %v12468_v2, %s11351_s18 }
 0x5ff   :  { %4324 = vrot.lane.b32.xlu1 %v12468_v2, %s11352_s1  ;;  %4308 = vrot.lane.b32.xlu0 %v12468_v2, %s11341_s19 }
 0x603   :  { %4294 = vrot.lane.b32.xlu1 %v12478_v11, %s11351_s18 }
 0x607   :  { %4310 = vrot.lane.b32.xlu1 %v12478_v11, %s11341_s19 }
 0x614   :  { %v12484_v61 = vpop.permute.xlu1 %4296  ;;  %v12486_v57 = vpop.permute.xlu0 %4280 }
 0x615   :  { %4404 = vrot.lane.b32.xlu0 %v12486_v57, %s11347_s24 }
 0x618   :  { %v12490_v43 = vpop.permute.xlu0 %4312  ;;  %v12496_v23 = vpop.permute.xlu1 %4282 }
 0x619   :  { %4480 = vrot.lane.b32.xlu0 %v12484_v61, %s11347_s24  ;;  %4556 = vrot.lane.b32.xlu1 %v12490_v43, %s11347_s24 }
 0x61c   :  { %v12502_v32 = vpop.permute.xlu1 %4314  ;;  %v12504_v37 = vpop.permute.xlu0 %4298 }
 0x61d   :  { %4326 = vrot.lane.b32.xlu0 %v12478_v11, %s11352_s1  ;;  %4708 = vrot.lane.b32.xlu1 %v12496_v23, %s11347_s24 }
 0x621   :  { %4632 = vrot.lane.b32.xlu0 %v12426_v46, %s11347_s24  ;;  %4860 = vrot.lane.b32.xlu1 %v12502_v32, %s11347_s24 }
 0x624   :  { %v12510_v0 = vpop.permute.xlu1 %4300  ;;  %v12512_v25 = vpop.permute.xlu0 %4284 }
 0x625   :  { %4784 = vrot.lane.b32.xlu0 %v12504_v37, %s11347_s24  ;;  %5012 = vrot.lane.b32.xlu1 %v12512_v25, %s11347_s24 }
 0x628   :  { %v12518_v28 = vpop.permute.xlu0 %4316  ;;  %v12524_v22 = vpop.permute.xlu1 %4286 }
 0x629   :  { %4936 = vrot.lane.b32.xlu0 %v12436_v36, %s11347_s24  ;;  %5164 = vrot.lane.b32.xlu1 %v12518_v28, %s11347_s24 }
 0x62c   :  { %v12530_v27 = vpop.permute.xlu1 %4318  ;;  %v12536_v29 = vpop.permute.xlu0 %4302 }
 0x62d   :  { %5088 = vrot.lane.b32.xlu0 %v12510_v0, %s11347_s24  ;;  %5316 = vrot.lane.b32.xlu1 %v12524_v22, %s11347_s24 }
 0x631   :  { %5240 = vrot.lane.b32.xlu0 %v12442_v15, %s11347_s24  ;;  %5468 = vrot.lane.b32.xlu1 %v12530_v27, %s11347_s24 }
 0x635   :  { %5392 = vrot.lane.b32.xlu0 %v12536_v29, %s11347_s24 }
 0x639   :  { %5544 = vrot.lane.b32.xlu0 %v12452_v53, %s11347_s24 }
 0x661   :  { %v12542_v38 = vpop.permute.xlu1 %4304  ;;  %v12544_v24 = vpop.permute.xlu0 %4288 }
 0x662   :  { %5696 = vrot.lane.b32.xlu0 %v12542_v38, %s11347_s24  ;;  %5620 = vrot.lane.b32.xlu1 %v12544_v24, %s11347_s24 }
 0x665   :  { %v12550_v17 = vpop.permute.xlu1 %4290  ;;  %v12552_v13 = vpop.permute.xlu0 %4320 }
 0x666   :  { %5848 = vrot.lane.b32.xlu0 %v12458_v49, %s11347_s24  ;;  %5772 = vrot.lane.b32.xlu1 %v12552_v13, %s11347_s24 }
 0x669   :  { %v12558_v51 = vpop.permute.xlu1 %4322  ;;  %v12560_v52 = vpop.permute.xlu0 %4306 }
 0x66a   :  { %5924 = vrot.lane.b32.xlu1 %v12550_v17, %s11347_s24  ;;  %6000 = vrot.lane.b32.xlu0 %v12560_v52, %s11347_s24 }
 0x66d   :  { %v4329_v31 = vpop.permute.xlu1 %4328  ;;  %v12566_v42 = vpop.permute.xlu0 %4292 }
 0x66e   :  { %10668 = vmatpush3.xpose.msk.msra.mxu0 %vm1383_vm10, %v4329_v31  ;;  %6076 = vrot.lane.b32.xlu1 %v12558_v51, %s11347_s24 }
 0x66f   :  { %6152 = vrot.lane.b32.xlu0 %v12468_v2, %s11347_s24  ;;  %10672 = vmatprep.subr.mxu0 %v13581_v30 }
 0x671   :  { %10670 = vmatmul.mubr.msk.f32.vlgmr.msra.gmra.mrb[26].mxu0 %vm1383_vm10, %v12420_v33  ;;  %v12576_v50 = vpop.permute.xlu1 %4324  ;;  %v12578_v45 = vpop.permute.xlu0 %4308 }
 0x672   :  { %6228 = vrot.lane.b32.xlu1 %v12566_v42, %s11347_s24  ;;  %10674 = vmatprep.mubr.msk.f32.mxu0 %vm11340_vm1, %v13581_v30 }
 0x673   :  { %6304 = vrot.lane.b32.xlu0 %v12578_v45, %s11347_s24 }
 0x675   :  { %v12586_v35 = vpop.permute.xlu1 %4294 }
 0x676   :  { %6380 = vrot.lane.b32.xlu1 %v12576_v50, %s11347_s24 }
 0x677   :  { %6456 = vrot.lane.b32.xlu0 %v12478_v11, %s11347_s24 }
 0x679   :  { %v12592_v16 = vpop.permute.xlu1 %4310 }
 0x67a   :  { %6532 = vrot.lane.b32.xlu1 %v12586_v35, %s11347_s24 }
 0x67b   :  { %6608 = vrot.lane.b32.xlu0 %v12592_v16, %s11347_s24 }
 0x67f   :  { %7220 = vrot.lane.b32.xlu0 %v12486_v57, %s11349_s25 }
 0x683   :  { %7372 = vrot.lane.b32.xlu0 %v12490_v43, %s11349_s25 }
 0x687   :  { %7524 = vrot.lane.b32.xlu0 %v12496_v23, %s11349_s25  ;;  %v4405_v34 = vpop.permute.xlu0 %4404 }
 0x688   :  { %10673 = vmatpush3.xpose.msk.msra.mxu0 %vm1383_vm10, %v4405_v34 }
 0x689   :  { %10677 = vmatprep.subr.mxu0 %v13581_v30 }
 0x68b   :  { %7676 = vrot.lane.b32.xlu0 %v12502_v32, %s11349_s25  ;;  %v4557_v63 = vpop.permute.xlu1 %4556  ;;  %10675 = vmatmul.mubr.msk.f32.vlgmr.msra.gmra.mrb[28].mxu0 %vm1383_vm10, %v12486_v57  ;;  %v4481_v14 = vpop.permute.xlu0 %4480 }
 0x68c   :  { %10678 = vmatpush3.xpose.msk.msra.mxu0 %vm1383_vm10, %v4481_v14  ;;  %10679 = vmatprep.mubr.msk.f32.mxu0 %vm11340_vm1, %v13581_v30 }
 0x68d   :  { %10682 = vmatprep.subr.mxu0 %v13581_v30 }
 0x68f   :  { %7828 = vrot.lane.b32.xlu0 %v12512_v25, %s11349_s25  ;;  %v4709_v40 = vpop.permute.xlu1 %4708  ;;  %10680 = vmatmul.mubr.msk.f32.vlgmr.msra.gmra.mrb[30].mxu0 %vm1383_vm10, %v12484_v61  ;;  %v12618_v7 = vpop.permute.xlu0 %4326 }
 0x690   :  { %10683 = vmatpush3.xpose.msk.msra.mxu0 %vm1383_vm10, %v4557_v63  ;;  %10693 = vmatpush3.xpose.msk.msra.mxu1 %vm1383_vm10, %v4709_v40 }
 0x691   :  { %6684 = vrot.lane.b32.xlu1 %v12618_v7, %s11347_s24  ;;  %10684 = vmatprep.mubr.msk.f32.mxu0 %vm11340_vm1, %v13581_v30 }
 0x692   :  { %10702 = vmatprep.subr.mxu1 %v13581_v30  ;;  %10687 = vmatprep.subr.mxu0 %v13581_v30 }
 0x693   :  { %7980 = vrot.lane.b32.xlu0 %v12518_v28, %s11349_s25  ;;  %10695 = vmatmul.mubr.msk.f32.vlgmr.msra.gmra.mrb[34].mxu1 %vm1383_vm10, %v12496_v23  ;;  %v4861_v10 = vpop.permute.xlu1 %4860  ;;  %v4633_v3 = vpop.permute.xlu0 %4632 }
 0x694   :  { %10685 = vmatmul.mubr.msk.f32.vlgmr.msra.gmra.mrb[32].mxu0 %vm1383_vm10, %v12490_v43  ;;  %10703 = vmatpush3.xpose.msk.msra.mxu1 %vm1383_vm10, %v4861_v10 }
 0x695   :  { %7144 = vrot.lane.b32.xlu1 %v12420_v33, %s11349_s25  ;;  %10688 = vmatpush3.xpose.msk.msra.mxu0 %vm1383_vm10, %v4633_v3 }
 0x696   :  { %10704 = vmatprep.mubr.msk.f32.mxu1 %vm11340_vm1, %v13581_v30  ;;  %10689 = vmatprep.mubr.msk.f32.mxu0 %vm11340_vm1, %v13581_v30 }
 0x697   :  { %8132 = vrot.lane.b32.xlu0 %v12524_v22, %s11349_s25  ;;  %10705 = vmatmul.mubr.msk.f32.vlgmr.msra.gmra.mrb[36].mxu1 %vm1383_vm10, %v12502_v32  ;;  %v5013_v21 = vpop.permute.xlu1 %5012  ;;  %v4785_v59 = vpop.permute.xlu0 %4784 }
 0x698   :  { %10712 = vmatprep.subr.mxu1 %v13581_v30  ;;  %10690 = vmatmul.mubr.msk.f32.vlgmr.msra.gmra.mrb[34].mxu0 %vm1383_vm10, %v12426_v46 }
 0x699   :  { %10697 = vmatprep.subr.mxu0 %v13581_v30  ;;  %10713 = vmatpush3.xpose.msk.msra.mxu1 %vm1383_vm10, %v5013_v21 }
 0x69a   :  { %7296 = vrot.lane.b32.xlu1 %v12484_v61, %s11349_s25  ;;  %10698 = vmatpush3.xpose.msk.msra.mxu0 %vm1383_vm10, %v4785_v59 }
 0x69b   :  { %10714 = vmatprep.mubr.msk.f32.mxu1 %vm11340_vm1, %v13581_v30  ;;  %8284 = vrot.lane.b32.xlu0 %v12530_v27, %s11349_s25  ;;  %v5165_v60 = vpop.permute.xlu1 %5164  ;;  %v4937_v47 = vpop.permute.xlu0 %4936 }
 0x69c   :  { %10699 = vmatprep.mubr.msk.f32.mxu0 %vm11340_vm1, %v13581_v30  ;;  %10715 = vmatmul.mubr.msk.f32.vlgmr.msra.gmra.mrb[38].mxu1 %vm1383_vm10, %v12512_v25 }
 0x69d   :  { %10722 = vmatprep.subr.mxu1 %v13581_v30  ;;  %10700 = vmatmul.mubr.msk.f32.vlgmr.msra.gmra.mrb[36].mxu0 %vm1383_vm10, %v12504_v37 }
 0x69e   :  { %10707 = vmatprep.subr.mxu0 %v13581_v30  ;;  %10723 = vmatpush3.xpose.msk.msra.mxu1 %vm1383_vm10, %v5165_v60 }
 0x69f   :  { %7448 = vrot.lane.b32.xlu1 %v12426_v46, %s11349_s25  ;;  %10708 = vmatpush3.xpose.msk.msra.mxu0 %vm1383_vm10, %v4937_v47  ;;  %v5317_v6 = vpop.permute.xlu1 %5316  ;;  %v5089_v58 = vpop.permute.xlu0 %5088 }
 0x6a0   :  { %10724 = vmatprep.mubr.msk.f32.mxu1 %vm11340_vm1, %v13581_v30  ;;  %8436 = vrot.lane.b32.xlu0 %v12544_v24, %s11349_s25 }
 0x6a1   :  { %10709 = vmatprep.mubr.msk.f32.mxu0 %vm11340_vm1, %v13581_v30  ;;  %10725 = vmatmul.mubr.msk.f32.vlgmr.msra.gmra.mrb[40].mxu1 %vm1383_vm10, %v12518_v28 }
 0x6a2   :  { %10732 = vmatprep.subr.mxu1 %v13581_v30  ;;  %10710 = vmatmul.mubr.msk.f32.vlgmr.msra.gmra.mrb[38].mxu0 %vm1383_vm10, %v12436_v36 }
 0x6a3   :  { %10717 = vmatprep.subr.mxu0 %v13581_v30  ;;  %10733 = vmatpush3.xpose.msk.msra.mxu1 %vm1383_vm10, %v5317_v6  ;;  %v5241_v1 = vpop.permute.xlu0 %5240  ;;  %v5469_v56 = vpop.permute.xlu1 %5468 }
 0x6a4   :  { %7600 = vrot.lane.b32.xlu1 %v12504_v37, %s11349_s25  ;;  %10718 = vmatpush3.xpose.msk.msra.mxu0 %vm1383_vm10, %v5089_v58 }
 0x6a5   :  { %10734 = vmatprep.mubr.msk.f32.mxu1 %vm11340_vm1, %v13581_v30  ;;  %8588 = vrot.lane.b32.xlu0 %v12552_v13, %s11349_s25 }
 0x6a6   :  { %10719 = vmatprep.mubr.msk.f32.mxu0 %vm11340_vm1, %v13581_v30  ;;  %10735 = vmatmul.mubr.msk.f32.vlgmr.msra.gmra.mrb[42].mxu1 %vm1383_vm10, %v12524_v22 }
 0x6a7   :  { %10742 = vmatprep.subr.mxu1 %v13581_v30  ;;  %10720 = vmatmul.mubr.msk.f32.vlgmr.msra.gmra.mrb[40].mxu0 %vm1383_vm10, %v12510_v0  ;;  %v5393_v39 = vpop.permute.xlu0 %5392 }
 0x6a8   :  { %10727 = vmatprep.subr.mxu0 %v13581_v30  ;;  %10743 = vmatpush3.xpose.msk.msra.mxu1 %vm1383_vm10, %v5469_v56 }
 0x6a9   :  { %7752 = vrot.lane.b32.xlu1 %v12436_v36, %s11349_s25  ;;  %10728 = vmatpush3.xpose.msk.msra.mxu0 %vm1383_vm10, %v5241_v1 }
 0x6aa   :  { %10744 = vmatprep.mubr.msk.f32.mxu1 %vm11340_vm1, %v13581_v30  ;;  %8816 = vrot.lane.b32.xlu0 %v12560_v52, %s11349_s25 }
 0x6ab   :  { %10729 = vmatprep.mubr.msk.f32.mxu0 %vm11340_vm1, %v13581_v30  ;;  %10737 = vmatprep.subr.mxu0 %v13581_v30  ;;  %v5545_v44 = vpop.permute.xlu0 %5544 }
 0x6ac   :  { %10730 = vmatmul.mubr.msk.f32.vlgmr.msra.gmra.mrb[42].mxu0 %vm1383_vm10, %v12442_v15  ;;  %10745 = vmatmul.mubr.msk.f32.vlgmr.msra.gmra.mrb[44].mxu1 %vm1383_vm10, %v12530_v27 }
 0x6ad   :  { %7904 = vrot.lane.b32.xlu1 %v12510_v0, %s11349_s25  ;;  %10738 = vmatpush3.xpose.msk.msra.mxu0 %vm1383_vm10, %v5393_v39 }
 0x6ae   :  { %8968 = vrot.lane.b32.xlu0 %v12468_v2, %s11349_s25  ;;  %10739 = vmatprep.mubr.msk.f32.mxu0 %vm11340_vm1, %v13581_v30 }
 0x6af   :  { %10747 = vmatprep.subr.mxu0 %v13581_v30  ;;  %10752 = vmatprep.subr.mxu1 %v13581_v30 }
 0x6b0   :  { %10740 = vmatmul.mubr.msk.f32.vlgmr.msra.gmra.mrb[44].mxu0 %vm1383_vm10, %v12536_v29  ;;  %10754 = vmatprep.mubr.msk.f32.mxu1 %vm11340_vm1, %v13581_v30 }
 0x6b1   :  { %8056 = vrot.lane.b32.xlu1 %v12442_v15, %s11349_s25  ;;  %10748 = vmatpush3.xpose.msk.msra.mxu0 %vm1383_vm10, %v5545_v44 }
 0x6b2   :  { %9120 = vrot.lane.b32.xlu0 %v12578_v45, %s11349_s25  ;;  %10749 = vmatprep.mubr.msk.f32.mxu0 %vm11340_vm1, %v13581_v30 }
 0x6b3   :  { %10757 = vmatprep.subr.mxu0 %v13581_v30 }
 0x6b4   :  { %10750 = vmatmul.mubr.msk.f32.vlgmr.msra.gmra.mrb[46].mxu0 %vm1383_vm10, %v12452_v53 }
 0x6b5   :  { %8208 = vrot.lane.b32.xlu1 %v12536_v29, %s11349_s25  ;;  %10759 = vmatprep.mubr.msk.f32.mxu0 %vm11340_vm1, %v13581_v30 }
 0x6b9   :  { %8360 = vrot.lane.b32.xlu1 %v12452_v53, %s11349_s25 }
 0x6bd   :  { %8512 = vrot.lane.b32.xlu1 %v12542_v38, %s11349_s25 }
 0x6c1   :  { %8664 = vrot.lane.b32.xlu1 %v12458_v49, %s11349_s25 }
 0x6c5   :  { %8740 = vrot.lane.b32.xlu1 %v12550_v17, %s11349_s25 }
 0x6c9   :  { %8892 = vrot.lane.b32.xlu1 %v12558_v51, %s11349_s25 }
 0x6cd   :  { %9044 = vrot.lane.b32.xlu1 %v12566_v42, %s11349_s25 }
 0x6d1   :  { %9196 = vrot.lane.b32.xlu1 %v12576_v50, %s11349_s25 }
 0x6d4   :  { %v5621_v55 = vpop.permute.xlu1 %5620  ;;  %v5697_v18 = vpop.permute.xlu0 %5696 }
 0x6d5   :  { %10753 = vmatpush3.xpose.msk.msra.mxu1 %vm1383_vm10, %v5621_v55  ;;  %10758 = vmatpush3.xpose.msk.msra.mxu0 %vm1383_vm10, %v5697_v18 }
 0x6d6   :  { %10762 = vmatprep.subr.mxu1 %v13581_v30  ;;  %10767 = vmatprep.subr.mxu0 %v13581_v30 }
 0x6d8   :  { %10755 = vmatmul.mubr.msk.f32.vlgmr.msra.gmra.mrb[46].mxu1 %vm1383_vm10, %v12544_v24  ;;  %v5773_v62 = vpop.permute.xlu1 %5772  ;;  %10760 = vmatmul.mubr.msk.f32.vlgmr.msra.gmra.mrb[48].mxu0 %vm1383_vm10, %v12542_v38  ;;  %v5849_v5 = vpop.permute.xlu0 %5848 }
 0x6d9   :  { %10763 = vmatpush3.xpose.msk.msra.mxu1 %vm1383_vm10, %v5773_v62  ;;  %10768 = vmatpush3.xpose.msk.msra.mxu0 %vm1383_vm10, %v5849_v5 }
 0x6da   :  { %10764 = vmatprep.mubr.msk.f32.mxu1 %vm11340_vm1, %v13581_v30  ;;  %10769 = vmatprep.mubr.msk.f32.mxu0 %vm11340_vm1, %v13581_v30 }
 0x6db   :  { %10772 = vmatprep.subr.mxu1 %v13581_v30  ;;  %10777 = vmatprep.subr.mxu0 %v13581_v30 }
 0x6dc   :  { %10765 = vmatmul.mubr.msk.f32.vlgmr.msra.gmra.mrb[48].mxu1 %vm1383_vm10, %v12552_v13  ;;  %v5925_v54 = vpop.permute.xlu1 %5924  ;;  %10770 = vmatmul.mubr.msk.f32.vlgmr.msra.gmra.mrb[50].mxu0 %vm1383_vm10, %v12458_v49  ;;  %v6001_v19 = vpop.permute.xlu0 %6000 }
 0x6dd   :  { %10773 = vmatpush3.xpose.msk.msra.mxu1 %vm1383_vm10, %v5925_v54  ;;  %10778 = vmatpush3.xpose.msk.msra.mxu0 %vm1383_vm10, %v6001_v19 }
 0x6de   :  { %10774 = vmatprep.mubr.msk.f32.mxu1 %vm11340_vm1, %v13581_v30  ;;  %10779 = vmatprep.mubr.msk.f32.mxu0 %vm11340_vm1, %v13581_v30 }
 0x6df   :  { %10782 = vmatprep.subr.mxu1 %v13581_v30  ;;  %10787 = vmatprep.subr.mxu0 %v13581_v30 }
 0x6e0   :  { %10775 = vmatmul.mubr.msk.f32.vlgmr.msra.gmra.mrb[50].mxu1 %vm1383_vm10, %v12550_v17  ;;  %v6077_v4 = vpop.permute.xlu1 %6076  ;;  %10780 = vmatmul.mubr.msk.f32.vlgmr.msra.gmra.mrb[52].mxu0 %vm1383_vm10, %v12560_v52 }
 0x6e1   :  { %v6153_v20 = vpop.permute.xlu0 %6152  ;;  %10783 = vmatpush3.xpose.msk.msra.mxu1 %vm1383_vm10, %v6077_v4  ;;  %10784 = vmatprep.mubr.msk.f32.mxu1 %vm11340_vm1, %v13581_v30 }
 0x6e2   :  { %10788 = vmatpush3.xpose.msk.msra.mxu0 %vm1383_vm10, %v6153_v20  ;;  %10789 = vmatprep.mubr.msk.f32.mxu0 %vm11340_vm1, %v13581_v30 }
 0x6e3   :  { %10792 = vmatprep.subr.mxu1 %v13581_v30  ;;  %10797 = vmatprep.subr.mxu0 %v13581_v30 }
 0x6e4   :  { %10785 = vmatmul.mubr.msk.f32.vlgmr.msra.gmra.mrb[52].mxu1 %vm1383_vm10, %v12558_v51  ;;  %v6229_v33 = vpop.permute.xlu1 %6228 }
 0x6e5   :  { %10790 = vmatmul.mubr.msk.f32.vlgmr.msra.gmra.mrb[54].mxu0 %vm1383_vm10, %v12468_v2  ;;  %v6305_v46 = vpop.permute.xlu0 %6304  ;;  %10793 = vmatpush3.xpose.msk.msra.mxu1 %vm1383_vm10, %v6229_v33 }
 0x6e6   :  { %10798 = vmatpush3.xpose.msk.msra.mxu0 %vm1383_vm10, %v6305_v46  ;;  %10794 = vmatprep.mubr.msk.f32.mxu1 %vm11340_vm1, %v13581_v30 }
 0x6e7   :  { %10799 = vmatprep.mubr.msk.f32.mxu0 %vm11340_vm1, %v13581_v30  ;;  %10802 = vmatprep.subr.mxu1 %v13581_v30 }
 0x6e8   :  { %10795 = vmatmul.mubr.msk.f32.vlgmr.msra.gmra.mrb[54].mxu1 %vm1383_vm10, %v12566_v42  ;;  %v6381_v26 = vpop.permute.xlu1 %6380  ;;  %10807 = vmatprep.subr.mxu0 %v13581_v30 }
 0x6e9   :  { %10800 = vmatmul.mubr.msk.f32.vlgmr.msra.gmra.mrb[56].mxu0 %vm1383_vm10, %v12578_v45  ;;  %v6457_v12 = vpop.permute.xlu0 %6456  ;;  %10803 = vmatpush3.xpose.msk.msra.mxu1 %vm1383_vm10, %v6381_v26 }
 0x6ea   :  { %10808 = vmatpush3.xpose.msk.msra.mxu0 %vm1383_vm10, %v6457_v12  ;;  %10804 = vmatprep.mubr.msk.f32.mxu1 %vm11340_vm1, %v13581_v30 }
 0x6eb   :  { %10809 = vmatprep.mubr.msk.f32.mxu0 %vm11340_vm1, %v13581_v30  ;;  %10812 = vmatprep.subr.mxu1 %v13581_v30 }
 0x6ec   :  { %10805 = vmatmul.mubr.msk.f32.vlgmr.msra.gmra.mrb[56].mxu1 %vm1383_vm10, %v12576_v50  ;;  %v6533_v36 = vpop.permute.xlu1 %6532  ;;  %10817 = vmatprep.subr.mxu0 %v13581_v30 }
 0x6ed   :  { %10810 = vmatmul.mubr.msk.f32.vlgmr.msra.gmra.mrb[58].mxu0 %vm1383_vm10, %v12478_v11  ;;  %v6609_v15 = vpop.permute.xlu0 %6608  ;;  %10813 = vmatpush3.xpose.msk.msra.mxu1 %vm1383_vm10, %v6533_v36 }
 0x6ee   :  { %10818 = vmatpush3.xpose.msk.msra.mxu0 %vm1383_vm10, %v6609_v15  ;;  %10814 = vmatprep.mubr.msk.f32.mxu1 %vm11340_vm1, %v13581_v30 }
 0x6ef   :  { %10819 = vmatprep.mubr.msk.f32.mxu0 %vm11340_vm1, %v13581_v30  ;;  %10822 = vmatprep.subr.mxu1 %v13581_v30 }
 0x6f0   :  { %10815 = vmatmul.mubr.msk.f32.vlgmr.msra.gmra.mrb[58].mxu1 %vm1383_vm10, %v12586_v35  ;;  %10827 = vmatprep.subr.mxu0 %v13581_v30 }
 0x6f1   :  { %10820 = vmatmul.mubr.msk.f32.vlgmr.msra.gmra.mrb[60].mxu0 %vm1383_vm10, %v12592_v16  ;;  %10824 = vmatprep.mubr.msk.f32.mxu1 %vm11340_vm1, %v13581_v30  ;;  %v7221_v41 = vpop.permute.xlu0 %7220 }
 0x6f2   :  { %10829 = vmatprep.mubr.msk.f32.mxu0 %vm11340_vm1, %v13581_v30 }
 0x703   :  { %v6685_v9 = vpop.permute.xlu1 %6684 }
 0x704   :  { %10823 = vmatpush3.xpose.msk.msra.mxu1 %vm1383_vm10, %v6685_v9 }
 0x705   :  { %10832 = vmatprep.subr.mxu1 %v13581_v30 }
 0x707   :  { %10825 = vmatmul.mubr.msk.f32.vlgmr.msra.gmra.mrb[60].mxu1 %vm1383_vm10, %v12618_v7  ;;  %v7145_v53 = vpop.permute.xlu1 %7144 }
 0x708   :  { %10828 = vmatpush3.msra.mxu0 %v7145_v53  ;;  %10833 = vmatpush3.msra.mxu1 %v7221_v41 }
 0x709   :  { %10837 = vmatprep.subr.mxu0 %v13581_v30  ;;  %10834 = vmatprep.mubr.msk.f32.mxu1 %vm11340_vm1, %v13581_v30 }
 0x70a   :  { %10842 = vmatprep.subr.mxu1 %v13581_v30 }
 0x744   :  { %v4400_v49 = vpop.f32.mrb[26].mxu0 }
 0x745   :  { %v12846_v8 = vmul.f32 0.35355338, %v4400_v49  ;;  %v10671_v48 = vpop.f32.mrb[27].mxu0 }
 0x747   :  { %v6792_v2 = vsel %vm1383_vm10, %v12846_v8, -inf }
 0x748   :  { %6793 = vmax.xlane.f32.xlu0 %v6792_v2 }
 0x75e   :  { %v4476_v61 = vpop.f32.mrb[28].mxu0 }
 0x75f   :  { %v12850_v57 = vmul.f32 0.35355338, %v4476_v61  ;;  %v10676_v43 = vpop.f32.mrb[29].mxu0 }
 0x761   :  { %v6795_v23 = vsel %vm1383_vm10, %v12850_v57, -inf }
 0x762   :  { %v4552_v32 = vpop.f32.mrb[30].mxu0  ;;  %6796 = vmax.xlane.f32.xlu1 %v6795_v23 }
 0x763   :  { %v10681_v37 = vpop.f32.mrb[31].mxu0  ;;  %v12862_v31 = vmul.f32 0.35355338, %v4552_v32 }
 0x765   :  { %v6798_v3 = vsel %vm1383_vm10, %v12862_v31, -inf }
 0x766   :  { %v4780_v0 = vpop.f32.mrb[34].mxu1 }
 0x767   :  { %v4628_v25 = vpop.f32.mrb[32].mxu0  ;;  %v12854_v28 = vmul.f32 0.35355338, %v4780_v0  ;;  %v10696_v22 = vpop.f32.mrb[35].mxu1 }
 0x768   :  { %v10686_v27 = vpop.f32.mrb[33].mxu0  ;;  %v12876_v60 = vmul.f32 0.35355338, %v4628_v25  ;;  %v12914_v25 = vpop.permute.xlu0 %7372 }
 0x769   :  { %v6807_v29 = vsel %vm1383_vm10, %v12854_v28, -inf }
 0x76a   :  { %v4932_v38 = vpop.f32.mrb[36].mxu1  ;;  %6808 = vmax.xlane.f32.xlu0 %v6807_v29  ;;  %v6801_v18 = vsel %vm1383_vm10, %v12876_v60, -inf }
 0x76b   :  { %v12858_v24 = vmul.f32 0.35355338, %v4932_v38  ;;  %v4704_v17 = vpop.f32.mrb[34].mxu0  ;;  %v10706_v13 = vpop.f32.mrb[37].mxu1 }
 0x76c   :  { %v12860_v51 = vmul.f32 0.35355338, %v4704_v17  ;;  %v10691_v52 = vpop.f32.mrb[35].mxu0  ;;  %v12916_v22 = vpop.permute.xlu0 %7524 }
 0x76d   :  { %v6813_v42 = vsel %vm1383_vm10, %v12858_v24, -inf  ;;  %v12922_v38 = vpop.permute.xlu1 %7296 }
 0x76e   :  { %6814 = vmax.xlane.f32.xlu0 %v6813_v42  ;;  %v6804_v50 = vsel %vm1383_vm10, %v12860_v51, -inf }
 0x76f   :  { %v5084_v45 = vpop.f32.mrb[38].mxu1  ;;  %6805 = vmax.xlane.f32.xlu1 %v6804_v50 }
 0x770   :  { %v4856_v34 = vpop.f32.mrb[36].mxu0  ;;  %v10716_v63 = vpop.f32.mrb[39].mxu1  ;;  %v12868_v14 = vmul.f32 0.35355338, %v5084_v45 }
 0x771   :  { %v12870_v40 = vmul.f32 0.35355338, %v4856_v34  ;;  %v10701_v10 = vpop.f32.mrb[37].mxu0  ;;  %v12918_v27 = vpop.permute.xlu0 %7676 }
 0x772   :  { %6799 = vmax.xlane.f32.xlu0 %v6798_v3  ;;  %v6819_v58 = vsel %vm1383_vm10, %v12868_v14, -inf  ;;  %v12926_v13 = vpop.permute.xlu1 %7448 }
 0x773   :  { %v6810_v21 = vsel %vm1383_vm10, %v12870_v40, -inf }
 0x774   :  { %v5236_v59 = vpop.f32.mrb[40].mxu1  ;;  %6811 = vmax.xlane.f32.xlu1 %v6810_v21 }
 0x775   :  { %v5008_v47 = vpop.f32.mrb[38].mxu0  ;;  %v10726_v6 = vpop.f32.mrb[41].mxu1  ;;  %v12884_v44 = vmul.f32 0.35355338, %v5236_v59 }
 0x776   :  { %v12880_v1 = vmul.f32 0.35355338, %v5008_v47  ;;  %v10711_v56 = vpop.f32.mrb[39].mxu0  ;;  %6820 = vmax.xlane.f32.xlu0 %v6819_v58  ;;  %v12920_v29 = vpop.permute.xlu0 %7828 }
 0x777   :  { %v6825_v33 = vsel %vm1383_vm10, %v12884_v44, -inf  ;;  %v12930_v42 = vpop.permute.xlu1 %7600 }
 0x778   :  { %v6816_v39 = vsel %vm1383_vm10, %v12880_v1, -inf }
 0x779   :  { %v5388_v55 = vpop.f32.mrb[42].mxu1  ;;  %6817 = vmax.xlane.f32.xlu1 %v6816_v39 }
 0x77a   :  { %v5160_v62 = vpop.f32.mrb[40].mxu0  ;;  %v10736_v5 = vpop.f32.mrb[43].mxu1  ;;  %6802 = vmax.xlane.f32.xlu0 %v6801_v18  ;;  %v12890_v4 = vmul.f32 0.35355338, %v5388_v55 }
 0x77b   :  { %v12888_v54 = vmul.f32 0.35355338, %v5160_v62  ;;  %v10721_v19 = vpop.f32.mrb[41].mxu0  ;;  %v12924_v17 = vpop.permute.xlu0 %7980 }
 0x77c   :  { %v6831_v41 = vsel %vm1383_vm10, %v12890_v4, -inf  ;;  %v12946_v18 = vpop.permute.xlu1 %7752 }
 0x77d   :  { %v6822_v20 = vsel %vm1383_vm10, %v12888_v54, -inf }
 0x77e   :  { %6823 = vmax.xlane.f32.xlu1 %v6822_v20  ;;  %6826 = vmax.xlane.f32.xlu0 %v6825_v33 }
 0x77f   :  { %v5540_v46 = vpop.f32.mrb[44].mxu1  ;;  %v5312_v26 = vpop.f32.mrb[42].mxu0 }
 0x780   :  { %v12896_v12 = vmul.f32 0.35355338, %v5312_v26  ;;  %v10731_v36 = vpop.f32.mrb[43].mxu0  ;;  %v10746_v15 = vpop.f32.mrb[45].mxu1  ;;  %v12898_v9 = vmul.f32 0.35355338, %v5540_v46 }
 0x781   :  { %v12928_v52 = vpop.permute.xlu0 %8132 }
 0x782   :  { %v6828_v53 = vsel %vm1383_vm10, %v12896_v12, -inf  ;;  %6832 = vmax.xlane.f32.xlu0 %v6831_v41  ;;  %v6837_v61 = vsel %vm1383_vm10, %v12898_v9, -inf }
 0x783   :  { %6829 = vmax.xlane.f32.xlu1 %v6828_v53  ;;  %v5464_v49 = vpop.f32.mrb[44].mxu0 }
 0x784   :  { %v12904_v48 = vmul.f32 0.35355338, %v5464_v49  ;;  %v10741_v2 = vpop.f32.mrb[45].mxu0 }
 0x785   :  { %v12944_v55 = vpop.permute.xlu0 %8284  ;;  %v12958_v2 = vpop.permute.xlu1 %7904 }
 0x786   :  { %v6834_v43 = vsel %vm1383_vm10, %v12904_v48, -inf  ;;  %6838 = vmax.xlane.f32.xlu0 %v6837_v61  ;;  %13595 = vst [vmem:[#allocation5_spill] sm:$0xff] %v12944_v55 }
 0x787   :  { %6835 = vmax.xlane.f32.xlu1 %v6834_v43  ;;  %v5616_v23 = vpop.f32.mrb[46].mxu0 }
 0x788   :  { %v12910_v32 = vmul.f32 0.35355338, %v5616_v23  ;;  %v10751_v37 = vpop.f32.mrb[47].mxu0 }
 0x789   :  { %v12954_v36 = vpop.permute.xlu0 %8436 }
 0x78a   :  { %v6840_v0 = vsel %vm1383_vm10, %v12910_v32, -inf  ;;  %13596 = vst [vmem:[#allocation4_spill] sm:$0xff] %v12954_v36 }
 0x78b   :  { %6841 = vmax.xlane.f32.xlu1 %v6840_v0 }
 0x7ab   :  { %v5692_v50 = vpop.f32.mrb[46].mxu1  ;;  %v5768_v45 = vpop.f32.mrb[48].mxu0 }
 0x7ac   :  { %v12932_v34 = vmul.f32 0.35355338, %v5692_v50  ;;  %v12934_v63 = vmul.f32 0.35355338, %v5768_v45  ;;  %v10756_v10 = vpop.f32.mrb[47].mxu1  ;;  %v10761_v3 = vpop.f32.mrb[49].mxu0 }
 0x7ad   :  { %v12964_v45 = vpop.permute.xlu0 %8588 }
 0x7ae   :  { %v6843_v21 = vsel %vm1383_vm10, %v12932_v34, -inf  ;;  %v6846_v59 = vsel %vm1383_vm10, %v12934_v63, -inf  ;;  %13597 = vst [vmem:[#allocation7_spill] sm:$0xff] %v12964_v45 }
 0x7af   :  { %v5844_v47 = vpop.f32.mrb[48].mxu1  ;;  %6844 = vmax.xlane.f32.xlu0 %v6843_v21  ;;  %6847 = vmax.xlane.f32.xlu1 %v6846_v59  ;;  %v12940_v6 = vpop.f32.mrb[50].mxu0 }
 0x7b0   :  { %v12942_v58 = vmul.f32 0.35355338, %v5844_v47  ;;  %v10766_v56 = vpop.f32.mrb[49].mxu1  ;;  %v10771_v39 = vpop.f32.mrb[51].mxu0 }
 0x7b1   :  { %v12968_v21 = vpop.permute.xlu1 %8056 }
 0x7b2   :  { %v6849_v62 = vsel %vm1383_vm10, %v12942_v58, -inf  ;;  %13598 = vst [vmem:[#allocation6_spill] sm:$0xff] %v12968_v21 }
 0x7b3   :  { %v5996_v5 = vpop.f32.mrb[50].mxu1  ;;  %6850 = vmax.xlane.f32.xlu0 %v6849_v62  ;;  %v6072_v19 = vpop.f32.mrb[52].mxu0 }
 0x7b4   :  { %v12950_v20 = vmul.f32 0.35355338, %v5996_v5  ;;  %v10776_v33 = vpop.f32.mrb[51].mxu1  ;;  %v10781_v46 = vpop.f32.mrb[53].mxu0 }
 0x7b5   :  { %v12974_v33 = vpop.permute.xlu0 %8816 }
 0x7b6   :  { %v6855_v26 = vsel %vm1383_vm10, %v12950_v20, -inf  ;;  %13599 = vst [vmem:[#allocation9_spill] sm:$0xff] %v12974_v33 }
 0x7b7   :  { %v6148_v15 = vpop.f32.mrb[52].mxu1  ;;  %6856 = vmax.xlane.f32.xlu0 %v6855_v26 }
 0x7b8   :  { %v12956_v41 = vmul.f32 0.35355338, %v6148_v15  ;;  %v6224_v53 = vpop.f32.mrb[54].mxu0  ;;  %v10786_v49 = vpop.f32.mrb[53].mxu1 }
 0x7b9   :  { %v10791_v61 = vpop.f32.mrb[55].mxu0 }
 0x7ba   :  { %v6861_v43 = vsel %vm1383_vm10, %v12956_v41, -inf  ;;  %v12978_v61 = vpop.permute.xlu1 %8208 }
 0x7bb   :  { %v6300_v23 = vpop.f32.mrb[54].mxu1  ;;  %6862 = vmax.xlane.f32.xlu0 %v6861_v43  ;;  %13600 = vst [vmem:[#allocation10_spill] sm:$0xff] %v12978_v61 }
 0x7bc   :  { %v12962_v37 = vmul.f32 0.35355338, %v6300_v23  ;;  %v6376_v0 = vpop.f32.mrb[56].mxu0  ;;  %v10796_v50 = vpop.f32.mrb[55].mxu1 }
 0x7bd   :  { %v10801_v10 = vpop.f32.mrb[57].mxu0  ;;  %v12982_v50 = vpop.permute.xlu0 %8968 }
 0x7be   :  { %v6867_v3 = vsel %vm1383_vm10, %v12962_v37, -inf  ;;  %13601 = vst [vmem:[#allocation12_spill] sm:$0xff] %v12982_v50  ;;  %v12984_v10 = vpop.permute.xlu1 %8360 }
 0x7bf   :  { %v6452_v59 = vpop.f32.mrb[56].mxu1  ;;  %6868 = vmax.xlane.f32.xlu0 %v6867_v3  ;;  %13602 = vst [vmem:[#allocation11_spill] sm:$0xff] %v12984_v10 }
 0x7c0   :  { %v12970_v47 = vmul.f32 0.35355338, %v6452_v59  ;;  %v6528_v56 = vpop.f32.mrb[58].mxu0  ;;  %v10806_v39 = vpop.f32.mrb[57].mxu1 }
 0x7c1   :  { %v10811_v62 = vpop.f32.mrb[59].mxu0  ;;  %v12986_v3 = vpop.permute.xlu0 %9120 }
 0x7c2   :  { %v6873_v5 = vsel %vm1383_vm10, %v12970_v47, -inf  ;;  %13603 = vst [vmem:[#allocation8_spill] sm:$0xff] %v12986_v3  ;;  %v12988_v59 = vpop.permute.xlu1 %8512 }
 0x7c3   :  { %v6604_v46 = vpop.f32.mrb[58].mxu1  ;;  %6874 = vmax.xlane.f32.xlu0 %v6873_v5  ;;  %13604 = vst [vmem:[#allocation13_spill] sm:$0xff] %v12988_v59 }
 0x7c4   :  { %v12976_v26 = vmul.f32 0.35355338, %v6604_v46  ;;  %v6680_v15 = vpop.f32.mrb[60].mxu0  ;;  %v10816_v49 = vpop.f32.mrb[59].mxu1 }
 0x7c5   :  { %v10821_v43 = vpop.f32.mrb[61].mxu0 }
 0x7c6   :  { %v6879_v23 = vsel %vm1383_vm10, %v12976_v26, -inf  ;;  %v12991_v5 = vpop.permute.xlu1 %8664 }
 0x7c7   :  { %6880 = vmax.xlane.f32.xlu0 %v6879_v23  ;;  %13605 = vst [vmem:[#allocation14_spill] sm:$0xff] %v12991_v5 }
 0x7ca   :  { %v12995_v23 = vpop.permute.xlu1 %8740 }
 0x7cb   :  { %13606 = vst [vmem:[#allocation15_spill] sm:$0xff] %v12995_v23  ;;  %v13030_v23 = vmul.f32 0.35355338, %v6680_v15 }
 0x7cd   :  { %v6882_v10 = vsel %vm1383_vm10, %v13030_v23, -inf }
 0x7ce   :  { %v12999_v3 = vpop.permute.xlu1 %8892 }
 0x7cf   :  { %13607 = vst [vmem:[#allocation16_spill] sm:$0xff] %v12999_v3  ;;  %v13020_v3 = vmul.f32 0.35355338, %v6376_v0 }
 0x7d5   :  { %v6794_v39 = vpop.xlane.xlu0 %6793 }
 0x7d6   :  { %v6888_v62 = vsub.f32 %v12846_v8, %v6794_v39  ;;  %v13004_v8 = vmul.f32 0.35355338, %v12940_v6 }
 0x7d8   :  { %v6920_v46 = vmul.f32 1.442695, %v6888_v62  ;;  %v13008_v62 = vpop.permute.xlu1 %9044 }
 0x7d9   :  { %13608 = vst [vmem:[#allocation17_spill] sm:$0xff] %v13008_v62  ;;  %v13024_v62 = vmul.f32 0.35355338, %v6528_v56 }
 0x7da   :  { %11198 = vpow2.f32 %v6920_v46  ;;  %v6756_v49 = vpop.f32.mrb[60].mxu1  ;;  %v6852_v46 = vsel %vm1383_vm10, %v13004_v8, -inf }
 0x7db   :  { %v12993_v43 = vmul.f32 0.35355338, %v6756_v49  ;;  %v10826_v33 = vpop.f32.mrb[61].mxu1  ;;  %v6876_v0 = vsel %vm1383_vm10, %v13024_v62, -inf }
 0x7dc   :  { %v13010_v33 = vmul.f32 0.35355338, %v6072_v19  ;;  %v13018_v6 = vpop.permute.xlu1 %9196 }
 0x7dd   :  { %v6885_v50 = vsel %vm1383_vm10, %v12993_v43, -inf  ;;  %13609 = vst [vmem:[#allocation18_spill] sm:$0xff] %v13018_v6 }
 0x7de   :  { %6886 = vmax.xlane.f32.xlu0 %v6885_v50  ;;  %v13014_v50 = vmul.f32 0.35355338, %v6224_v53  ;;  %v6858_v49 = vsel %vm1383_vm10, %v13010_v33, -inf }
 0x7e4   :  { %v13001_v59 = vpop.eup %11198 }
 0x7e5   :  { %v6984_v39 = vsel %vm1383_vm10, %v13001_v59, 0.0 }
 0x7e6   :  { %6985 = vadd.xlane.f32.xlu1 %v6984_v39  ;;  %v6864_v39 = vsel %vm1383_vm10, %v13014_v50, -inf }
 0x7ea   :  { %6853 = vmax.xlane.f32.xlu1 %v6852_v46  ;;  %v6870_v46 = vsel %vm1383_vm10, %v13020_v3, -inf }
 0x7ee   :  { %6859 = vmax.xlane.f32.xlu1 %v6858_v49 }
 0x7ef   :  { %v6797_v19 = vpop.xlane.xlu1 %6796 }
 0x7f0   :  { %v6889_v53 = vsub.f32 %v12850_v57, %v6797_v19 }
 0x7f2   :  { %6865 = vmax.xlane.f32.xlu1 %v6864_v39  ;;  %v6922_v6 = vmul.f32 1.442695, %v6889_v53 }
 0x7f6   :  { %6871 = vmax.xlane.f32.xlu1 %v6870_v46 }
 0x7f7   :  { %v6809_v5 = vpop.xlane.xlu0 %6808 }
 0x7f8   :  { %v6893_v49 = vsub.f32 %v12854_v28, %v6809_v5 }
 0x7fa   :  { %v6930_v45 = vmul.f32 1.442695, %v6893_v49  ;;  %6877 = vmax.xlane.f32.xlu1 %v6876_v0 }
 0x7fb   :  { %v6815_v39 = vpop.xlane.xlu0 %6814 }
 0x7fc   :  { %11200 = vpow2.f32 %v6930_v45  ;;  %v6895_v56 = vsub.f32 %v12858_v24, %v6815_v39 }
 0x7fd   :  { %11202 = vpow2.f32 %v6922_v6 }
 0x7fe   :  { %v6934_v57 = vmul.f32 1.442695, %v6895_v56  ;;  %6883 = vmax.xlane.f32.xlu1 %v6882_v10 }
 0x7ff   :  { %v6800_v19 = vpop.xlane.xlu0 %6799 }
 0x800   :  { %v6890_v28 = vsub.f32 %v12862_v31, %v6800_v19  ;;  %11204 = vpow2.f32 %v6934_v57 }
 0x802   :  { %v6924_v15 = vmul.f32 1.442695, %v6890_v28 }
 0x803   :  { %v6821_v5 = vpop.xlane.xlu0 %6820 }
 0x804   :  { %11206 = vpow2.f32 %v6924_v15  ;;  %v6897_v46 = vsub.f32 %v12868_v14, %v6821_v5  ;;  %v6806_v5 = vpop.xlane.xlu1 %6805 }
 0x806   :  { %v13039_v53 = vpop.eup %11200  ;;  %v6938_v45 = vmul.f32 1.442695, %v6897_v46 }
 0x807   :  { %v6803_v49 = vpop.xlane.xlu0 %6802  ;;  %v6999_v24 = vsel %vm1383_vm10, %v13039_v53, 0.0  ;;  %v13043_v0 = vpop.eup %11202 }
 0x808   :  { %11208 = vpow2.f32 %v6938_v45  ;;  %v6891_v10 = vsub.f32 %v12876_v60, %v6803_v49  ;;  %7000 = vadd.xlane.f32.xlu0 %v6999_v24  ;;  %v6987_v6 = vsel %vm1383_vm10, %v13043_v0, 0.0  ;;  %v6812_v46 = vpop.xlane.xlu1 %6811  ;;  %v6892_v24 = vsub.f32 %v12860_v51, %v6806_v5 }
 0x80a   :  { %v6926_v31 = vmul.f32 1.442695, %v6891_v10  ;;  %v13048_v39 = vpop.eup %11204 }
 0x80b   :  { %v7005_v56 = vsel %vm1383_vm10, %v13048_v39, 0.0  ;;  %v6827_v49 = vpop.xlane.xlu0 %6826 }
 0x80c   :  { %11210 = vpow2.f32 %v6926_v31  ;;  %6988 = vadd.xlane.f32.xlu0 %v6987_v6  ;;  %v6818_v45 = vpop.xlane.xlu1 %6817  ;;  %v6928_v6 = vmul.f32 1.442695, %v6892_v24 }
 0x80e   :  { %v13050_v14 = vpop.eup %11206  ;;  %11212 = vpow2.f32 %v6928_v6 }
 0x80f   :  { %v6990_v57 = vsel %vm1383_vm10, %v13050_v14, 0.0  ;;  %v6833_v31 = vpop.xlane.xlu0 %6832 }
 0x810   :  { %7006 = vadd.xlane.f32.xlu0 %v7005_v56  ;;  %6991 = vadd.xlane.f32.xlu1 %v6990_v57  ;;  %v6824_v10 = vpop.xlane.xlu1 %6823  ;;  %v6894_v56 = vsub.f32 %v12870_v40, %v6812_v46  ;;  %v6896_v57 = vsub.f32 %v12880_v1, %v6818_v45  ;;  %v6901_v51 = vsub.f32 %v12890_v4, %v6833_v31 }
 0x811   :  { %v6898_v55 = vsub.f32 %v12888_v54, %v6824_v10 }
 0x812   :  { %v13056_v60 = vpop.eup %11208  ;;  %v6936_v61 = vmul.f32 1.442695, %v6896_v57  ;;  %v6946_v1 = vmul.f32 1.442695, %v6901_v51 }
 0x813   :  { %v7011_v19 = vsel %vm1383_vm10, %v13056_v60, 0.0  ;;  %v6839_v36 = vpop.xlane.xlu0 %6838  ;;  %v6940_v24 = vmul.f32 1.442695, %v6898_v55 }
 0x814   :  { %7012 = vadd.xlane.f32.xlu0 %v7011_v19  ;;  %v6932_v19 = vmul.f32 1.442695, %v6894_v56  ;;  %v6903_v46 = vsub.f32 %v12898_v9, %v6839_v36 }
 0x816   :  { %v13060_v28 = vpop.eup %11210  ;;  %11214 = vpow2.f32 %v6932_v19  ;;  %v6950_v4 = vmul.f32 1.442695, %v6903_v46 }
 0x817   :  { %v6993_v15 = vsel %vm1383_vm10, %v13060_v28, 0.0  ;;  %11216 = vpow2.f32 %v6936_v61 }
 0x818   :  { %6994 = vadd.xlane.f32.xlu0 %v6993_v15  ;;  %v6830_v15 = vpop.xlane.xlu1 %6829 }
 0x819   :  { %v6900_v40 = vsub.f32 %v12896_v12, %v6830_v15 }
 0x81c   :  { %v6836_v21 = vpop.xlane.xlu1 %6835 }
 0x81d   :  { %v6902_v54 = vsub.f32 %v12904_v48, %v6836_v21 }
 0x81f   :  { %v6948_v9 = vmul.f32 1.442695, %v6902_v54 }
 0x820   :  { %v6842_v10 = vpop.xlane.xlu1 %6841 }
 0x821   :  { %9348 = vrot.lane.b32.xlu1 %v12586_v35, %s11349_s25  ;;  %v6899_v35 = vsub.f32 %v12884_v44, %v6827_v49  ;;  %v13076_v44 = vpop.eup %11212  ;;  %v6944_v49 = vmul.f32 1.442695, %v6900_v40  ;;  %v6904_v36 = vsub.f32 %v12910_v32, %v6842_v10 }
 0x822   :  { %v6996_v12 = vsel %vm1383_vm10, %v13076_v44, 0.0  ;;  %v13082_v55 = vpop.eup %11214 }
 0x823   :  { %v13086_v21 = vpop.eup %11216  ;;  %v6952_v15 = vmul.f32 1.442695, %v6904_v36 }
 0x82e   :  { %9272 = vrot.lane.b32.xlu0 %v12478_v11, %s11349_s25  ;;  %v6942_v11 = vmul.f32 1.442695, %v6899_v35 }
 0x830   :  { %11218 = vpow2.f32 %v6942_v11 }
 0x831   :  { %11220 = vpow2.f32 %v6940_v24 }
 0x832   :  { %11222 = vpow2.f32 %v6946_v1 }
 0x833   :  { %11224 = vpow2.f32 %v6944_v49 }
 0x834   :  { %11226 = vpow2.f32 %v6950_v4 }
 0x835   :  { %11228 = vpow2.f32 %v6948_v9 }
 0x83a   :  { %v13090_v19 = vpop.eup %11218 }
 0x83b   :  { %v13094_v51 = vpop.eup %11220  ;;  %v7017_v24 = vsel %vm1383_vm10, %v13090_v19, 0.0 }
 0x83c   :  { %v6845_v5 = vpop.xlane.xlu0 %6844  ;;  %v6848_v6 = vpop.xlane.xlu1 %6847 }
 0x83d   :  { %v6905_v31 = vsub.f32 %v12932_v34, %v6845_v5  ;;  %v7002_v34 = vsel %vm1383_vm10, %v13082_v55, 0.0  ;;  %v6906_v35 = vsub.f32 %v12934_v63, %v6848_v6  ;;  %v7008_v5 = vsel %vm1383_vm10, %v13086_v21, 0.0  ;;  %v13100_v40 = vpop.eup %11222 }
 0x83e   :  { %v7023_v49 = vsel %vm1383_vm10, %v13100_v40, 0.0 }
 0x83f   :  { %v6954_v56 = vmul.f32 1.442695, %v6905_v31  ;;  %v6956_v1 = vmul.f32 1.442695, %v6906_v35 }
 0x840   :  { %v6851_v45 = vpop.xlane.xlu0 %6850 }
 0x841   :  { %v6907_v48 = vsub.f32 %v12942_v58, %v6851_v45  ;;  %11230 = vpow2.f32 %v6954_v56  ;;  %v7014_v45 = vsel %vm1383_vm10, %v13094_v51, 0.0 }
 0x842   :  { %11232 = vpow2.f32 %v6952_v15 }
 0x843   :  { %v6958_v32 = vmul.f32 1.442695, %v6907_v48 }
 0x844   :  { %v6857_v61 = vpop.xlane.xlu0 %6856 }
 0x845   :  { %6997 = vadd.xlane.f32.xlu1 %v6996_v12  ;;  %v6909_v11 = vsub.f32 %v12950_v20, %v6857_v61  ;;  %11234 = vpow2.f32 %v6958_v32  ;;  %v13103_v20 = vpop.eup %11224 }
 0x846   :  { %v13109_v54 = vpop.eup %11226  ;;  %11236 = vpow2.f32 %v6956_v1 }
 0x847   :  { %v6962_v63 = vmul.f32 1.442695, %v6909_v11  ;;  %v13112_v61 = vpop.eup %11228  ;;  %v7029_v12 = vsel %vm1383_vm10, %v13109_v54, 0.0 }
 0x848   :  { %v6863_v57 = vpop.xlane.xlu0 %6862 }
 0x849   :  { %7003 = vadd.xlane.f32.xlu1 %v7002_v34  ;;  %v6911_v46 = vsub.f32 %v12956_v41, %v6863_v57  ;;  %11238 = vpow2.f32 %v6962_v63  ;;  %v7020_v41 = vsel %vm1383_vm10, %v13103_v20, 0.0 }
 0x84b   :  { %v6966_v4 = vmul.f32 1.442695, %v6911_v46  ;;  %v13118_v9 = vpop.eup %11230 }
 0x84c   :  { %v6869_v58 = vpop.xlane.xlu0 %6868  ;;  %v13121_v56 = vpop.eup %11232  ;;  %v7035_v57 = vsel %vm1383_vm10, %v13118_v9, 0.0 }
 0x84d   :  { %7009 = vadd.xlane.f32.xlu1 %v7008_v5  ;;  %7018 = vadd.xlane.f32.xlu0 %v7017_v24  ;;  %v6913_v31 = vsub.f32 %v12962_v37, %v6869_v58  ;;  %11240 = vpow2.f32 %v6966_v4  ;;  %v7026_v37 = vsel %vm1383_vm10, %v13112_v61, 0.0 }
 0x84f   :  { %v6970_v36 = vmul.f32 1.442695, %v6913_v31  ;;  %v13127_v34 = vpop.eup %11234 }
 0x850   :  { %v6875_v10 = vpop.xlane.xlu0 %6874  ;;  %v13130_v32 = vpop.eup %11236  ;;  %v7041_v11 = vsel %vm1383_vm10, %v13127_v34, 0.0 }
 0x851   :  { %7015 = vadd.xlane.f32.xlu1 %v7014_v45  ;;  %7024 = vadd.xlane.f32.xlu0 %v7023_v49  ;;  %v6915_v6 = vsub.f32 %v12970_v47, %v6875_v10  ;;  %11242 = vpow2.f32 %v6970_v36  ;;  %v7032_v47 = vsel %vm1383_vm10, %v13121_v56, 0.0  ;;  %v7038_v24 = vsel %vm1383_vm10, %v13130_v32, 0.0 }
 0x853   :  { %v6974_v15 = vmul.f32 1.442695, %v6915_v6  ;;  %v13136_v58 = vpop.eup %11238 }
 0x854   :  { %v6881_v48 = vpop.xlane.xlu0 %6880 }
 0x855   :  { %7021 = vadd.xlane.f32.xlu1 %v7020_v41  ;;  %7030 = vadd.xlane.f32.xlu0 %v7029_v12  ;;  %v6917_v35 = vsub.f32 %v12976_v26, %v6881_v48  ;;  %11244 = vpow2.f32 %v6974_v15  ;;  %v7047_v26 = vsel %vm1383_vm10, %v13136_v58, 0.0 }
 0x857   :  { %v6978_v5 = vmul.f32 1.442695, %v6917_v35  ;;  %v13142_v1 = vpop.eup %11240 }
 0x858   :  { %v7053_v63 = vsel %vm1383_vm10, %v13142_v1, 0.0 }
 0x859   :  { %7027 = vadd.xlane.f32.xlu1 %v7026_v37  ;;  %7036 = vadd.xlane.f32.xlu0 %v7035_v57  ;;  %11246 = vpow2.f32 %v6978_v5 }
 0x85b   :  { %v13146_v46 = vpop.eup %11242 }
 0x85c   :  { %v7059_v45 = vsel %vm1383_vm10, %v13146_v46, 0.0 }
 0x85d   :  { %7033 = vadd.xlane.f32.xlu1 %v7032_v47  ;;  %7042 = vadd.xlane.f32.xlu0 %v7041_v11 }
 0x85f   :  { %v13150_v49 = vpop.eup %11244 }
 0x860   :  { %v7065_v31 = vsel %vm1383_vm10, %v13150_v49, 0.0 }
 0x861   :  { %7039 = vadd.xlane.f32.xlu1 %v7038_v24  ;;  %7048 = vadd.xlane.f32.xlu0 %v7047_v26 }
 0x863   :  { %v13155_v41 = vpop.eup %11246 }
 0x864   :  { %v7071_v36 = vsel %vm1383_vm10, %v13155_v41, 0.0 }
 0x865   :  { %7054 = vadd.xlane.f32.xlu0 %v7053_v63 }
 0x869   :  { %7060 = vadd.xlane.f32.xlu0 %v7059_v45 }
 0x86b   :  { %v6887_v10 = vpop.xlane.xlu0 %6886 }
 0x86c   :  { %v6919_v4 = vsub.f32 %v12993_v43, %v6887_v10 }
 0x86d   :  { %7066 = vadd.xlane.f32.xlu0 %v7065_v31 }
 0x86e   :  { %v6982_v12 = vmul.f32 1.442695, %v6919_v4 }
 0x870   :  { %11248 = vpow2.f32 %v6982_v12 }
 0x871   :  { %7072 = vadd.xlane.f32.xlu0 %v7071_v36 }
 0x873   :  { %v6986_v6 = vpop.xlane.xlu1 %6985 }
 0x874   :  { %11250 = vrcp.f32 %v6986_v6 }
 0x877   :  { %v6854_v48 = vpop.xlane.xlu1 %6853 }
 0x878   :  { %v6908_v37 = vsub.f32 %v13004_v8, %v6854_v48 }
 0x87a   :  { %v13160_v57 = vpop.eup %11248  ;;  %v6960_v43 = vmul.f32 1.442695, %v6908_v37 }
 0x87b   :  { %v6860_v15 = vpop.xlane.xlu1 %6859  ;;  %v7077_v35 = vsel %vm1383_vm10, %v13160_v57, 0.0 }
 0x87c   :  { %11252 = vpow2.f32 %v6960_v43  ;;  %v6910_v47 = vsub.f32 %v13010_v33, %v6860_v15  ;;  %7078 = vadd.xlane.f32.xlu0 %v7077_v35 }
 0x87e   :  { %v11251_v11 = vpop.eup %11250  ;;  %v6964_v5 = vmul.f32 1.442695, %v6910_v47 }
 0x87f   :  { %v7112_v24 = vmul.f32 %v11251_v11, %v13001_v59  ;;  %v6866_v26 = vpop.xlane.xlu1 %6865 }
 0x880   :  { %11254 = vpow2.f32 %v6964_v5  ;;  %v6912_v63 = vsub.f32 %v13014_v50, %v6866_v26 }
 0x881   :  { %10830 = vmatmul.mubr.msk.f32.vlgmr.msra.gmra.mrb[62].mxu0 %vm1383_vm10, %v7112_v24 }
 0x882   :  { %v6968_v8 = vmul.f32 1.442695, %v6912_v63  ;;  %10838 = vmatpush3.msra.mxu0 %v12922_v38  ;;  %10839 = vmatprep.mubr.msk.f32.mxu0 %vm11340_vm1, %v13581_v30 }
 0x883   :  { %v6872_v45 = vpop.xlane.xlu1 %6871  ;;  %10847 = vmatprep.subr.mxu0 %v13581_v30 }
 0x884   :  { %11256 = vpow2.f32 %v6968_v8  ;;  %v6914_v33 = vsub.f32 %v13020_v3, %v6872_v45 }
 0x886   :  { %v13173_v10 = vpop.eup %11252  ;;  %v6972_v59 = vmul.f32 1.442695, %v6914_v33 }
 0x887   :  { %v6878_v4 = vpop.xlane.xlu1 %6877  ;;  %v7044_v50 = vsel %vm1383_vm10, %v13173_v10, 0.0 }
 0x888   :  { %11258 = vpow2.f32 %v6972_v59  ;;  %v6916_v31 = vsub.f32 %v13024_v62, %v6878_v4  ;;  %7045 = vadd.xlane.f32.xlu1 %v7044_v50 }
 0x88a   :  { %v13178_v38 = vpop.eup %11254  ;;  %v6976_v12 = vmul.f32 1.442695, %v6916_v31 }
 0x88b   :  { %v6884_v36 = vpop.xlane.xlu1 %6883  ;;  %v7050_v6 = vsel %vm1383_vm10, %v13178_v38, 0.0 }
 0x88c   :  { %11260 = vpow2.f32 %v6976_v12  ;;  %v6918_v3 = vsub.f32 %v13030_v23, %v6884_v36  ;;  %7051 = vadd.xlane.f32.xlu1 %v7050_v6 }
 0x88e   :  { %v13183_v48 = vpop.eup %11256  ;;  %v6980_v37 = vmul.f32 1.442695, %v6918_v3 }
 0x88f   :  { %v7056_v43 = vsel %vm1383_vm10, %v13183_v48, 0.0 }
 0x890   :  { %11262 = vpow2.f32 %v6980_v37  ;;  %7057 = vadd.xlane.f32.xlu1 %v7056_v43 }
 0x892   :  { %v13187_v62 = vpop.eup %11258  ;;  %9424 = vrot.lane.b32.xlu0 %v12592_v16, %s11349_s25 }
 0x893   :  { %v7062_v15 = vsel %vm1383_vm10, %v13187_v62, 0.0 }
 0x894   :  { %7063 = vadd.xlane.f32.xlu1 %v7062_v15 }
 0x895   :  { %v7001_v35 = vpop.xlane.xlu0 %7000 }
 0x896   :  { %v13193_v23 = vpop.eup %11260 }
 0x897   :  { %v7068_v47 = vsel %vm1383_vm10, %v13193_v23, 0.0 }
 0x898   :  { %7069 = vadd.xlane.f32.xlu1 %v7068_v47 }
 0x899   :  { %v6989_v11 = vpop.xlane.xlu0 %6988 }
 0x89a   :  { %v13197_v5 = vpop.eup %11262  ;;  %11264 = vrcp.f32 %v6989_v11 }
 0x89b   :  { %v7074_v24 = vsel %vm1383_vm10, %v13197_v5, 0.0 }
 0x89c   :  { %7075 = vadd.xlane.f32.xlu1 %v7074_v24 }
 0x89d   :  { %v6992_v16 = vpop.xlane.xlu1 %6991  ;;  %v7007_v26 = vpop.xlane.xlu0 %7006 }
 0x89e   :  { %11266 = vrcp.f32 %v6992_v16 }
 0x8a1   :  { %v7013_v63 = vpop.xlane.xlu0 %7012 }
 0x8a4   :  { %v11265_v8 = vpop.eup %11264 }
 0x8a5   :  { %v7113_v45 = vmul.f32 %v11265_v8, %v13043_v0  ;;  %v6995_v33 = vpop.xlane.xlu0 %6994 }
 0x8a6   :  { %11268 = vrcp.f32 %v6995_v33 }
 0x8a7   :  { %10835 = vmatmul.mubr.msk.f32.vlgmr.msra.gmra.mrb[62].mxu1 %vm1383_vm10, %v7113_v45  ;;  %11270 = vrcp.f32 %v7001_v35 }
 0x8a8   :  { %v11267_v59 = vpop.eup %11266  ;;  %10843 = vmatpush3.msra.mxu1 %v12914_v25  ;;  %10844 = vmatprep.mubr.msk.f32.mxu1 %vm11340_vm1, %v13581_v30  ;;  %11272 = vrcp.f32 %v7007_v26 }
 0x8a9   :  { %v7114_v4 = vmul.f32 %v11267_v59, %v13050_v14  ;;  %10852 = vmatprep.subr.mxu1 %v13581_v30  ;;  %11274 = vrcp.f32 %v7013_v63  ;;  %v13612_v59 = vld [vmem:[#allocation10_spill] sm:$0xff] }
 0x8ab   :  { %10840 = vmatmul.mubr.msk.f32.vlgmr.msra.gmra.mrb[64].mxu0 %vm1383_vm10, %v7114_v4 }
 0x8ac   :  { %10848 = vmatpush3.msra.mxu0 %v12926_v13  ;;  %10849 = vmatprep.mubr.msk.f32.mxu0 %vm11340_vm1, %v13581_v30 }
 0x8ad   :  { %9500 = vrot.lane.b32.xlu1 %v12618_v7, %s11349_s25  ;;  %10857 = vmatprep.subr.mxu0 %v13581_v30 }
 0x8b0   :  { %v11269_v25 = vpop.eup %11268 }
 0x8b1   :  { %v7115_v0 = vmul.f32 %v11269_v25, %v13060_v28  ;;  %v11271_v14 = vpop.eup %11270 }
 0x8b2   :  { %v7117_v13 = vmul.f32 %v11271_v14, %v13039_v53  ;;  %v11273_v50 = vpop.eup %11272 }
 0x8b3   :  { %10845 = vmatmul.mubr.msk.f32.vlgmr.msra.gmra.mrb[64].mxu1 %vm1383_vm10, %v7115_v0  ;;  %v7119_v7 = vmul.f32 %v11273_v50, %v13048_v39 }
 0x8b4   :  { %10853 = vmatpush3.msra.mxu1 %v12916_v22  ;;  %10854 = vmatprep.mubr.msk.f32.mxu1 %vm11340_vm1, %v13581_v30  ;;  %v11275_v22 = vpop.eup %11274 }
 0x8b5   :  { %10862 = vmatprep.subr.mxu1 %v13581_v30  ;;  %v7121_v53 = vmul.f32 %v11275_v22, %v13056_v60  ;;  %v13615_v22 = vld [vmem:[#allocation7_spill] sm:$0xff] }
 0x8b7   :  { %10855 = vmatmul.mubr.msk.f32.vlgmr.msra.gmra.mrb[66].mxu1 %vm1383_vm10, %v7117_v13 }
 0x8b8   :  { %10863 = vmatpush3.msra.mxu1 %v12918_v27  ;;  %10864 = vmatprep.mubr.msk.f32.mxu1 %vm11340_vm1, %v13581_v30  ;;  %v13239_v27 = vpop.permute.xlu1 %9348 }
 0x8b9   :  { %10872 = vmatprep.subr.mxu1 %v13581_v30 }
 0x8bb   :  { %10865 = vmatmul.mubr.msk.f32.vlgmr.msra.gmra.mrb[68].mxu1 %vm1383_vm10, %v7119_v7 }
 0x8bc   :  { %10873 = vmatpush3.msra.mxu1 %v12920_v29  ;;  %10874 = vmatprep.mubr.msk.f32.mxu1 %vm11340_vm1, %v13581_v30  ;;  %v13241_v29 = vpop.permute.xlu0 %9272 }
 0x8bd   :  { %10882 = vmatprep.subr.mxu1 %v13581_v30 }
 0x8bf   :  { %10875 = vmatmul.mubr.msk.f32.vlgmr.msra.gmra.mrb[70].mxu1 %vm1383_vm10, %v7121_v53 }
 0x8c0   :  { %10883 = vmatpush3.msra.mxu1 %v12924_v17  ;;  %10884 = vmatprep.mubr.msk.f32.mxu1 %vm11340_vm1, %v13581_v30 }
 0x8c1   :  { %10892 = vmatprep.subr.mxu1 %v13581_v30 }
 0x8d2   :  { %v6998_v39 = vpop.xlane.xlu1 %6997 }
 0x8d3   :  { %11276 = vrcp.f32 %v6998_v39 }
 0x8d6   :  { %v7004_v28 = vpop.xlane.xlu1 %7003 }
 0x8d7   :  { %11278 = vrcp.f32 %v7004_v28 }
 0x8da   :  { %v7010_v60 = vpop.xlane.xlu1 %7009  ;;  %v7019_v31 = vpop.xlane.xlu0 %7018 }
 0x8db   :  { %11280 = vrcp.f32 %v7010_v60 }
 0x8dc   :  { %11282 = vrcp.f32 %v7019_v31  ;;  %v13617_v31 = vld [vmem:[#allocation15_spill] sm:$0xff] }
 0x8dd   :  { %v11277_v12 = vpop.eup %11276 }
 0x8de   :  { %v7116_v17 = vmul.f32 %v11277_v12, %v13076_v44  ;;  %v7016_v36 = vpop.xlane.xlu1 %7015  ;;  %v7025_v6 = vpop.xlane.xlu0 %7024 }
 0x8df   :  { %11284 = vrcp.f32 %v7016_v36 }
 0x8e0   :  { %11286 = vrcp.f32 %v7025_v6  ;;  %10850 = vmatmul.mubr.msk.f32.vlgmr.msra.gmra.mrb[66].mxu0 %vm1383_vm10, %v7116_v17  ;;  %v13619_v6 = vld [vmem:[#allocation16_spill] sm:$0xff] }
 0x8e1   :  { %v11279_v3 = vpop.eup %11278  ;;  %10858 = vmatpush3.msra.mxu0 %v12930_v42  ;;  %10859 = vmatprep.mubr.msk.f32.mxu0 %vm11340_vm1, %v13581_v30 }
 0x8e2   :  { %v7118_v37 = vmul.f32 %v11279_v3, %v13082_v55  ;;  %v7022_v43 = vpop.xlane.xlu1 %7021  ;;  %v7031_v15 = vpop.xlane.xlu0 %7030  ;;  %10867 = vmatprep.subr.mxu0 %v13581_v30 }
 0x8e3   :  { %11288 = vrcp.f32 %v7022_v43 }
 0x8e4   :  { %11290 = vrcp.f32 %v7031_v15  ;;  %10860 = vmatmul.mubr.msk.f32.vlgmr.msra.gmra.mrb[68].mxu0 %vm1383_vm10, %v7118_v37 }
 0x8e5   :  { %v11281_v44 = vpop.eup %11280  ;;  %10868 = vmatpush3.msra.mxu0 %v12946_v18  ;;  %10869 = vmatprep.mubr.msk.f32.mxu0 %vm11340_vm1, %v13581_v30 }
 0x8e6   :  { %v11283_v42 = vpop.eup %11282  ;;  %v7120_v35 = vmul.f32 %v11281_v44, %v13086_v21  ;;  %v7028_v47 = vpop.xlane.xlu1 %7027  ;;  %10877 = vmatprep.subr.mxu0 %v13581_v30  ;;  %v13621_v44 = vld [vmem:[#allocation18_spill] sm:$0xff] }
 0x8e7   :  { %v7037_v11 = vpop.xlane.xlu0 %7036  ;;  %v7123_v55 = vmul.f32 %v11283_v42, %v13090_v19  ;;  %11292 = vrcp.f32 %v7028_v47 }
 0x8e8   :  { %11294 = vrcp.f32 %v7037_v11  ;;  %10870 = vmatmul.mubr.msk.f32.vlgmr.msra.gmra.mrb[70].mxu0 %vm1383_vm10, %v7120_v35 }
 0x8e9   :  { %v11285_v24 = vpop.eup %11284  ;;  %10878 = vmatpush3.msra.mxu0 %v12958_v2  ;;  %10885 = vmatmul.mubr.msk.f32.vlgmr.msra.gmra.mrb[72].mxu1 %vm1383_vm10, %v7123_v55 }
 0x8ea   :  { %v11287_v18 = vpop.eup %11286  ;;  %v7122_v16 = vmul.f32 %v11285_v24, %v13094_v51  ;;  %10893 = vmatpush3.msra.mxu1 %v12928_v52  ;;  %v7034_v21 = vpop.xlane.xlu1 %7033  ;;  %10879 = vmatprep.mubr.msk.f32.mxu0 %vm11340_vm1, %v13581_v30  ;;  %v13610_v52 = vld [vmem:[#allocation6_spill] sm:$0xff] }
 0x8eb   :  { %v7043_v26 = vpop.xlane.xlu0 %7042  ;;  %v7125_v19 = vmul.f32 %v11287_v18, %v13100_v40  ;;  %11296 = vrcp.f32 %v7034_v21  ;;  %10887 = vmatprep.subr.mxu0 %v13581_v30  ;;  %10894 = vmatprep.mubr.msk.f32.mxu1 %vm11340_vm1, %v13581_v30  ;;  %v13611_v40 = vld [vmem:[#allocation5_spill] sm:$0xff] }
 0x8ec   :  { %11298 = vrcp.f32 %v7043_v26  ;;  %10902 = vmatprep.subr.mxu1 %v13581_v30  ;;  %10880 = vmatmul.mubr.msk.f32.vlgmr.msra.gmra.mrb[72].mxu0 %vm1383_vm10, %v7122_v16  ;;  %v13622_v18 = vld [vmem:[#allocation9_spill] sm:$0xff] }
 0x8ed   :  { %v11289_v2 = vpop.eup %11288  ;;  %10888 = vmatpush3.msra.mxu0 %v13610_v52  ;;  %10895 = vmatmul.mubr.msk.f32.vlgmr.msra.gmra.mrb[74].mxu1 %vm1383_vm10, %v7125_v19 }
 0x8ee   :  { %v11291_v51 = vpop.eup %11290  ;;  %v7124_v63 = vmul.f32 %v11289_v2, %v13103_v20  ;;  %10903 = vmatpush3.msra.mxu1 %v13611_v40  ;;  %v7040_v8 = vpop.xlane.xlu1 %7039  ;;  %10889 = vmatprep.mubr.msk.f32.mxu0 %vm11340_vm1, %v13581_v30 }
 0x8ef   :  { %v7049_v45 = vpop.xlane.xlu0 %7048  ;;  %v7127_v33 = vmul.f32 %v11291_v51, %v13109_v54  ;;  %11300 = vrcp.f32 %v7040_v8  ;;  %10897 = vmatprep.subr.mxu0 %v13581_v30  ;;  %10904 = vmatprep.mubr.msk.f32.mxu1 %vm11340_vm1, %v13581_v30  ;;  %v13613_v54 = vld [vmem:[#allocation4_spill] sm:$0xff] }
 0x8f0   :  { %11302 = vrcp.f32 %v7049_v45  ;;  %10912 = vmatprep.subr.mxu1 %v13581_v30  ;;  %10890 = vmatmul.mubr.msk.f32.vlgmr.msra.gmra.mrb[74].mxu0 %vm1383_vm10, %v7124_v63  ;;  %v13624_v51 = vld [vmem:[#allocation8_spill] sm:$0xff] }
 0x8f1   :  { %v11293_v20 = vpop.eup %11292  ;;  %10898 = vmatpush3.msra.mxu0 %v13612_v59  ;;  %10905 = vmatmul.mubr.msk.f32.vlgmr.msra.gmra.mrb[76].mxu1 %vm1383_vm10, %v7127_v33 }
 0x8f2   :  { %v11295_v4 = vpop.eup %11294  ;;  %v7126_v25 = vmul.f32 %v11293_v20, %v13112_v61  ;;  %10913 = vmatpush3.msra.mxu1 %v13613_v54  ;;  %10899 = vmatprep.mubr.msk.f32.mxu0 %vm11340_vm1, %v13581_v30  ;;  %v13614_v61 = vld [vmem:[#allocation11_spill] sm:$0xff] }
 0x8f3   :  { %v7055_v0 = vpop.xlane.xlu0 %7054  ;;  %v7129_v14 = vmul.f32 %v11295_v4, %v13118_v9  ;;  %10907 = vmatprep.subr.mxu0 %v13581_v30  ;;  %10914 = vmatprep.mubr.msk.f32.mxu1 %vm11340_vm1, %v13581_v30 }
 0x8f4   :  { %11304 = vrcp.f32 %v7055_v0  ;;  %10922 = vmatprep.subr.mxu1 %v13581_v30  ;;  %10900 = vmatmul.mubr.msk.f32.vlgmr.msra.gmra.mrb[76].mxu0 %vm1383_vm10, %v7126_v25 }
 0x8f5   :  { %v11297_v13 = vpop.eup %11296  ;;  %10908 = vmatpush3.msra.mxu0 %v13614_v61  ;;  %10915 = vmatmul.mubr.msk.f32.vlgmr.msra.gmra.mrb[78].mxu1 %vm1383_vm10, %v7129_v14  ;;  %v9697_v61 = vld [vmem:[%s13534_s9] sm:$0xff] }
 0x8f6   :  { %v11299_v50 = vpop.eup %11298  ;;  %v7128_v7 = vmul.f32 %v11297_v13, %v13121_v56  ;;  %10923 = vmatpush3.msra.mxu1 %v13615_v22  ;;  %10909 = vmatprep.mubr.msk.f32.mxu0 %vm11340_vm1, %v13581_v30  ;;  %v13616_v56 = vld [vmem:[#allocation13_spill] sm:$0xff] }
 0x8f7   :  { %v7061_v9 = vpop.xlane.xlu0 %7060  ;;  %v7131_v53 = vmul.f32 %v11299_v50, %v13127_v34  ;;  %10917 = vmatprep.subr.mxu0 %v13581_v30  ;;  %10924 = vmatprep.mubr.msk.f32.mxu1 %vm11340_vm1, %v13581_v30  ;;  %v9698_v50 = vld [vmem:[%s13534_s9 + $0x8] sm:$0xff] }
 0x8f8   :  { %11306 = vrcp.f32 %v7061_v9  ;;  %10932 = vmatprep.subr.mxu1 %v13581_v30  ;;  %10910 = vmatmul.mubr.msk.f32.vlgmr.msra.gmra.mrb[78].mxu0 %vm1383_vm10, %v7128_v7  ;;  %v11042_v7 = vpack.c.bf16 %v9698_v50, %v9697_v61 }
 0x8f9   :  { %v11301_v39 = vpop.eup %11300  ;;  %10918 = vmatpush3.msra.mxu0 %v13616_v56  ;;  %10925 = vmatmul.mubr.msk.f32.vlgmr.msra.gmra.mrb[80].mxu1 %vm1383_vm10, %v7131_v53  ;;  %v9699_v53 = vld [vmem:[%s13534_s9 + $0x10] sm:$0xff] }
 0x8fa   :  { %v11303_v28 = vpop.eup %11302  ;;  %v7130_v60 = vmul.f32 %v11301_v39, %v13130_v32  ;;  %10933 = vmatpush3.msra.mxu1 %v13617_v31  ;;  %10919 = vmatprep.mubr.msk.f32.mxu0 %vm11340_vm1, %v13581_v30  ;;  %v13618_v32 = vld [vmem:[#allocation14_spill] sm:$0xff]  ;;  %v9700_v39 = vld [vmem:[%s13534_s9 + $0x18] sm:$0xff] }
 0x8fb   :  { %v7067_v34 = vpop.xlane.xlu0 %7066  ;;  %v7133_v12 = vmul.f32 %v11303_v28, %v13136_v58  ;;  %10927 = vmatprep.subr.mxu0 %v13581_v30  ;;  %10934 = vmatprep.mubr.msk.f32.mxu1 %vm11340_vm1, %v13581_v30  ;;  %v11046_v56 = vpack.c.bf16 %v9700_v39, %v9699_v53 }
 0x8fc   :  { %11308 = vrcp.f32 %v7067_v34  ;;  %10942 = vmatprep.subr.mxu1 %v13581_v30  ;;  %10920 = vmatmul.mubr.msk.f32.vlgmr.msra.gmra.mrb[80].mxu0 %vm1383_vm10, %v7130_v60 }
 0x8fd   :  { %10928 = vmatpush3.msra.mxu0 %v13618_v32  ;;  %10935 = vmatmul.mubr.msk.f32.vlgmr.msra.gmra.mrb[82].mxu1 %vm1383_vm10, %v7133_v12 }
 0x8fe   :  { %v11305_v17 = vpop.eup %11304  ;;  %10943 = vmatpush3.msra.mxu1 %v13619_v6  ;;  %10944 = vmatprep.mubr.msk.f32.mxu1 %vm11340_vm1, %v13581_v30 }
 0x8ff   :  { %v7135_v36 = vmul.f32 %v11305_v17, %v13142_v1  ;;  %v7073_v58 = vpop.xlane.xlu0 %7072  ;;  %10952 = vmatprep.subr.mxu1 %v13581_v30  ;;  %10929 = vmatprep.mubr.msk.f32.mxu0 %vm11340_vm1, %v13581_v30  ;;  %v13620_v1 = vld [vmem:[#allocation17_spill] sm:$0xff] }
 0x900   :  { %11310 = vrcp.f32 %v7073_v58  ;;  %10937 = vmatprep.subr.mxu0 %v13581_v30 }
 0x901   :  { %10945 = vmatmul.mubr.msk.f32.vlgmr.msra.gmra.mrb[84].mxu1 %vm1383_vm10, %v7135_v36 }
 0x902   :  { %v11307_v3 = vpop.eup %11306  ;;  %10953 = vmatpush3.msra.mxu1 %v13620_v1  ;;  %10954 = vmatprep.mubr.msk.f32.mxu1 %vm11340_vm1, %v13581_v30 }
 0x903   :  { %v7137_v37 = vmul.f32 %v11307_v3, %v13146_v46  ;;  %10962 = vmatprep.subr.mxu1 %v13581_v30 }
 0x905   :  { %10955 = vmatmul.mubr.msk.f32.vlgmr.msra.gmra.mrb[86].mxu1 %vm1383_vm10, %v7137_v37 }
 0x906   :  { %v11309_v43 = vpop.eup %11308  ;;  %10963 = vmatpush3.msra.mxu1 %v13621_v44  ;;  %10964 = vmatprep.mubr.msk.f32.mxu1 %vm11340_vm1, %v13581_v30 }
 0x907   :  { %v7139_v15 = vmul.f32 %v11309_v43, %v13150_v49  ;;  %10972 = vmatprep.subr.mxu1 %v13581_v30 }
 0x909   :  { %10965 = vmatmul.mubr.msk.f32.vlgmr.msra.gmra.mrb[88].mxu1 %vm1383_vm10, %v7139_v15  ;;  %v7079_v47 = vpop.xlane.xlu0 %7078 }
 0x90a   :  { %v11311_v46 = vpop.eup %11310  ;;  %10973 = vmatpush3.msra.mxu1 %v13239_v27  ;;  %10974 = vmatprep.mubr.msk.f32.mxu1 %vm11340_vm1, %v13581_v30 }
 0x90b   :  { %v7141_v42 = vmul.f32 %v11311_v46, %v13155_v41  ;;  %10982 = vmatprep.subr.mxu1 %v13581_v30 }
 0x90d   :  { %10975 = vmatmul.mubr.msk.f32.vlgmr.msra.gmra.mrb[90].mxu1 %vm1383_vm10, %v7141_v42 }
 0x90e   :  { %10984 = vmatprep.mubr.msk.f32.mxu1 %vm11340_vm1, %v13581_v30 }
 0x915   :  { %v7046_v49 = vpop.xlane.xlu1 %7045 }
 0x916   :  { %11312 = vrcp.f32 %v7046_v49 }
 0x919   :  { %v7052_v35 = vpop.xlane.xlu1 %7051 }
 0x91a   :  { %11314 = vrcp.f32 %v7052_v35 }
 0x91d   :  { %v7058_v11 = vpop.xlane.xlu1 %7057 }
 0x91e   :  { %11316 = vrcp.f32 %v7058_v11 }
 0x91f   :  { %11318 = vrcp.f32 %v7079_v47 }
 0x920   :  { %v11313_v41 = vpop.eup %11312 }
 0x921   :  { %v7132_v27 = vmul.f32 %v11313_v41, %v13173_v10  ;;  %v7064_v55 = vpop.xlane.xlu1 %7063  ;;  %v13623_v10 = vld [vmem:[#allocation12_spill] sm:$0xff] }
 0x922   :  { %11320 = vrcp.f32 %v7064_v55 }
 0x923   :  { %10930 = vmatmul.mubr.msk.f32.vlgmr.msra.gmra.mrb[82].mxu0 %vm1383_vm10, %v7132_v27 }
 0x924   :  { %v11315_v24 = vpop.eup %11314  ;;  %10938 = vmatpush3.msra.mxu0 %v13622_v18  ;;  %10939 = vmatprep.mubr.msk.f32.mxu0 %vm11340_vm1, %v13581_v30 }
 0x925   :  { %v7134_v16 = vmul.f32 %v11315_v24, %v13178_v38  ;;  %v7070_v21 = vpop.xlane.xlu1 %7069  ;;  %10947 = vmatprep.subr.mxu0 %v13581_v30 }
 0x926   :  { %11322 = vrcp.f32 %v7070_v21 }
 0x927   :  { %10940 = vmatmul.mubr.msk.f32.vlgmr.msra.gmra.mrb[84].mxu0 %vm1383_vm10, %v7134_v16 }
 0x928   :  { %v11317_v26 = vpop.eup %11316  ;;  %10948 = vmatpush3.msra.mxu0 %v13623_v10  ;;  %10949 = vmatprep.mubr.msk.f32.mxu0 %vm11340_vm1, %v13581_v30 }
 0x929   :  { %v7136_v19 = vmul.f32 %v11317_v26, %v13183_v48  ;;  %v7076_v2 = vpop.xlane.xlu1 %7075  ;;  %10957 = vmatprep.subr.mxu0 %v13581_v30  ;;  %v11319_v52 = vpop.eup %11318 }
 0x92a   :  { %11324 = vrcp.f32 %v7076_v2  ;;  %v7143_v63 = vmul.f32 %v11319_v52, %v13160_v57  ;;  %v9425_v57 = vpop.permute.xlu0 %9424 }
 0x92b   :  { %10950 = vmatmul.mubr.msk.f32.vlgmr.msra.gmra.mrb[86].mxu0 %vm1383_vm10, %v7136_v19 }
 0x92c   :  { %v11321_v38 = vpop.eup %11320  ;;  %10958 = vmatpush3.msra.mxu0 %v13624_v51  ;;  %10959 = vmatprep.mubr.msk.f32.mxu0 %vm11340_vm1, %v13581_v30 }
 0x92d   :  { %v7138_v40 = vmul.f32 %v11321_v38, %v13187_v62  ;;  %v9501_v8 = vpop.permute.xlu1 %9500  ;;  %10967 = vmatprep.subr.mxu0 %v13581_v30 }
 0x92e   :  { %10983 = vmatpush3.msra.mxu1 %v9501_v8 }
 0x92f   :  { %10960 = vmatmul.mubr.msk.f32.vlgmr.msra.gmra.mrb[88].mxu0 %vm1383_vm10, %v7138_v40  ;;  %10985 = vmatmul.mubr.msk.f32.vlgmr.msra.gmra.mrb[92].mxu1 %vm1383_vm10, %v7143_v63 }
 0x930   :  { %v11323_v48 = vpop.eup %11322  ;;  %10968 = vmatpush3.msra.mxu0 %v13241_v29  ;;  %10969 = vmatprep.mubr.msk.f32.mxu0 %vm11340_vm1, %v13581_v30 }
 0x931   :  { %v7140_v45 = vmul.f32 %v11323_v48, %v13193_v23  ;;  %10977 = vmatprep.subr.mxu0 %v13581_v30 }
 0x933   :  { %10970 = vmatmul.mubr.msk.f32.vlgmr.msra.gmra.mrb[90].mxu0 %vm1383_vm10, %v7140_v45 }
 0x934   :  { %v11325_v62 = vpop.eup %11324  ;;  %10978 = vmatpush3.msra.mxu0 %v9425_v57  ;;  %10979 = vmatprep.mubr.msk.f32.mxu0 %vm11340_vm1, %v13581_v30  ;;  %vm9688_vm1 = vcmask 195584  }
 0x935   :  { %v7142_v33 = vmul.f32 %v11325_v62, %v13197_v5  ;;  %11043 = vmatprep.subr.bf16.mxu0 %v11042_v7 }
 0x937   :  { %10980 = vmatmul.mubr.msk.f32.vlgmr.msra.gmra.mrb[92].mxu0 %vm1383_vm10, %v7142_v33 }
 0x938   :  { %11045 = vmatpush3.bf16.msra.mxu0 %v11042_v7 }
 0x939   :  { %11047 = vmatprep.subr.bf16.mxu0 %v11046_v56 }
 0x93c   :  { %11049 = vmatpush3.bf16.msra.mxu0 %v11046_v56 }
 0x954   :  { %v13381_v29 = vpop.f32.mrb[62].mxu0 }
 0x955   :  { %v10831_v20 = vpop.f32.mrb[63].mxu0 }
 0x97a   :  { %v7292_v59 = vpop.f32.mrb[62].mxu1 }
 0x97b   :  { %9584 = vrot.lane.b32.xlu0 %v7292_v59, %s11353_s8  ;;  %v10836_v23 = vpop.f32.mrb[63].mxu1 }
 0x97e   :  { %v7368_v4 = vpop.f32.mrb[64].mxu0 }
 0x97f   :  { %v10841_v25 = vpop.f32.mrb[65].mxu0  ;;  %9616 = vrot.lane.b32.xlu0 %v7368_v4, %s11350_s26 }
 0x986   :  { %v7444_v54 = vpop.f32.mrb[64].mxu1 }
 0x987   :  { %9648 = vrot.lane.b32.xlu0 %v7444_v54, %s11354_s2  ;;  %v10846_v30 = vpop.f32.mrb[65].mxu1 }
 0x98a   :  { %v7596_v5 = vpop.f32.mrb[66].mxu1 }
 0x98b   :  { %9586 = vrot.lane.b32.xlu1 %v7596_v5, %s11353_s8  ;;  %v10856_v0 = vpop.f32.mrb[67].mxu1 }
 0x98e   :  { %v7748_v14 = vpop.f32.mrb[68].mxu1 }
 0x98f   :  { %v10866_v13 = vpop.f32.mrb[69].mxu1 }
 0x992   :  { %v7900_v22 = vpop.f32.mrb[70].mxu1 }
 0x993   :  { %9588 = vrot.lane.b32.xlu0 %v7900_v22, %s11353_s8  ;;  %v10876_v9 = vpop.f32.mrb[71].mxu1 }
 0x9b3   :  { %v13400_v28 = vpop.f32.mrb[66].mxu0 }
 0x9b4   :  { %v10851_v60 = vpop.f32.mrb[67].mxu0 }
 0x9b7   :  { %v7672_v31 = vpop.f32.mrb[68].mxu0 }
 0x9b8   :  { %v10861_v34 = vpop.f32.mrb[69].mxu0  ;;  %9618 = vrot.lane.b32.xlu1 %v7672_v31, %s11350_s26 }
 0x9bb   :  { %v13403_v12 = vpop.f32.mrb[70].mxu0 }
 0x9bc   :  { %v8052_v17 = vpop.f32.mrb[72].mxu1  ;;  %v10871_v32 = vpop.f32.mrb[71].mxu0  ;;  %9650 = vrot.lane.b32.xlu1 %v7748_v14, %s11354_s2  ;;  %v10201_v14 = vld [vmem:[%s13535_s4] ss:$0 sm:$0xff] }
 0x9bd   :  { %v10886_v36 = vpop.f32.mrb[73].mxu1 }
 0x9bf   :  { %v7976_v6 = vpop.f32.mrb[72].mxu0 }
 0x9c0   :  { %v8204_v58 = vpop.f32.mrb[74].mxu1  ;;  %v10881_v3 = vpop.f32.mrb[73].mxu0  ;;  %9620 = vrot.lane.b32.xlu0 %v7976_v6, %s11350_s26 }
 0x9c1   :  { %9590 = vrot.lane.b32.xlu1 %v8204_v58, %s11353_s8  ;;  %v10896_v37 = vpop.f32.mrb[75].mxu1 }
 0x9c3   :  { %v13408_v1 = vpop.f32.mrb[74].mxu0 }
 0x9c4   :  { %v8356_v43 = vpop.f32.mrb[76].mxu1  ;;  %v10891_v15 = vpop.f32.mrb[75].mxu0  ;;  %9652 = vrot.lane.b32.xlu0 %v8052_v17, %s11354_s2 }
 0x9c5   :  { %v10906_v44 = vpop.f32.mrb[77].mxu1 }
 0x9c7   :  { %v8280_v46 = vpop.f32.mrb[76].mxu0 }
 0x9c8   :  { %v8508_v42 = vpop.f32.mrb[78].mxu1  ;;  %v10901_v49 = vpop.f32.mrb[77].mxu0  ;;  %9622 = vrot.lane.b32.xlu1 %v8280_v46, %s11350_s26 }
 0x9c9   :  { %9592 = vrot.lane.b32.xlu0 %v8508_v42, %s11353_s8  ;;  %v10916_v35 = vpop.f32.mrb[79].mxu1 }
 0x9cb   :  { %v13413_v47 = vpop.f32.mrb[78].mxu0 }
 0x9cc   :  { %v8660_v11 = vpop.f32.mrb[80].mxu1  ;;  %v10911_v41 = vpop.f32.mrb[79].mxu0  ;;  %9654 = vrot.lane.b32.xlu1 %v8356_v43, %s11354_s2 }
 0x9cd   :  { %v10926_v27 = vpop.f32.mrb[81].mxu1 }
 0x9cf   :  { %v8584_v55 = vpop.f32.mrb[80].mxu0 }
 0x9d0   :  { %v8812_v24 = vpop.f32.mrb[82].mxu1  ;;  %v10921_v18 = vpop.f32.mrb[81].mxu0  ;;  %9624 = vrot.lane.b32.xlu0 %v8584_v55, %s11350_s26 }
 0x9d1   :  { %9594 = vrot.lane.b32.xlu1 %v8812_v24, %s11353_s8  ;;  %v10936_v16 = vpop.f32.mrb[83].mxu1 }
 0x9d4   :  { %v8964_v21 = vpop.f32.mrb[84].mxu1  ;;  %9656 = vrot.lane.b32.xlu0 %v8660_v11, %s11354_s2 }
 0x9d5   :  { %v10946_v26 = vpop.f32.mrb[85].mxu1 }
 0x9d8   :  { %v9116_v10 = vpop.f32.mrb[86].mxu1 }
 0x9d9   :  { %9596 = vrot.lane.b32.xlu0 %v9116_v10, %s11353_s8  ;;  %v10956_v19 = vpop.f32.mrb[87].mxu1 }
 0x9dc   :  { %v9268_v2 = vpop.f32.mrb[88].mxu1 }
 0x9dd   :  { %v10966_v52 = vpop.f32.mrb[89].mxu1 }
 0x9e0   :  { %v9420_v38 = vpop.f32.mrb[90].mxu1 }
 0x9e1   :  { %v10976_v51 = vpop.f32.mrb[91].mxu1 }
 0x9e2   :  { %v10192_v51 = vld [vmem:[%s13536_s10] ss:$0 sm:$0xff] }
 0x9ed   :  { %v9585_v63 = vpop.permute.xlu0 %9584 }
 0x9ee   :  { %v9672_v45 = vsel %vm1383_vm10, %v13381_v29, %v9585_v63 }
 0x9f1   :  { %v9617_v40 = vpop.permute.xlu0 %9616 }
 0x9f2   :  { %v9680_v57 = vsel %vm401_vm2, %v9672_v45, %v9617_v40 }
 0x9f6   :  { %v8736_v8 = vpop.f32.mrb[82].mxu0 }
 0x9f7   :  { %v10931_v48 = vpop.f32.mrb[83].mxu0 }
 0x9f9   :  { %v9649_v62 = vpop.permute.xlu0 %9648 }
 0x9fa   :  { %v9689_v33 = vsel %vm9688_vm1, %v9680_v57, %v9649_v62  ;;  %v8888_v20 = vpop.f32.mrb[84].mxu0 }
 0x9fb   :  { %v10941_v59 = vpop.f32.mrb[85].mxu0  ;;  %9626 = vrot.lane.b32.xlu1 %v8888_v20, %s11350_s26  ;;  %10995 = vmatprep.mubr.msk.f32.mxu0 %vm48_vm0, %v9689_v33  ;;  %v13625_v20 = vld [vmem:[#allocation2_spill] sm:$0xff] }
 0x9fd   :  { %v9587_v50 = vpop.permute.xlu1 %9586 }
 0x9fe   :  { %v9040_v23 = vpop.f32.mrb[86].mxu0  ;;  %v9673_v22 = vsel %vm1383_vm10, %v13400_v28, %v9587_v50 }
 0x9ff   :  { %v10951_v4 = vpop.f32.mrb[87].mxu0  ;;  %9658 = vrot.lane.b32.xlu1 %v8964_v21, %s11354_s2 }
 0xa02   :  { %v9192_v25 = vpop.f32.mrb[88].mxu0  ;;  %v9572_v54 = vpop.f32.mrb[92].mxu1 }
 0xa03   :  { %v10961_v30 = vpop.f32.mrb[89].mxu0  ;;  %9628 = vrot.lane.b32.xlu0 %v9192_v25, %s11350_s26  ;;  %9598 = vrot.lane.b32.xlu1 %v9420_v38, %s11353_s8  ;;  %v10986_v29 = vpop.f32.mrb[93].mxu1 }
 0xa05   :  { %v9589_v9 = vpop.permute.xlu0 %9588 }
 0xa06   :  { %v9344_v5 = vpop.f32.mrb[90].mxu0  ;;  %v9674_v31 = vsel %vm1383_vm10, %v13403_v12, %v9589_v9 }
 0xa07   :  { %v10971_v0 = vpop.f32.mrb[91].mxu0  ;;  %9660 = vrot.lane.b32.xlu0 %v9268_v2, %s11354_s2 }
 0xa08   :  { %v13626_v0 = vld [vmem:[#allocation3_spill] sm:$0xff] }
 0xa0a   :  { %v9496_v13 = vpop.f32.mrb[92].mxu0 }
 0xa0b   :  { %9874 = vrot.lane.b32.xlu0 %v10201_v14, %s11349_s25  ;;  %9630 = vrot.lane.b32.xlu1 %v9496_v13, %s11350_s26  ;;  %v10981_v61 = vpop.f32.mrb[93].mxu0  ;;  %v9889_v13 = vsub.f32 0.0, %v13625_v20 }
 0xa0d   :  { %v9891_v61 = vmul.f32 1.442695, %v9889_v13 }
 0xa0f   :  { %9662 = vrot.lane.b32.xlu1 %v9572_v54, %s11354_s2  ;;  %11326 = vpow2.f32 %v9891_v61 }
 0xa19   :  { %v11327_v50 = vpop.eup %11326 }
 0xa2a   :  { %v9619_v7 = vpop.permute.xlu1 %9618 }
 0xa2b   :  { %v9681_v53 = vsel %vm401_vm2, %v9673_v22, %v9619_v7  ;;  %v9895_v7 = vadd.f32 1.0, %v11327_v50 }
 0xa2d   :  { %11328 = vrcp.f32 %v9895_v7 }
 0xa2e   :  { %v9651_v39 = vpop.permute.xlu1 %9650 }
 0xa2f   :  { %v9690_v56 = vsel %vm9688_vm1, %v9681_v53, %v9651_v39 }
 0xa30   :  { %10996 = vmatmul.mubr.msk.f32.vlgmr.msra.gmra.mrb[94].mxu0 %vm48_vm0, %v9690_v56 }
 0xa32   :  { %v9621_v60 = vpop.permute.xlu0 %9620 }
 0xa33   :  { %v9591_v34 = vpop.permute.xlu1 %9590  ;;  %v9682_v17 = vsel %vm401_vm2, %v9674_v31, %v9621_v60 }
 0xa34   :  { %v9675_v6 = vsel %vm1383_vm10, %v13408_v1, %v9591_v34 }
 0xa36   :  { %v9653_v32 = vpop.permute.xlu0 %9652 }
 0xa37   :  { %v9691_v36 = vsel %vm9688_vm1, %v9682_v17, %v9653_v32  ;;  %v11329_v31 = vpop.eup %11328 }
 0xa38   :  { %10998 = vmatprep.mubr.msk.f32.mxu0 %vm48_vm0, %v9691_v36  ;;  %v9901_v32 = vmul.f32 %v11329_v31, %v13625_v20 }
 0xa3a   :  { %v9623_v28 = vpop.permute.xlu1 %9622 }
 0xa3b   :  { %v9683_v58 = vsel %vm401_vm2, %v9675_v6, %v9623_v28  ;;  %v9593_v3 = vpop.permute.xlu0 %9592 }
 0xa3c   :  { %v9676_v15 = vsel %vm1383_vm10, %v13413_v47, %v9593_v3  ;;  %v9890_v3 = vsub.f32 0.0, %v13626_v0 }
 0xa3e   :  { %v9655_v37 = vpop.permute.xlu1 %9654 }
 0xa3f   :  { %v9692_v43 = vsel %vm9688_vm1, %v9683_v58, %v9655_v37  ;;  %v9893_v37 = vmul.f32 1.442695, %v9890_v3 }
 0xa40   :  { %10999 = vmatmul.mubr.msk.f32.gmra.mrb[96].mxu0 %vm48_vm0, %v9692_v43 }
 0xa41   :  { %11330 = vpow2.f32 %v9893_v37 }
 0xa42   :  { %v9625_v12 = vpop.permute.xlu0 %9624 }
 0xa43   :  { %v9684_v44 = vsel %vm401_vm2, %v9676_v15, %v9625_v12  ;;  %v9595_v1 = vpop.permute.xlu1 %9594 }
 0xa44   :  { %v9677_v35 = vsel %vm1383_vm10, %v8736_v8, %v9595_v1 }
 0xa46   :  { %v9657_v46 = vpop.permute.xlu0 %9656 }
 0xa47   :  { %v9693_v42 = vsel %vm9688_vm1, %v9684_v44, %v9657_v46 }
 0xa48   :  { %11001 = vmatprep.mubr.msk.f32.mxu0 %vm48_vm0, %v9693_v42 }
 0xa4b   :  { %v9597_v11 = vpop.permute.xlu0 %9596  ;;  %v11331_v43 = vpop.eup %11330 }
 0xa4c   :  { %v9678_v24 = vsel %vm1383_vm10, %v9040_v23, %v9597_v11  ;;  %v9896_v12 = vadd.f32 1.0, %v11331_v43 }
 0xa4e   :  { %11332 = vrcp.f32 %v9896_v12 }
 0xa6d   :  { %v9627_v49 = vpop.permute.xlu1 %9626 }
 0xa6e   :  { %v9685_v41 = vsel %vm401_vm2, %v9677_v35, %v9627_v49  ;;  %v11333_v35 = vpop.eup %11332 }
 0xa71   :  { %v9659_v27 = vpop.permute.xlu1 %9658 }
 0xa72   :  { %v9694_v55 = vsel %vm9688_vm1, %v9685_v41, %v9659_v27  ;;  %v9902_v27 = vmul.f32 %v11333_v35, %v13626_v0 }
 0xa73   :  { %11002 = vmatmul.mubr.msk.f32.gmra.mrb[98].mxu0 %vm48_vm0, %v9694_v55 }
 0xa75   :  { %v9629_v47 = vpop.permute.xlu0 %9628  ;;  %v9599_v18 = vpop.permute.xlu1 %9598 }
 0xa76   :  { %v9686_v16 = vsel %vm401_vm2, %v9678_v24, %v9629_v47  ;;  %v9679_v19 = vsel %vm1383_vm10, %v9344_v5, %v9599_v18 }
 0xa79   :  { %v9661_v21 = vpop.permute.xlu0 %9660 }
 0xa7a   :  { %v9695_v26 = vsel %vm9688_vm1, %v9686_v16, %v9661_v21  ;;  %v9932_v16 = vld [vmem:[%s13537_s6] sm:$0xff]  ;;  %v9933_v21 = vld [vmem:[%s13537_s6 + $0x8] sm:$0xff] }
 0xa7b   :  { %11004 = vmatprep.mubr.msk.f32.mxu0 %vm48_vm0, %v9695_v26  ;;  %v11050_v26 = vpack.c.bf16 %v9933_v21, %v9932_v16 }
 0xa7d   :  { %v9631_v10 = vpop.permute.xlu1 %9630  ;;  %v9875_v33 = vpop.permute.xlu0 %9874  ;;  %11051 = vmatprep.subr.bf16.mxu1 %v11050_v26 }
 0xa7e   :  { %v9687_v2 = vsel %vm401_vm2, %v9679_v19, %v9631_v10  ;;  %v9877_v59 = vmul.f32 %v9875_v33, %v13625_v20  ;;  %v9878_v14 = vmul.f32 %v9875_v33, %v13626_v0  ;;  %11053 = vmatpush3.bf16.msra.mxu1 %v11050_v26  ;;  %v9934_v10 = vld [vmem:[%s13537_s6 + $0x10] sm:$0xff]  ;;  %v9935_v19 = vld [vmem:[%s13537_s6 + $0x18] sm:$0xff]  ;;  %v10202_v33 = vld [vmem:[%s13538_s5] ss:$0 sm:$0xff] }
 0xa81   :  { %v9663_v52 = vpop.permute.xlu1 %9662 }
 0xa82   :  { %v9696_v38 = vsel %vm9688_vm1, %v9687_v2, %v9663_v52  ;;  %v11054_v2 = vpack.c.bf16 %v9935_v19, %v9934_v10  ;;  %v9936_v52 = vld [vmem:[%s13537_s6 + $0x20] sm:$0xff] }
 0xa83   :  { %11005 = vmatmul.mubr.msk.f32.gmra.mrb[100].mxu0 %vm48_vm0, %v9696_v38  ;;  %v9937_v38 = vld [vmem:[%s13537_s6 + $0x28] sm:$0xff] }
 0xa84   :  { %11055 = vmatprep.subr.bf16.mxu1 %v11054_v2 }
 0xa85   :  { %11057 = vmatpush3.bf16.msra.mxu1 %v11054_v2 }
 0xb03   :  { %v10997_v63 = vpop.f32.mrb[94].mxu0 }
 0xb04   :  { %v9804_v40 = vadd.f32 %v10997_v63, %v10192_v51  ;;  %v9798_v8 = vpop.f32.mrb[95].mxu0  ;;  %v9938_v63 = vld [vmem:[%s13537_s6 + $0x30] sm:$0xff] }
 0xb05   :  { %v9799_v53 = vadd.f32 %v10192_v51, %v9798_v8 }
 0xb06   :  { %9839 = vrot.lane.b32.xlu1 %v9804_v40, %s11350_s26  ;;  %v9939_v40 = vld [vmem:[%s13537_s6 + $0x38] sm:$0xff] }
 0xb07   :  { %v11062_v8 = vpack.c.bf16 %v9939_v40, %v9938_v63 }
 0xb13   :  { %v11000_v48 = vpop.f32.mrb[96].mxu0 }
 0xb14   :  { %v9814_v45 = vadd.f32 %v11000_v48, %v10192_v51  ;;  %v9808_v57 = vpop.f32.mrb[97].mxu0 }
 0xb15   :  { %v9809_v62 = vadd.f32 %v10192_v51, %v9808_v57 }
 0xb16   :  { %9855 = vrot.lane.b32.xlu1 %v9814_v45, %s11355_s29 }
 0xb1a   :  { %9847 = vrot.lane.b32.xlu1 %v9809_v62, %s11339_s16 }
 0xb1e   :  { %9881 = vrot.lane.b32.xlu1 %v9877_v59, %s11349_s25 }
 0xb46   :  { %v11003_v23 = vpop.f32.mrb[98].mxu0 }
 0xb47   :  { %v9824_v4 = vadd.f32 %v11003_v23, %v10192_v51  ;;  %v9818_v25 = vpop.f32.mrb[99].mxu0 }
 0xb48   :  { %v9819_v46 = vadd.f32 %v10192_v51, %v9818_v25 }
 0xb49   :  { %9841 = vrot.lane.b32.xlu0 %v9824_v4, %s11350_s26 }
 0xb56   :  { %v11006_v54 = vpop.f32.mrb[100].mxu0 }
 0xb57   :  { %v9834_v30 = vadd.f32 %v11006_v54, %v10192_v51  ;;  %v9828_v29 = vpop.f32.mrb[101].mxu0 }
 0xb58   :  { %v9829_v5 = vadd.f32 %v10192_v51, %v9828_v29  ;;  %v11058_v51 = vpack.c.bf16 %v9937_v38, %v9936_v52 }
 0xb59   :  { %9857 = vrot.lane.b32.xlu0 %v9834_v30, %s11355_s29 }
 0xb5a   :  { %11059 = vmatprep.subr.bf16.mxu1 %v11058_v51 }
 0xb5b   :  { %11061 = vmatpush3.bf16.msra.mxu1 %v11058_v51 }
 0xb5c   :  { %11063 = vmatprep.subr.bf16.mxu1 %v11062_v8 }
 0xb5d   :  { %9849 = vrot.lane.b32.xlu0 %v9829_v5, %s11339_s16 }
 0xb5f   :  { %11065 = vmatpush3.bf16.msra.mxu1 %v11062_v8 }
 0xb61   :  { %9883 = vrot.lane.b32.xlu0 %v9878_v14, %s11349_s25 }
 0xb78   :  { %v9840_v22 = vpop.permute.xlu1 %9839 }
 0xb79   :  { %v9861_v39 = vsel %vm401_vm2, %v9799_v53, %v9840_v22 }
 0xb88   :  { %v9856_v9 = vpop.permute.xlu1 %9855 }
 0xb8c   :  { %v9848_v56 = vpop.permute.xlu1 %9847 }
 0xb8d   :  { %v9863_v60 = vsel %vm48_vm0, %v9861_v39, %v9848_v56 }
 0xb8e   :  { %v9866_v34 = vsel %vm9865_vm3, %v9863_v60, %v9856_v9 }
 0xb90   :  { %v9882_v17 = vpop.permute.xlu1 %9881 }
 0xb91   :  { %v9887_v36 = vadd.f32 %v9882_v17, %v9866_v34 }
 0xb93   :  { %v9903_v28 = vmul.f32 %v9901_v32, %v9887_v36 }
 0xb95   :  { %v9905_v6 = vmul.f32 %v9903_v28, %v9903_v28 }
 0xb97   :  { %v9908_v58 = vsel %vm9907_vm6, %v9905_v6, 0.0 }
 0xb98   :  { %9909 = vadd.xlane.f32.xlu1 %v9908_v58 }
 0xbbb   :  { %v9842_v15 = vpop.permute.xlu0 %9841 }
 0xbbc   :  { %v9862_v42 = vsel %vm401_vm2, %v9819_v46, %v9842_v15 }
 0xbcb   :  { %v9858_v44 = vpop.permute.xlu0 %9857 }
 0xbcf   :  { %v9850_v1 = vpop.permute.xlu0 %9849 }
 0xbd0   :  { %v9864_v49 = vsel %vm48_vm0, %v9862_v42, %v9850_v1 }
 0xbd1   :  { %v9867_v11 = vsel %vm9865_vm3, %v9864_v49, %v9858_v44 }
 0xbd3   :  { %v9884_v41 = vpop.permute.xlu0 %9883 }
 0xbd4   :  { %v9888_v55 = vadd.f32 %v9884_v41, %v9867_v11 }
 0xbd6   :  { %v9904_v47 = vmul.f32 %v9902_v27, %v9888_v55 }
 0xbd8   :  { %v9906_v24 = vmul.f32 %v9904_v47, %v9904_v47 }
 0xbda   :  { %v9911_v18 = vsel %vm9907_vm6, %v9906_v24, 0.0 }
 0xbdb   :  { %9912 = vadd.xlane.f32.xlu0 %v9911_v18 }
 0xc25   :  { %v9910_v48 = vpop.xlane.xlu1 %9909 }
 0xc26   :  { %v9915_v45 = vmul.f32 0.015625, %v9910_v48 }
 0xc28   :  { %v9917_v57 = vadd.f32 1e-05, %v9915_v45 }
 0xc2a   :  { %11334 = vrsqrt.f32 %v9917_v57 }
 0xc34   :  { %v11335_v62 = vpop.eup %11334 }
 0xc35   :  { %v9921_v20 = vmul.f32 %v11335_v62, %v9903_v28 }
 0xc37   :  { %v9930_v59 = vmul.f32 %v10202_v33, %v9921_v20 }
 0xc39   :  { %11023 = vmatprep.mubr.msk.f32.mxu1 %vm9907_vm6, %v9930_v59 }
 0xc68   :  { %v9913_v23 = vpop.xlane.xlu0 %9912 }
 0xc69   :  { %v9916_v4 = vmul.f32 0.015625, %v9913_v23 }
 0xc6b   :  { %v9918_v25 = vadd.f32 1e-05, %v9916_v4 }
 0xc6d   :  { %11336 = vrsqrt.f32 %v9918_v25 }
 0xc77   :  { %v11337_v54 = vpop.eup %11336 }
 0xc78   :  { %v9922_v30 = vmul.f32 %v11337_v54, %v9904_v47 }
 0xc7a   :  { %v9931_v29 = vmul.f32 %v10202_v33, %v9922_v30 }
 0xc7c   :  { %11024 = vmatmul.mubr.msk.f32.vlgmr.msra.gmra.mrb[94].mxu1 %vm9907_vm6, %v9931_v29 }
 0xd4f   :  { %v11025_v5 = vpop.f32.mrb[94].mxu1 }
 0xd50   :  { %10022 = vst.msk [vmem:[%s13539_s11 + $0x8] sm:$0xff] %vm48_vm0, %v11025_v5  ;;  %v10012_v0 = vpop.f32.mrb[95].mxu1 }
 0xd51   :  { %10021 = vst.msk [vmem:[%s13539_s11] sm:$0xff] %vm48_vm0, %v10012_v0 }

</bundles_post_ra>
